<compile_context>
chip_gen: v7x
topology: tpu7x:2x2x1
jax: 0.10.0
libtpu: 0.0.40
codegen_flags: <defaults>
</compile_context>

<pallas_src>
import functools
import math

import jax
import jax.numpy as jnp
from jax.experimental import pallas as pl
from jax.experimental.pallas import tpu as pltpu


def _leaky(y):
    # LeakyReLU(0.2) in f32.
    return jnp.where(y >= 0.0, y, 0.2 * y)


def _bn_leaky(y, gamma, beta, eps):
    # Training-mode BatchNorm1d (biased batch statistics, eps=0.8 — matches the
    # PyTorch-GAN reference) folded into one scale/shift pass, then LeakyReLU.
    mean = jnp.mean(y, axis=0, keepdims=True)
    var = jnp.mean(jnp.square(y - mean), axis=0, keepdims=True)
    scale = gamma * jax.lax.rsqrt(var + eps)
    shift = beta - mean * scale
    return _leaky(y * scale + shift)


def cgan_generator_kernel(labels_ref, z_ref,
                          t0_ref, w0b_ref, b0_ref,
                          w1_ref, b1_ref, g1_ref, be1_ref,
                          w2_ref, b2_ref, g2_ref, be2_ref,
                          w3_ref, b3_ref, g3_ref, be3_ref,
                          w4_ref, b4_ref,
                          o_ref, *, n_classes, eps):
    B = z_ref.shape[0]

    # Embedding lookup + emb-half of layer 0 as a single one-hot matmul against
    # the pre-folded table T0 = emb_table @ W0[:latent]  (shape n_classes x 128).
    class_iota = jax.lax.broadcasted_iota(jnp.int32, (B, n_classes), 1)
    one_hot = jnp.where(labels_ref[...] == class_iota, 1.0, 0.0).astype(jnp.bfloat16)

    # --- Layer 0: Linear(2*latent, 128) + LeakyReLU (concat folded into split matmul) ---
    h = (jnp.dot(one_hot, t0_ref[...], preferred_element_type=jnp.float32)
         + jnp.dot(z_ref[...].astype(jnp.bfloat16), w0b_ref[...],
                   preferred_element_type=jnp.float32)
         + b0_ref[...])
    h = _leaky(h)

    # --- Layers 1..3: Linear + BatchNorm1d(eps=0.8, train mode) + LeakyReLU ---
    h = jnp.dot(h.astype(jnp.bfloat16), w1_ref[...],
                preferred_element_type=jnp.float32) + b1_ref[...]
    h = _bn_leaky(h, g1_ref[...], be1_ref[...], eps)

    h = jnp.dot(h.astype(jnp.bfloat16), w2_ref[...],
                preferred_element_type=jnp.float32) + b2_ref[...]
    h = _bn_leaky(h, g2_ref[...], be2_ref[...], eps)

    h = jnp.dot(h.astype(jnp.bfloat16), w3_ref[...],
                preferred_element_type=jnp.float32) + b3_ref[...]
    h = _bn_leaky(h, g3_ref[...], be3_ref[...], eps)

    # --- Layer 4: Linear(1024, prod(img_shape)) + Tanh ---
    h = jnp.dot(h.astype(jnp.bfloat16), w4_ref[...],
                preferred_element_type=jnp.float32) + b4_ref[...]
    o_ref[...] = jnp.tanh(h).astype(o_ref.dtype)


def cgan_generator_forward(params, z, labels, img_shape, *, eps=0.8,
                           out_dtype=jnp.float32):
    """Fused CGAN generator forward.

    Accepts either a single batch  (z: (B, latent),   labels: (B,))
    or N independent micro-batches (z: (N, B, latent), labels: (N, B)).
    Each micro-batch gets its own training-mode BatchNorm statistics, exactly
    like N separate calls to the PyTorch module.
    """
    single = (z.ndim == 2)
    if single:
        z = z[None]
        labels = labels[None]
    N, B, latent_dim = z.shape
    n_classes = params["t0"].shape[0]
    out_dim = int(math.prod(img_shape))

    labels3d = labels.astype(jnp.int32).reshape(N, B, 1)

    weights = [params["t0"], params["w0b"], params["b0"],
               params["w1"], params["b1"], params["g1"], params["be1"],
               params["w2"], params["b2"], params["g2"], params["be2"],
               params["w3"], params["b3"], params["g3"], params["be3"],
               params["w4"], params["b4"]]

    # Constant index_map -> Pallas fetches each weight once and keeps it
    # VMEM-resident across all grid steps (no re-DMA when block index repeats).
    def wspec(a):
        nd = a.ndim
        return pl.BlockSpec(a.shape, lambda n, _nd=nd: (0,) * _nd)

    in_specs = [pl.BlockSpec((None, B, 1), lambda n: (n, 0, 0)),            # labels
                pl.BlockSpec((None, B, latent_dim), lambda n: (n, 0, 0))]   # z
    in_specs += [wspec(a) for a in weights]

    # NOTE(scaling): for large img_shape (e.g. 3x64x64) w4 becomes 24 MiB bf16;
    # then tile layer 4 / the output along out_dim (extra "arbitrary" grid axis,
    # TN a multiple of 128) and raise vmem_limit_bytes.  Not needed at these shapes.

    matmul_flops_per_step = 2 * B * (n_classes * 128
                                     + latent_dim * 128
                                     + 128 * 256 + 256 * 512 + 512 * 1024
                                     + 1024 * out_dim)
    weight_bytes = sum(int(a.size) * a.dtype.itemsize for a in weights)
    io_bytes_per_step = (B * 4                                   # labels
                         + B * latent_dim * 4                    # z
                         + B * out_dim * jnp.dtype(out_dtype).itemsize)

    kernel = functools.partial(cgan_generator_kernel, n_classes=n_classes, eps=eps)
    flat = pl.pallas_call(
        kernel,
        out_shape=jax.ShapeDtypeStruct((N, B, out_dim), out_dtype),
        grid_spec=pltpu.PrefetchScalarGridSpec(
            num_scalar_prefetch=0,
            grid=(N,),
            in_specs=in_specs,
            out_specs=pl.BlockSpec((None, B, out_dim), lambda n: (n, 0, 0)),
        ),
        compiler_params=pltpu.CompilerParams(
            # Each grid step is a full independent batch (BN stats intact), so
            # the axis is safe to shard across v7x's two TensorCores.
            dimension_semantics=("parallel",),
            vmem_limit_bytes=32 * 1024 * 1024),
        cost_estimate=pl.CostEstimate(
            flops=N * matmul_flops_per_step,
            transcendentals=N * B * out_dim,
            bytes_accessed=weight_bytes + N * io_bytes_per_step),
    )(labels3d, z, *weights)

    img = flat.reshape(N, B, *img_shape)   # NCHW per micro-batch, like img.view(...)
    return img[0] if single else img


def init_linear(key, in_f, out_f):
    # PyTorch nn.Linear default: U(-1/sqrt(in_f), 1/sqrt(in_f)) for W and b.
    k1, k2 = jax.random.split(key)
    bound = 1.0 / math.sqrt(in_f)
    w = jax.random.uniform(k1, (in_f, out_f), jnp.float32, -bound, bound)
    b = jax.random.uniform(k2, (1, out_f), jnp.float32, -bound, bound)
    return w, b


def make_params(key, latent_dim, n_classes, img_shape):
    out_dim = int(math.prod(img_shape))
    dims = [2 * latent_dim, 128, 256, 512, 1024, out_dim]
    keys = jax.random.split(key, 6)

    params = {}

    # nn.Embedding default init: N(0, 1).
    emb = jax.random.normal(keys[0], (n_classes, latent_dim), jnp.float32)

    # Layer 0 (no BN): split W0 rows into emb-part / z-part so torch.cat never
    # materializes, and pre-fold the emb table into the emb-part:
    #   T0 = emb_table @ W0[:latent]   (n_classes x 128)
    w0, b0 = init_linear(keys[1], dims[0], dims[1])
    params["t0"] = (emb @ w0[:latent_dim]).astype(jnp.bfloat16)
    params["w0b"] = w0[latent_dim:].astype(jnp.bfloat16)
    params["b0"] = b0

    # Layers 1..3 (Linear + BN + LeakyReLU).
    for li, di in zip((1, 2, 3), (2, 3, 4)):
        w, b = init_linear(keys[di], dims[di - 1], dims[di])
        params[f"w{li}"] = w.astype(jnp.bfloat16)
        params[f"b{li}"] = b
        params[f"g{li}"] = jnp.ones((1, dims[di]), jnp.float32)    # BN weight init
        params[f"be{li}"] = jnp.zeros((1, dims[di]), jnp.float32)  # BN bias init

    # Layer 4 (Linear + Tanh).
    w4, b4 = init_linear(keys[5], dims[4], dims[5])
    params["w4"] = w4.astype(jnp.bfloat16)
    params["b4"] = b4
    return params


if __name__ == "__main__":
    # Small, module-consistent shapes.
    img_size = 16
    latent_dim = 32
    channels = 1
    n_classes = 10
    micro_batches = 4     # grid axis: weights stay VMEM-resident across these
    batch = 32            # per micro-batch; multiple of 8, fills more MXU rows
    img_shape = (channels, img_size, img_size)

    key = jax.random.PRNGKey(0)
    kp, kz, kl = jax.random.split(key, 3)
    params = make_params(kp, latent_dim, n_classes, img_shape)

    z = jax.random.normal(kz, (micro_batches, batch, latent_dim), jnp.float32)
    labels = jax.random.randint(kl, (micro_batches, batch), 0, n_classes)

    img = cgan_generator_forward(params, z, labels, img_shape)
    img = jax.block_until_ready(img)
    assert img.shape == (micro_batches, batch, channels, img_size, img_size)
    assert bool(jnp.all(jnp.isfinite(img)))
    print("KERNEL_OK")
</pallas_src>

<mosaic_0001>
module attributes {stable_mosaic.version = 11 : i64} {
  func.func @cgan_generator_kernel(%arg0: i32, %arg1: memref<1x32x1xi32, #tpu.memory_space<vmem>>, %arg2: memref<1x32x32xf32, #tpu.memory_space<vmem>>, %arg3: memref<10x128xbf16, #tpu.memory_space<vmem>>, %arg4: memref<32x128xbf16, #tpu.memory_space<vmem>>, %arg5: memref<1x128xf32, #tpu.memory_space<vmem>>, %arg6: memref<128x256xbf16, #tpu.memory_space<vmem>>, %arg7: memref<1x256xf32, #tpu.memory_space<vmem>>, %arg8: memref<1x256xf32, #tpu.memory_space<vmem>>, %arg9: memref<1x256xf32, #tpu.memory_space<vmem>>, %arg10: memref<256x512xbf16, #tpu.memory_space<vmem>>, %arg11: memref<1x512xf32, #tpu.memory_space<vmem>>, %arg12: memref<1x512xf32, #tpu.memory_space<vmem>>, %arg13: memref<1x512xf32, #tpu.memory_space<vmem>>, %arg14: memref<512x1024xbf16, #tpu.memory_space<vmem>>, %arg15: memref<1x1024xf32, #tpu.memory_space<vmem>>, %arg16: memref<1x1024xf32, #tpu.memory_space<vmem>>, %arg17: memref<1x1024xf32, #tpu.memory_space<vmem>>, %arg18: memref<1024x256xbf16, #tpu.memory_space<vmem>>, %arg19: memref<1x256xf32, #tpu.memory_space<vmem>>, %arg20: memref<1x32x256xf32, #tpu.memory_space<vmem>>) attributes {dimension_semantics = [#tpu.dimension_semantics<parallel>], iteration_bounds = array<i64: 4>, scalar_prefetch = 0 : i64, scratch_operands = 0 : i64, tpu.core_type = #tpu.core_type<tc>, window_params = [{transform_indices = @transform_0, window_bounds = array<i64: 1, 32, 1>}, {transform_indices = @transform_1, window_bounds = array<i64: 1, 32, 32>}, {pipeline_mode = #tpu.pipeline_mode<synchronous>, transform_indices = @transform_2, window_bounds = array<i64: 10, 128>}, {pipeline_mode = #tpu.pipeline_mode<synchronous>, transform_indices = @transform_3, window_bounds = array<i64: 32, 128>}, {pipeline_mode = #tpu.pipeline_mode<synchronous>, transform_indices = @transform_4, window_bounds = array<i64: 1, 128>}, {pipeline_mode = #tpu.pipeline_mode<synchronous>, transform_indices = @transform_5, window_bounds = array<i64: 128, 256>}, {pipeline_mode = #tpu.pipeline_mode<synchronous>, transform_indices = @transform_6, window_bounds = array<i64: 1, 256>}, {pipeline_mode = #tpu.pipeline_mode<synchronous>, transform_indices = @transform_7, window_bounds = array<i64: 1, 256>}, {pipeline_mode = #tpu.pipeline_mode<synchronous>, transform_indices = @transform_8, window_bounds = array<i64: 1, 256>}, {pipeline_mode = #tpu.pipeline_mode<synchronous>, transform_indices = @transform_9, window_bounds = array<i64: 256, 512>}, {pipeline_mode = #tpu.pipeline_mode<synchronous>, transform_indices = @transform_10, window_bounds = array<i64: 1, 512>}, {pipeline_mode = #tpu.pipeline_mode<synchronous>, transform_indices = @transform_11, window_bounds = array<i64: 1, 512>}, {pipeline_mode = #tpu.pipeline_mode<synchronous>, transform_indices = @transform_12, window_bounds = array<i64: 1, 512>}, {pipeline_mode = #tpu.pipeline_mode<synchronous>, transform_indices = @transform_13, window_bounds = array<i64: 512, 1024>}, {pipeline_mode = #tpu.pipeline_mode<synchronous>, transform_indices = @transform_14, window_bounds = array<i64: 1, 1024>}, {pipeline_mode = #tpu.pipeline_mode<synchronous>, transform_indices = @transform_15, window_bounds = array<i64: 1, 1024>}, {pipeline_mode = #tpu.pipeline_mode<synchronous>, transform_indices = @transform_16, window_bounds = array<i64: 1, 1024>}, {pipeline_mode = #tpu.pipeline_mode<synchronous>, transform_indices = @transform_17, window_bounds = array<i64: 1024, 256>}, {pipeline_mode = #tpu.pipeline_mode<synchronous>, transform_indices = @transform_18, window_bounds = array<i64: 1, 256>}, {transform_indices = @transform_19, window_bounds = array<i64: 1, 32, 256>}]} {
    %0 = tpu.iota {dimensions = array<i32: 1>} : vector<32x10xi32>
    %c0 = arith.constant 0 : index
    %c0_0 = arith.constant 0 : index
    %c0_1 = arith.constant 0 : index
    %1 = vector.load %arg1[%c0, %c0_0, %c0_1] : memref<1x32x1xi32, #tpu.memory_space<vmem>>, vector<1x32x1xi32>
    %2 = vector.shape_cast %1 : vector<1x32x1xi32> to vector<32x1xi32>
    %3 = vector.broadcast %2 : vector<32x1xi32> to vector<32x10xi32>
    %4 = arith.cmpi eq, %3, %0 : vector<32x10xi32>
    %cst = arith.constant 1.000000e+00 : f32
    %cst_2 = arith.constant 0.000000e+00 : f32
    %5 = vector.broadcast %cst : f32 to vector<32x10xf32>
    %6 = vector.broadcast %cst_2 : f32 to vector<32x10xf32>
    %7 = arith.select %4, %5, %6 : vector<32x10xi1>, vector<32x10xf32>
    %8 = arith.truncf %7 : vector<32x10xf32> to vector<32x10xbf16>
    %c0_3 = arith.constant 0 : index
    %c0_4 = arith.constant 0 : index
    %9 = vector.load %arg3[%c0_3, %c0_4] : memref<10x128xbf16, #tpu.memory_space<vmem>>, vector<10x128xbf16>
    %cst_5 = arith.constant dense<0.000000e+00> : vector<32x128xf32>
    %10 = tpu.matmul %8, %9, %cst_5 {dimension_numbers = #tpu.dot_dimension_numbers<[1], [0], [0], [1], [0, 0, 1, 1], [], []>} : vector<32x10xbf16>, vector<10x128xbf16>, vector<32x128xf32> -> vector<32x128xf32>
    %c0_6 = arith.constant 0 : index
    %c0_7 = arith.constant 0 : index
    %c0_8 = arith.constant 0 : index
    %11 = vector.load %arg2[%c0_6, %c0_7, %c0_8] : memref<1x32x32xf32, #tpu.memory_space<vmem>>, vector<1x32x32xf32>
    %12 = vector.shape_cast %11 : vector<1x32x32xf32> to vector<32x32xf32>
    %13 = arith.truncf %12 : vector<32x32xf32> to vector<32x32xbf16>
    %c0_9 = arith.constant 0 : index
    %c0_10 = arith.constant 0 : index
    %14 = vector.load %arg4[%c0_9, %c0_10] : memref<32x128xbf16, #tpu.memory_space<vmem>>, vector<32x128xbf16>
    %cst_11 = arith.constant dense<0.000000e+00> : vector<32x128xf32>
    %15 = tpu.matmul %13, %14, %cst_11 {dimension_numbers = #tpu.dot_dimension_numbers<[1], [0], [0], [1], [0, 0, 1, 1], [], []>} : vector<32x32xbf16>, vector<32x128xbf16>, vector<32x128xf32> -> vector<32x128xf32>
    %16 = arith.addf %10, %15 : vector<32x128xf32>
    %c0_12 = arith.constant 0 : index
    %c0_13 = arith.constant 0 : index
    %17 = vector.load %arg5[%c0_12, %c0_13] : memref<1x128xf32, #tpu.memory_space<vmem>>, vector<1x128xf32>
    %18 = vector.broadcast %17 : vector<1x128xf32> to vector<32x128xf32>
    %19 = arith.addf %16, %18 : vector<32x128xf32>
    %cst_14 = arith.constant 0.000000e+00 : f32
    %20 = vector.broadcast %cst_14 : f32 to vector<32x128xf32>
    %21 = arith.cmpf oge, %19, %20 : vector<32x128xf32>
    %cst_15 = arith.constant 2.000000e-01 : f32
    %22 = vector.broadcast %cst_15 : f32 to vector<32x128xf32>
    %23 = arith.mulf %22, %19 : vector<32x128xf32>
    %24 = arith.select %21, %19, %23 : vector<32x128xi1>, vector<32x128xf32>
    %25 = arith.truncf %24 : vector<32x128xf32> to vector<32x128xbf16>
    %c0_16 = arith.constant 0 : index
    %c0_17 = arith.constant 0 : index
    %26 = vector.load %arg6[%c0_16, %c0_17] : memref<128x256xbf16, #tpu.memory_space<vmem>>, vector<128x256xbf16>
    %cst_18 = arith.constant dense<0.000000e+00> : vector<32x256xf32>
    %27 = tpu.matmul %25, %26, %cst_18 {dimension_numbers = #tpu.dot_dimension_numbers<[1], [0], [0], [1], [0, 0, 1, 1], [], []>} : vector<32x128xbf16>, vector<128x256xbf16>, vector<32x256xf32> -> vector<32x256xf32>
    %c0_19 = arith.constant 0 : index
    %c0_20 = arith.constant 0 : index
    %28 = vector.load %arg7[%c0_19, %c0_20] : memref<1x256xf32, #tpu.memory_space<vmem>>, vector<1x256xf32>
    %29 = vector.broadcast %28 : vector<1x256xf32> to vector<32x256xf32>
    %30 = arith.addf %27, %29 : vector<32x256xf32>
    %c0_21 = arith.constant 0 : index
    %c0_22 = arith.constant 0 : index
    %31 = vector.load %arg8[%c0_21, %c0_22] : memref<1x256xf32, #tpu.memory_space<vmem>>, vector<1x256xf32>
    %c0_23 = arith.constant 0 : index
    %c0_24 = arith.constant 0 : index
    %32 = vector.load %arg9[%c0_23, %c0_24] : memref<1x256xf32, #tpu.memory_space<vmem>>, vector<1x256xf32>
    %cst_25 = arith.constant dense<0.000000e+00> : vector<256xf32>
    %33 = vector.multi_reduction <add>, %30, %cst_25 [0] : vector<32x256xf32> to vector<256xf32>
    %34 = vector.shape_cast %33 : vector<256xf32> to vector<1x256xf32>
    %cst_26 = arith.constant 3.200000e+01 : f32
    %35 = vector.broadcast %cst_26 : f32 to vector<1x256xf32>
    %36 = arith.divf %34, %35 : vector<1x256xf32>
    %37 = vector.broadcast %36 : vector<1x256xf32> to vector<32x256xf32>
    %38 = arith.subf %30, %37 : vector<32x256xf32>
    %39 = arith.mulf %38, %38 : vector<32x256xf32>
    %cst_27 = arith.constant dense<0.000000e+00> : vector<256xf32>
    %40 = vector.multi_reduction <add>, %39, %cst_27 [0] : vector<32x256xf32> to vector<256xf32>
    %41 = vector.shape_cast %40 : vector<256xf32> to vector<1x256xf32>
    %cst_28 = arith.constant 3.200000e+01 : f32
    %42 = vector.broadcast %cst_28 : f32 to vector<1x256xf32>
    %43 = arith.divf %41, %42 : vector<1x256xf32>
    %cst_29 = arith.constant 8.000000e-01 : f32
    %44 = vector.broadcast %cst_29 : f32 to vector<1x256xf32>
    %45 = arith.addf %43, %44 : vector<1x256xf32>
    %46 = math.rsqrt %45 : vector<1x256xf32>
    %47 = arith.mulf %31, %46 : vector<1x256xf32>
    %48 = arith.mulf %36, %47 : vector<1x256xf32>
    %49 = arith.subf %32, %48 : vector<1x256xf32>
    %50 = vector.broadcast %47 : vector<1x256xf32> to vector<32x256xf32>
    %51 = arith.mulf %30, %50 : vector<32x256xf32>
    %52 = vector.broadcast %49 : vector<1x256xf32> to vector<32x256xf32>
    %53 = arith.addf %51, %52 : vector<32x256xf32>
    %cst_30 = arith.constant 0.000000e+00 : f32
    %54 = vector.broadcast %cst_30 : f32 to vector<32x256xf32>
    %55 = arith.cmpf oge, %53, %54 : vector<32x256xf32>
    %cst_31 = arith.constant 2.000000e-01 : f32
    %56 = vector.broadcast %cst_31 : f32 to vector<32x256xf32>
    %57 = arith.mulf %56, %53 : vector<32x256xf32>
    %58 = arith.select %55, %53, %57 : vector<32x256xi1>, vector<32x256xf32>
    %59 = arith.truncf %58 : vector<32x256xf32> to vector<32x256xbf16>
    %c0_32 = arith.constant 0 : index
    %c0_33 = arith.constant 0 : index
    %60 = vector.load %arg10[%c0_32, %c0_33] : memref<256x512xbf16, #tpu.memory_space<vmem>>, vector<256x512xbf16>
    %cst_34 = arith.constant dense<0.000000e+00> : vector<32x512xf32>
    %61 = tpu.matmul %59, %60, %cst_34 {dimension_numbers = #tpu.dot_dimension_numbers<[1], [0], [0], [1], [0, 0, 1, 1], [], []>} : vector<32x256xbf16>, vector<256x512xbf16>, vector<32x512xf32> -> vector<32x512xf32>
    %c0_35 = arith.constant 0 : index
    %c0_36 = arith.constant 0 : index
    %62 = vector.load %arg11[%c0_35, %c0_36] : memref<1x512xf32, #tpu.memory_space<vmem>>, vector<1x512xf32>
    %63 = vector.broadcast %62 : vector<1x512xf32> to vector<32x512xf32>
    %64 = arith.addf %61, %63 : vector<32x512xf32>
    %c0_37 = arith.constant 0 : index
    %c0_38 = arith.constant 0 : index
    %65 = vector.load %arg12[%c0_37, %c0_38] : memref<1x512xf32, #tpu.memory_space<vmem>>, vector<1x512xf32>
    %c0_39 = arith.constant 0 : index
    %c0_40 = arith.constant 0 : index
    %66 = vector.load %arg13[%c0_39, %c0_40] : memref<1x512xf32, #tpu.memory_space<vmem>>, vector<1x512xf32>
    %cst_41 = arith.constant dense<0.000000e+00> : vector<512xf32>
    %67 = vector.multi_reduction <add>, %64, %cst_41 [0] : vector<32x512xf32> to vector<512xf32>
    %68 = vector.shape_cast %67 : vector<512xf32> to vector<1x512xf32>
    %cst_42 = arith.constant 3.200000e+01 : f32
    %69 = vector.broadcast %cst_42 : f32 to vector<1x512xf32>
    %70 = arith.divf %68, %69 : vector<1x512xf32>
    %71 = vector.broadcast %70 : vector<1x512xf32> to vector<32x512xf32>
    %72 = arith.subf %64, %71 : vector<32x512xf32>
    %73 = arith.mulf %72, %72 : vector<32x512xf32>
    %cst_43 = arith.constant dense<0.000000e+00> : vector<512xf32>
    %74 = vector.multi_reduction <add>, %73, %cst_43 [0] : vector<32x512xf32> to vector<512xf32>
    %75 = vector.shape_cast %74 : vector<512xf32> to vector<1x512xf32>
    %cst_44 = arith.constant 3.200000e+01 : f32
    %76 = vector.broadcast %cst_44 : f32 to vector<1x512xf32>
    %77 = arith.divf %75, %76 : vector<1x512xf32>
    %cst_45 = arith.constant 8.000000e-01 : f32
    %78 = vector.broadcast %cst_45 : f32 to vector<1x512xf32>
    %79 = arith.addf %77, %78 : vector<1x512xf32>
    %80 = math.rsqrt %79 : vector<1x512xf32>
    %81 = arith.mulf %65, %80 : vector<1x512xf32>
    %82 = arith.mulf %70, %81 : vector<1x512xf32>
    %83 = arith.subf %66, %82 : vector<1x512xf32>
    %84 = vector.broadcast %81 : vector<1x512xf32> to vector<32x512xf32>
    %85 = arith.mulf %64, %84 : vector<32x512xf32>
    %86 = vector.broadcast %83 : vector<1x512xf32> to vector<32x512xf32>
    %87 = arith.addf %85, %86 : vector<32x512xf32>
    %cst_46 = arith.constant 0.000000e+00 : f32
    %88 = vector.broadcast %cst_46 : f32 to vector<32x512xf32>
    %89 = arith.cmpf oge, %87, %88 : vector<32x512xf32>
    %cst_47 = arith.constant 2.000000e-01 : f32
    %90 = vector.broadcast %cst_47 : f32 to vector<32x512xf32>
    %91 = arith.mulf %90, %87 : vector<32x512xf32>
    %92 = arith.select %89, %87, %91 : vector<32x512xi1>, vector<32x512xf32>
    %93 = arith.truncf %92 : vector<32x512xf32> to vector<32x512xbf16>
    %c0_48 = arith.constant 0 : index
    %c0_49 = arith.constant 0 : index
    %94 = vector.load %arg14[%c0_48, %c0_49] : memref<512x1024xbf16, #tpu.memory_space<vmem>>, vector<512x1024xbf16>
    %cst_50 = arith.constant dense<0.000000e+00> : vector<32x1024xf32>
    %95 = tpu.matmul %93, %94, %cst_50 {dimension_numbers = #tpu.dot_dimension_numbers<[1], [0], [0], [1], [0, 0, 1, 1], [], []>} : vector<32x512xbf16>, vector<512x1024xbf16>, vector<32x1024xf32> -> vector<32x1024xf32>
    %c0_51 = arith.constant 0 : index
    %c0_52 = arith.constant 0 : index
    %96 = vector.load %arg15[%c0_51, %c0_52] : memref<1x1024xf32, #tpu.memory_space<vmem>>, vector<1x1024xf32>
    %97 = vector.broadcast %96 : vector<1x1024xf32> to vector<32x1024xf32>
    %98 = arith.addf %95, %97 : vector<32x1024xf32>
    %c0_53 = arith.constant 0 : index
    %c0_54 = arith.constant 0 : index
    %99 = vector.load %arg16[%c0_53, %c0_54] : memref<1x1024xf32, #tpu.memory_space<vmem>>, vector<1x1024xf32>
    %c0_55 = arith.constant 0 : index
    %c0_56 = arith.constant 0 : index
    %100 = vector.load %arg17[%c0_55, %c0_56] : memref<1x1024xf32, #tpu.memory_space<vmem>>, vector<1x1024xf32>
    %cst_57 = arith.constant dense<0.000000e+00> : vector<1024xf32>
    %101 = vector.multi_reduction <add>, %98, %cst_57 [0] : vector<32x1024xf32> to vector<1024xf32>
    %102 = vector.shape_cast %101 : vector<1024xf32> to vector<1x1024xf32>
    %cst_58 = arith.constant 3.200000e+01 : f32
    %103 = vector.broadcast %cst_58 : f32 to vector<1x1024xf32>
    %104 = arith.divf %102, %103 : vector<1x1024xf32>
    %105 = vector.broadcast %104 : vector<1x1024xf32> to vector<32x1024xf32>
    %106 = arith.subf %98, %105 : vector<32x1024xf32>
    %107 = arith.mulf %106, %106 : vector<32x1024xf32>
    %cst_59 = arith.constant dense<0.000000e+00> : vector<1024xf32>
    %108 = vector.multi_reduction <add>, %107, %cst_59 [0] : vector<32x1024xf32> to vector<1024xf32>
    %109 = vector.shape_cast %108 : vector<1024xf32> to vector<1x1024xf32>
    %cst_60 = arith.constant 3.200000e+01 : f32
    %110 = vector.broadcast %cst_60 : f32 to vector<1x1024xf32>
    %111 = arith.divf %109, %110 : vector<1x1024xf32>
    %cst_61 = arith.constant 8.000000e-01 : f32
    %112 = vector.broadcast %cst_61 : f32 to vector<1x1024xf32>
    %113 = arith.addf %111, %112 : vector<1x1024xf32>
    %114 = math.rsqrt %113 : vector<1x1024xf32>
    %115 = arith.mulf %99, %114 : vector<1x1024xf32>
    %116 = arith.mulf %104, %115 : vector<1x1024xf32>
    %117 = arith.subf %100, %116 : vector<1x1024xf32>
    %118 = vector.broadcast %115 : vector<1x1024xf32> to vector<32x1024xf32>
    %119 = arith.mulf %98, %118 : vector<32x1024xf32>
    %120 = vector.broadcast %117 : vector<1x1024xf32> to vector<32x1024xf32>
    %121 = arith.addf %119, %120 : vector<32x1024xf32>
    %cst_62 = arith.constant 0.000000e+00 : f32
    %122 = vector.broadcast %cst_62 : f32 to vector<32x1024xf32>
    %123 = arith.cmpf oge, %121, %122 : vector<32x1024xf32>
    %cst_63 = arith.constant 2.000000e-01 : f32
    %124 = vector.broadcast %cst_63 : f32 to vector<32x1024xf32>
    %125 = arith.mulf %124, %121 : vector<32x1024xf32>
    %126 = arith.select %123, %121, %125 : vector<32x1024xi1>, vector<32x1024xf32>
    %127 = arith.truncf %126 : vector<32x1024xf32> to vector<32x1024xbf16>
    %c0_64 = arith.constant 0 : index
    %c0_65 = arith.constant 0 : index
    %128 = vector.load %arg18[%c0_64, %c0_65] : memref<1024x256xbf16, #tpu.memory_space<vmem>>, vector<1024x256xbf16>
    %cst_66 = arith.constant dense<0.000000e+00> : vector<32x256xf32>
    %129 = tpu.matmul %127, %128, %cst_66 {dimension_numbers = #tpu.dot_dimension_numbers<[1], [0], [0], [1], [0, 0, 1, 1], [], []>} : vector<32x1024xbf16>, vector<1024x256xbf16>, vector<32x256xf32> -> vector<32x256xf32>
    %c0_67 = arith.constant 0 : index
    %c0_68 = arith.constant 0 : index
    %130 = vector.load %arg19[%c0_67, %c0_68] : memref<1x256xf32, #tpu.memory_space<vmem>>, vector<1x256xf32>
    %131 = vector.broadcast %130 : vector<1x256xf32> to vector<32x256xf32>
    %132 = arith.addf %129, %131 : vector<32x256xf32>
    %133 = math.tanh %132 : vector<32x256xf32>
    %c0_69 = arith.constant 0 : index
    %c0_70 = arith.constant 0 : index
    %c0_71 = arith.constant 0 : index
    %134 = vector.load %arg20[%c0_69, %c0_70, %c0_71] : memref<1x32x256xf32, #tpu.memory_space<vmem>>, vector<1x32x256xf32>
    %135 = vector.shape_cast %134 : vector<1x32x256xf32> to vector<32x256xf32>
    %136 = vector.shape_cast %133 : vector<32x256xf32> to vector<1x32x256xf32>
    tpu.vector_store %arg20[%c0_69, %c0_70, %c0_71], %136 {strides = array<i32>} : memref<1x32x256xf32, #tpu.memory_space<vmem>>, vector<1x32x256xf32>,
    return
  }
  func.func @transform_0(%arg0: i32) -> (i32, i32, i32) {
    %c0_i32 = arith.constant 0 : i32
    %c0_i32_0 = arith.constant 0 : i32
    %c0_i32_1 = arith.constant 0 : i32
    return %arg0, %c0_i32, %c0_i32_0 : i32, i32, i32
  }
  func.func @transform_1(%arg0: i32) -> (i32, i32, i32) {
    %c0_i32 = arith.constant 0 : i32
    %c0_i32_0 = arith.constant 0 : i32
    %c0_i32_1 = arith.constant 0 : i32
    return %arg0, %c0_i32, %c0_i32_0 : i32, i32, i32
  }
  func.func @transform_2(%arg0: i32) -> (i32, i32) {
    %c0_i32 = arith.constant 0 : i32
    %c0_i32_0 = arith.constant 0 : i32
    %c0_i32_1 = arith.constant 0 : i32
    return %c0_i32, %c0_i32_0 : i32, i32
  }
  func.func @transform_3(%arg0: i32) -> (i32, i32) {
    %c0_i32 = arith.constant 0 : i32
    %c0_i32_0 = arith.constant 0 : i32
    %c0_i32_1 = arith.constant 0 : i32
    return %c0_i32, %c0_i32_0 : i32, i32
  }
  func.func @transform_4(%arg0: i32) -> (i32, i32) {
    %c0_i32 = arith.constant 0 : i32
    %c0_i32_0 = arith.constant 0 : i32
    %c0_i32_1 = arith.constant 0 : i32
    return %c0_i32, %c0_i32_0 : i32, i32
  }
  func.func @transform_5(%arg0: i32) -> (i32, i32) {
    %c0_i32 = arith.constant 0 : i32
    %c0_i32_0 = arith.constant 0 : i32
    %c0_i32_1 = arith.constant 0 : i32
    return %c0_i32, %c0_i32_0 : i32, i32
  }
  func.func @transform_6(%arg0: i32) -> (i32, i32) {
    %c0_i32 = arith.constant 0 : i32
    %c0_i32_0 = arith.constant 0 : i32
    %c0_i32_1 = arith.constant 0 : i32
    return %c0_i32, %c0_i32_0 : i32, i32
  }
  func.func @transform_7(%arg0: i32) -> (i32, i32) {
    %c0_i32 = arith.constant 0 : i32
    %c0_i32_0 = arith.constant 0 : i32
    %c0_i32_1 = arith.constant 0 : i32
    return %c0_i32, %c0_i32_0 : i32, i32
  }
  func.func @transform_8(%arg0: i32) -> (i32, i32) {
    %c0_i32 = arith.constant 0 : i32
    %c0_i32_0 = arith.constant 0 : i32
    %c0_i32_1 = arith.constant 0 : i32
    return %c0_i32, %c0_i32_0 : i32, i32
  }
  func.func @transform_9(%arg0: i32) -> (i32, i32) {
    %c0_i32 = arith.constant 0 : i32
    %c0_i32_0 = arith.constant 0 : i32
    %c0_i32_1 = arith.constant 0 : i32
    return %c0_i32, %c0_i32_0 : i32, i32
  }
  func.func @transform_10(%arg0: i32) -> (i32, i32) {
    %c0_i32 = arith.constant 0 : i32
    %c0_i32_0 = arith.constant 0 : i32
    %c0_i32_1 = arith.constant 0 : i32
    return %c0_i32, %c0_i32_0 : i32, i32
  }
  func.func @transform_11(%arg0: i32) -> (i32, i32) {
    %c0_i32 = arith.constant 0 : i32
    %c0_i32_0 = arith.constant 0 : i32
    %c0_i32_1 = arith.constant 0 : i32
    return %c0_i32, %c0_i32_0 : i32, i32
  }
  func.func @transform_12(%arg0: i32) -> (i32, i32) {
    %c0_i32 = arith.constant 0 : i32
    %c0_i32_0 = arith.constant 0 : i32
    %c0_i32_1 = arith.constant 0 : i32
    return %c0_i32, %c0_i32_0 : i32, i32
  }
  func.func @transform_13(%arg0: i32) -> (i32, i32) {
    %c0_i32 = arith.constant 0 : i32
    %c0_i32_0 = arith.constant 0 : i32
    %c0_i32_1 = arith.constant 0 : i32
    return %c0_i32, %c0_i32_0 : i32, i32
  }
  func.func @transform_14(%arg0: i32) -> (i32, i32) {
    %c0_i32 = arith.constant 0 : i32
    %c0_i32_0 = arith.constant 0 : i32
    %c0_i32_1 = arith.constant 0 : i32
    return %c0_i32, %c0_i32_0 : i32, i32
  }
  func.func @transform_15(%arg0: i32) -> (i32, i32) {
    %c0_i32 = arith.constant 0 : i32
    %c0_i32_0 = arith.constant 0 : i32
    %c0_i32_1 = arith.constant 0 : i32
    return %c0_i32, %c0_i32_0 : i32, i32
  }
  func.func @transform_16(%arg0: i32) -> (i32, i32) {
    %c0_i32 = arith.constant 0 : i32
    %c0_i32_0 = arith.constant 0 : i32
    %c0_i32_1 = arith.constant 0 : i32
    return %c0_i32, %c0_i32_0 : i32, i32
  }
  func.func @transform_17(%arg0: i32) -> (i32, i32) {
    %c0_i32 = arith.constant 0 : i32
    %c0_i32_0 = arith.constant 0 : i32
    %c0_i32_1 = arith.constant 0 : i32
    return %c0_i32, %c0_i32_0 : i32, i32
  }
  func.func @transform_18(%arg0: i32) -> (i32, i32) {
    %c0_i32 = arith.constant 0 : i32
    %c0_i32_0 = arith.constant 0 : i32
    %c0_i32_1 = arith.constant 0 : i32
    return %c0_i32, %c0_i32_0 : i32, i32
  }
  func.func @transform_19(%arg0: i32) -> (i32, i32, i32) {
    %c0_i32 = arith.constant 0 : i32
    %c0_i32_0 = arith.constant 0 : i32
    %c0_i32_1 = arith.constant 0 : i32
    return %arg0, %c0_i32, %c0_i32_0 : i32, i32, i32
  }
}

</mosaic_0001>

<bundles_post_ra>
// kernel: tpu_custom_call.1
= control target key start
LH: loop header
LB: loop body
LE: loop exit
PB: predicated region body
PF: predicated region fallthrough
CT: control target
= control target key end

     0   :  { %s8669_s0 = inlined_call_operand.vmem [shape: s32[4,32,1], index: 0, kind: input, shape index: {}]   ;;  %s8670_s1 = inlined_call_operand.vmem [shape: f32[4,32,32], index: 1, kind: input, shape index: {}]   ;;  %s8671_s2 = inlined_call_operand.vmem [shape: bf16[10,128], index: 2, kind: input, shape index: {}]   ;;  %s8672_s3 = inlined_call_operand.hbm [shape: bf16[32,128], index: 3, kind: input, shape index: {}]   ;;  %s8673_s4 = inlined_call_operand.vmem [shape: f32[1,128], index: 4, kind: input, shape index: {}]   ;;  %s8674_s5 = inlined_call_operand.hbm [shape: bf16[128,256], index: 5, kind: input, shape index: {}]   ;;  %s8675_s6 = inlined_call_operand.hbm [shape: f32[1,256], index: 6, kind: input, shape index: {}]   ;;  %s8676_s7 = inlined_call_operand.hbm [shape: f32[1,256], index: 7, kind: input, shape index: {}]   ;;  %s8677_s8 = inlined_call_operand.hbm [shape: f32[1,256], index: 8, kind: input, shape index: {}]   ;;  %s8678_s9 = inlined_call_operand.hbm [shape: bf16[256,512], index: 9, kind: input, shape index: {}]   ;;  %s8679_s10 = inlined_call_operand.vmem [shape: f32[1,512], index: 10, kind: input, shape index: {}]   ;;  %s8680_s11 = inlined_call_operand.vmem [shape: f32[1,512], index: 11, kind: input, shape index: {}]   ;;  %s8681_s12 = inlined_call_operand.vmem [shape: f32[1,512], index: 12, kind: input, shape index: {}]   ;;  %s8682_s13 = inlined_call_operand.hbm [shape: bf16[512,1024], index: 13, kind: input, shape index: {}]   ;;  %s8683_s14 = inlined_call_operand.vmem [shape: f32[1,1024], index: 14, kind: input, shape index: {}]   ;;  %s8684_s15 = inlined_call_operand.vmem [shape: f32[1,1024], index: 15, kind: input, shape index: {}]   ;;  %s8685_s16 = inlined_call_operand.vmem [shape: f32[1,1024], index: 16, kind: input, shape index: {}]   ;;  %s8686_s17 = inlined_call_operand.hbm [shape: bf16[1024,256], index: 17, kind: input, shape index: {}]   ;;  %s8687_s18 = inlined_call_operand.vmem [shape: f32[1,256], index: 18, kind: input, shape index: {}]   ;;  %s8688_s19 = inlined_call_operand.hbm [shape: f32[4,32,256], index: 19, kind: output, shape index: {}]  }
   0x1   :  { %8728 = sst [smem:[#allocation53_spill]] %s8669_s0 }
   0x2   :  { %8729 = sst [smem:[#allocation54_spill]] %s8670_s1 }
   0x3   :  { %8730 = sst [smem:[#allocation55_spill]] %s8671_s2 }
   0x4   :  { %8731 = sst [smem:[#allocation56_spill]] %s8672_s3 }
   0x5   :  { %8732 = sst [smem:[#allocation57_spill]] %s8674_s5 }
   0x6   :  { %8733 = sst [smem:[#allocation58_spill]] %s8685_s16 }
   0x7   :  { %8734 = sst [smem:[#allocation59_spill]] %s8687_s18 }
   0x8   :  { %8735 = sst [smem:[#allocation60_spill]] %s8688_s19 }
   0x9   :  { %24 = vsyncpa [#allocation3], 0 }
   0xa   :  { %25 = vsyncpa [#allocation6], 0 }
   0xb   :  { %26 = vsyncpa [#allocation9], 0 }
   0xc   :  { %27 = vsyncpa [#allocation12], 0 }
   0xd   :  { %28 = vsyncpa [#allocation15], 0 }
   0xe   :  { %29 = vsyncpa [#allocation4], 0 }
   0xf   :  { %31 = vsyncpa [#allocation4 + $0x1], 0  ;;  %s7443_s0 = smov 0   ;;  %s7445_s30 = smov 0  }
  0x10   :  { %s7447_s20 = smov 0   ;;  %s7449_s21 = smov 0  }
  0x11 LB: > { %8736 = sst [smem:[#allocation23_spill]] %s7307_s0  ;;  %s7464_s1 = sadd.s32 4294967295, %s7319_s21   ;;  %s7319_s21 = sphi %s7449_s21, %s8822_s21   ;;  %s7315_s20 = sphi %s7447_s20, %s8825_s20   ;;  %s7311_s30 = sphi %s7445_s30, %s8824_s30   ;;  %s7307_s0 = sphi %s7443_s0, %s8823_s0  }
  0x12   : > { %8737 = sst [smem:[#allocation24_spill]] %s7311_s30  ;;  %s5892_s22 = sadd.s32 4294967294, %s7319_s21  }
  0x13   : > { %8738 = sst [smem:[#allocation25_spill]] %s7315_s20  ;;  %s7468_s2 = sadd.s32 1, %s7319_s21  }
  0x14   : > { %8739 = sst [smem:[#allocation26_spill]] %s7319_s21  ;;  %s453_s23 = sadd.s32 1, %s7315_s20 }
  0x15   : > { %8740 = sst [smem:[#allocation27_spill]] %s7468_s2  ;;  %s450_s24 = ssub.s32 %s7319_s21, %s7468_s2 }
  0x16   : > { %p463_p0 = scmp.ne.s32.totalorder %s7315_s20, %s7311_s30  ;;  %p451_p1 = scmp.eq.s32.totalorder %s450_s24, 0 }
  0x17   : > { %p464_p2 = scmp.eq.s32.totalorder %s7464_s1, 3  ;;  %p469_p3 = scmp.ne.s32.totalorder %s7311_s30, %s7307_s0 }
  0x18   : > { %p470_p4 = scmp.eq.s32.totalorder %s5892_s22, 3  ;;  %p5893_p7 = scmp.ge.s32.totalorder %s7319_s21, 1 }
  0x19   : > { %s7479_s25 = scalar_select %p451_p1, %s7315_s20, %s453_s23  }
  0x1a   : > { %p7481_p5 = por %p464_p2, %p463_p0  ;;  %p7485_p6 = por %p470_p4, %p469_p3 }
  0x1b   : > { %8741 = sst [smem:[#allocation28_spill]] %s7479_s25  ;;  %p477_p8 = scmp.lt.s32.totalorder %s7319_s21, 5 }
  0x1c   : > { %s8742_s3 = scalar_select %p7481_p5, 1, 0 }
  0x1d   : > { %s8744_s26 = scalar_select %p7485_p6, 1, 0 }
  0x1e   : > { %8743 = sst [smem:[#allocation29_spill]] %s8742_s3  ;;  %p8697_p9 = scmp.eq.s32.totalorder %s7464_s1, 0 }
  0x1f   : > { %8745 = sst [smem:[#allocation30_spill]] %s8744_s26  ;;  %p7492_p10 = pnand %p5893_p7, %p477_p8 }
  0x20   : > { %s7321_s28 = smov [#allocation5]   ;;  %s7322_s23 = smov [#allocation8]  }
  0x21   : > { %s8746_s27 = scalar_select %p7492_p10, 1, 0 }
  0x22   : > { %s508_s29 = sshll.u32 %s7321_s28, 4  ;;  %p6553_p11 = pneg %p7492_p10  ;;  %s7498_s29 = int_to_ptr.vmem [resolvable:$true] %s508_s29 }
  0x23   : > { %s533_s24 = sshll.u32 %s7322_s23, 4  ;;  %s7323_s25 = smov [#allocation11]   ;;  %s7506_s24 = int_to_ptr.vmem [resolvable:$true] %s533_s24 }
  0x24   : > { %p7502_p12 = pnand %p8697_p9, %p6553_p11  ;;  %s7508_s20 = sshll.u32 %s7323_s25, 4  ;;  %s555_s20 = int_to_ptr.vmem [resolvable:$true] %s7508_s20 }
  0x25   : > { %s8748_s5 = sld [smem:[#allocation57_spill]] }
  0x26   : > { %p7518_p0 = pneg %p7502_p12 }
  0x2b   : > { %s7013_s28 = scalar_lea.hbm %s8748_s5, 2048 }
  0x2c   : > { %p7014_p13 = scmp.ne.s32.totalorder %s8748_s5, %s7013_s28  ;;  %p7020_p3 = scmp.lt.u32.totalorder %s7013_s28, %s8748_s5 }
  0x2e   : > { %p7016_p1 = pnand %p7518_p0, %p7014_p13 }
  0x30   : > { %p7017_p2 = pneg %p7016_p1 }
  0x32   : > { %p7022_p4 = pnand %p7020_p3, %p7017_p2 }
  0x34   : > { %7025 = shalt.err (!%p7022_p4)
}
  0x35   : > { %s7026_s0 = scalar_lea.vmem %s7498_s29, 2048  ;;  %p7034_p9 = scmp.lt.s32.totalorder %s7498_s29, %s7498_s29 }
  0x36   : > { %p7027_p7 = scmp.ne.s32.totalorder %s7498_s29, %s7026_s0  ;;  %p7035_p6 = scmp.lt.s32.totalorder %s7026_s0, %s7026_s0 }
  0x38   : > { %p7029_p8 = pnand %p7027_p7, %p7518_p0  ;;  %p7036_p13 = por %p7035_p6, %p7034_p9 }
  0x3a   : > { %p7030_p11 = pneg %p7029_p8 }
  0x3c   : > { %p7037_p1 = pnand %p7036_p13, %p7030_p11 }
  0x3e   : > { %7040 = shalt.err (!%p7037_p1)
}
  0x3f   : > { %s8704_s21 = smov 128   ;;  %s8705_s2 = smov 8  }
  0x40   : > { %6559 = dma.hbm_to_vmem [thread:$0]  (!%p7502_p12), %s8748_s5, 2048, %s7498_s29, [#allocation6], %s8704_s21, %s8704_s21, %s8705_s2  }
  0x41   : > { %s7041_s0 = scalar_lea.hbm %s8676_s7, 32 }
  0x42   : > { %p7042_p6 = scmp.ne.s32.totalorder %s8676_s7, %s7041_s0  ;;  %p7048_p3 = scmp.lt.u32.totalorder %s7041_s0, %s8676_s7 }
  0x44   : > { %p7044_p9 = pnand %p7042_p6, %p7518_p0 }
  0x46   : > { %p7045_p2 = pneg %p7044_p9 }
  0x48   : > { %p7050_p4 = pnand %p7048_p3, %p7045_p2 }
  0x4a   : > { %7053 = shalt.err (!%p7050_p4)
}
  0x4b   : > { %s7054_s29 = scalar_lea.vmem %s7506_s24, 32  ;;  %p7062_p13 = scmp.lt.s32.totalorder %s7506_s24, %s7506_s24 }
  0x4c   : > { %p7055_p7 = scmp.ne.s32.totalorder %s7506_s24, %s7054_s29  ;;  %p7063_p1 = scmp.lt.s32.totalorder %s7054_s29, %s7054_s29 }
  0x4e   : > { %p7057_p8 = pnand %p7055_p7, %p7518_p0  ;;  %p7064_p6 = por %p7063_p1, %p7062_p13 }
  0x50   : > { %p7058_p11 = pneg %p7057_p8 }
  0x52   : > { %p7065_p9 = pnand %p7064_p6, %p7058_p11 }
  0x54   : > { %7068 = shalt.err (!%p7065_p9)
}
  0x55   : > { %6565 = dma.hbm_to_vmem [thread:$0]  (!%p7502_p12), %s8676_s7, 32, %s7506_s24, [#allocation9]  }
  0x56   : > { %s7069_s26 = scalar_lea.hbm %s8678_s9, 8192 }
  0x57   : > { %p7070_p2 = scmp.ne.s32.totalorder %s8678_s9, %s7069_s26  ;;  %p7076_p7 = scmp.lt.u32.totalorder %s7069_s26, %s8678_s9 }
  0x59   : > { %p7072_p3 = pnand %p7070_p2, %p7518_p0 }
  0x5b   : > { %p7073_p4 = pneg %p7072_p3 }
  0x5d   : > { %p7078_p8 = pnand %p7076_p7, %p7073_p4 }
  0x5f   : > { %7081 = shalt.err (!%p7078_p8)
}
  0x60   : > { %s7082_s29 = scalar_lea.vmem %s555_s20, 8192  ;;  %p7090_p6 = scmp.lt.s32.totalorder %s555_s20, %s555_s20 }
  0x61   : > { %p7083_p11 = scmp.ne.s32.totalorder %s555_s20, %s7082_s29  ;;  %p7091_p9 = scmp.lt.s32.totalorder %s7082_s29, %s7082_s29 }
  0x63   : > { %p7085_p13 = pnand %p7083_p11, %p7518_p0  ;;  %p7092_p5 = por %p7091_p9, %p7090_p6 }
  0x65   : > { %p7086_p1 = pneg %p7085_p13 }
  0x67   : > { %p7093_p10 = pnand %p7092_p5, %p7086_p1 }
  0x69   : > { %7096 = shalt.err (!%p7093_p10)
}
  0x6a   : > { %s7326_s24 = smov 256   ;;  %s7327_s16 = smov 16  }
  0x6b   : > { %6571 = dma.hbm_to_vmem [thread:$0]  (!%p7502_p12), %s8678_s9, 8192, %s555_s20, [#allocation12], %s7326_s24, %s7326_s24, %s7327_s16  }
  0x6c   : > { %s7328_s3 = smov [#allocation2]   ;;  %s8750_s25 = sld [smem:[#allocation56_spill]] }
  0x6d   : > { %s492_s26 = sshll.u32 %s7328_s3, 4  ;;  %s493_s26 = int_to_ptr.vmem [resolvable:$true] %s492_s26 }
  0x72   : > { %s7097_s0 = scalar_lea.hbm %s8750_s25, 256 }
  0x73   : > { %p7098_p5 = scmp.ne.s32.totalorder %s8750_s25, %s7097_s0  ;;  %p7104_p3 = scmp.lt.u32.totalorder %s7097_s0, %s8750_s25 }
  0x75   : > { %p7100_p10 = pnand %p7098_p5, %p7518_p0 }
  0x77   : > { %p7101_p2 = pneg %p7100_p10 }
  0x79   : > { %p7106_p4 = pnand %p7104_p3, %p7101_p2 }
  0x7b   : > { %7109 = shalt.err (!%p7106_p4)
}
  0x7c   : > { %s7110_s20 = scalar_lea.vmem %s493_s26, 256  ;;  %p7118_p13 = scmp.lt.s32.totalorder %s493_s26, %s493_s26 }
  0x7d   : > { %p7111_p7 = scmp.ne.s32.totalorder %s493_s26, %s7110_s20  ;;  %p7119_p1 = scmp.lt.s32.totalorder %s7110_s20, %s7110_s20 }
  0x7f   : > { %p7113_p8 = pnand %p7111_p7, %p7518_p0  ;;  %p7120_p6 = por %p7119_p1, %p7118_p13 }
  0x81   : > { %p7114_p11 = pneg %p7113_p8 }
  0x83   : > { %p7121_p9 = pnand %p7120_p6, %p7114_p11 }
  0x85   : > { %7124 = shalt.err (!%p7121_p9)
}
  0x86   : > { %s7329_s21 = smov 64   ;;  %s7330_s24 = smov 4  }
  0x87   : > { %6556 = dma.hbm_to_vmem [thread:$0]  (!%p7502_p12), %s8750_s25, 256, %s493_s26, [#allocation3], %s7329_s21, %s7329_s21, %s7330_s24  }
  0x88   : > { %s7331_s16 = smov [#allocation7]   ;;  %s7332_s30 = smov [#allocation10]  }
  0x89   : > { %s522_s18 = sshll.u32 %s7331_s16, 4  ;;  %s544_s3 = sshll.u32 %s7332_s30, 4  ;;  %s523_s18 = int_to_ptr.vmem [resolvable:$true] %s522_s18  ;;  %s7602_s3 = int_to_ptr.vmem [resolvable:$true] %s544_s3 }
  0x8a   : > { %s7125_s0 = scalar_lea.hbm %s8675_s6, 32 }
  0x8b   : > { %p7126_p5 = scmp.ne.s32.totalorder %s8675_s6, %s7125_s0  ;;  %p7132_p3 = scmp.lt.u32.totalorder %s7125_s0, %s8675_s6 }
  0x8d   : > { %p7128_p10 = pnand %p7126_p5, %p7518_p0 }
  0x8f   : > { %p7129_p2 = pneg %p7128_p10 }
  0x91   : > { %p7134_p4 = pnand %p7132_p3, %p7129_p2 }
  0x93   : > { %7137 = shalt.err (!%p7134_p4)
}
  0x94   : > { %s7138_s21 = scalar_lea.vmem %s523_s18, 32  ;;  %p7146_p13 = scmp.lt.s32.totalorder %s523_s18, %s523_s18 }
  0x95   : > { %p7139_p7 = scmp.ne.s32.totalorder %s523_s18, %s7138_s21  ;;  %p7147_p1 = scmp.lt.s32.totalorder %s7138_s21, %s7138_s21 }
  0x97   : > { %p7141_p8 = pnand %p7139_p7, %p7518_p0  ;;  %p7148_p6 = por %p7147_p1, %p7146_p13 }
  0x99   : > { %p7142_p11 = pneg %p7141_p8 }
  0x9b   : > { %p7149_p9 = pnand %p7148_p6, %p7142_p11 }
  0x9d   : > { %7152 = shalt.err (!%p7149_p9)
}
  0x9e   : > { %6562 = dma.hbm_to_vmem [thread:$0]  (!%p7502_p12), %s8675_s6, 32, %s523_s18, [#allocation6]  }
  0x9f   : > { %s7153_s28 = scalar_lea.hbm %s8677_s8, 32 }
  0xa0   : > { %p7154_p5 = scmp.ne.s32.totalorder %s8677_s8, %s7153_s28  ;;  %p7160_p3 = scmp.lt.u32.totalorder %s7153_s28, %s8677_s8 }
  0xa2   : > { %p7156_p10 = pnand %p7154_p5, %p7518_p0 }
  0xa4   : > { %p7157_p2 = pneg %p7156_p10 }
  0xa6   : > { %p7162_p4 = pnand %p7160_p3, %p7157_p2 }
  0xa8   : > { %7165 = shalt.err (!%p7162_p4)
}
  0xa9   : > { %s7166_s18 = scalar_lea.vmem %s7602_s3, 32  ;;  %p7174_p13 = scmp.lt.s32.totalorder %s7602_s3, %s7602_s3 }
  0xaa   : > { %p7167_p7 = scmp.ne.s32.totalorder %s7602_s3, %s7166_s18  ;;  %p7175_p1 = scmp.lt.s32.totalorder %s7166_s18, %s7166_s18 }
  0xac   : > { %p7169_p8 = pnand %p7167_p7, %p7518_p0  ;;  %p7176_p6 = por %p7175_p1, %p7174_p13 }
  0xae   : > { %p7170_p11 = pneg %p7169_p8 }
  0xb0   : > { %p7177_p9 = pnand %p7176_p6, %p7170_p11 }
  0xb2   : > { %7180 = shalt.err (!%p7177_p9)
}
  0xb3   : > { %6568 = dma.hbm_to_vmem [thread:$0]  (!%p7502_p12), %s8677_s8, 32, %s7602_s3, [#allocation9]  }
  0xb4   : > { %s7333_s21 = smov [#allocation13]   ;;  %s7181_s30 = scalar_lea.hbm %s8682_s13, 32768 }
  0xb5   : > { %s576_s24 = sshll.u32 %s7333_s21, 4  ;;  %p7182_p5 = scmp.ne.s32.totalorder %s8682_s13, %s7181_s30  ;;  %s577_s24 = int_to_ptr.vmem [resolvable:$true] %s576_s24 }
  0xb6   : > { %p7188_p3 = scmp.lt.u32.totalorder %s7181_s30, %s8682_s13 }
  0xb7   : > { %p7184_p10 = pnand %p7182_p5, %p7518_p0 }
  0xb9   : > { %p7185_p2 = pneg %p7184_p10 }
  0xbb   : > { %p7190_p4 = pnand %p7188_p3, %p7185_p2 }
  0xbd   : > { %7193 = shalt.err (!%p7190_p4)
}
  0xbe   : > { %s7194_s3 = scalar_lea.vmem %s577_s24, 32768  ;;  %p7202_p13 = scmp.lt.s32.totalorder %s577_s24, %s577_s24 }
  0xbf   : > { %p7195_p7 = scmp.ne.s32.totalorder %s577_s24, %s7194_s3  ;;  %p7203_p1 = scmp.lt.s32.totalorder %s7194_s3, %s7194_s3 }
  0xc1   : > { %p7197_p8 = pnand %p7195_p7, %p7518_p0  ;;  %p7204_p6 = por %p7203_p1, %p7202_p13 }
  0xc3   : > { %p7198_p11 = pneg %p7197_p8 }
  0xc5   : > { %p7205_p9 = pnand %p7204_p6, %p7198_p11 }
  0xc7   : > { %7208 = shalt.err (!%p7205_p9)
}
  0xc8   : > { %s7334_s20 = smov 512   ;;  %s7335_s18 = smov 32  }
  0xc9   : > { %6574 = dma.hbm_to_vmem [thread:$0]  (!%p7502_p12), %s8682_s13, 32768, %s577_s24, [#allocation12], %s7334_s20, %s7334_s20, %s7335_s18  }
  0xca   : > { %s7336_s21 = smov [#allocation14]   ;;  %s7209_s28 = scalar_lea.hbm %s8686_s17, 16384 }
  0xcb   : > { %s598_s2 = sshll.u32 %s7336_s21, 4  ;;  %p7210_p5 = scmp.ne.s32.totalorder %s8686_s17, %s7209_s28  ;;  %s599_s2 = int_to_ptr.vmem [resolvable:$true] %s598_s2 }
  0xcc   : > { %p7216_p3 = scmp.lt.u32.totalorder %s7209_s28, %s8686_s17 }
  0xcd   : > { %p7212_p10 = pnand %p7210_p5, %p7518_p0 }
  0xcf   : > { %p7213_p2 = pneg %p7212_p10 }
  0xd1   : > { %p7218_p4 = pnand %p7216_p3, %p7213_p2 }
  0xd3   : > { %7221 = shalt.err (!%p7218_p4)
}
  0xd4   : > { %s7222_s24 = scalar_lea.vmem %s599_s2, 16384  ;;  %p7230_p13 = scmp.lt.s32.totalorder %s599_s2, %s599_s2 }
  0xd5   : > { %p7223_p7 = scmp.ne.s32.totalorder %s599_s2, %s7222_s24  ;;  %p7231_p1 = scmp.lt.s32.totalorder %s7222_s24, %s7222_s24 }
  0xd7   : > { %p7225_p8 = pnand %p7223_p7, %p7518_p0  ;;  %p7232_p6 = por %p7231_p1, %p7230_p13 }
  0xd9   : > { %p7226_p11 = pneg %p7225_p8 }
  0xdb   : > { %p7233_p9 = pnand %p7232_p6, %p7226_p11 }
  0xdd   : > { %7236 = shalt.err (!%p7233_p9)
}
  0xde   : > { %s8751_s20 = smov 8   ;;  %s8752_s18 = smov 128  }
  0xdf   : > { %6577 = dma.hbm_to_vmem [thread:$0]  (!%p7502_p12), %s8686_s17, 16384, %s599_s2, [#allocation15], %s8752_s18, %s8752_s18, %s8751_s20  }
  0xe0   : > { %p8753_p5 = scmp.ne.s32.totalorder %s8746_s27, 0 }
  0xe2   : > { %633 = sbr.rel (%p8753_p5) target bundleno = 2318 (0x90e), region = 96 }
  0xe9   : > { %p8754_p0 = scmp.eq.s32.totalorder %s7464_s1, 0 }
  0xeb   : > { %7282 = dma.done.wait (%p8754_p0), [#allocation3], 256   ;;  %p8755_p10 = pmov %p8754_p0 }
  0xec   : > { %p8756_p2 = pmov %p8754_p0 }
  0xed   : > { %7284 = vsyncadd (%p8755_p10), [#allocation3], 4294967040 }
  0xee   : > { %7286 = dma.done.wait (%p8756_p2), [#allocation6], 2080   ;;  %p8757_p3 = pmov %p8754_p0 }
  0xef   : > { %p8758_p4 = pmov %p8754_p0 }
  0xf0   : > { %7288 = vsyncadd (%p8757_p3), [#allocation6], 4294965216 }
  0xf1   : > { %7290 = dma.done.wait (%p8758_p4), [#allocation9], 64   ;;  %p8759_p12 = pmov %p8754_p0 }
  0xf2   : > { %p8760_p7 = pmov %p8754_p0 }
  0xf3   : > { %7292 = vsyncadd (%p8759_p12), [#allocation9], 4294967232 }
  0xf4   : > { %7294 = dma.done.wait (%p8760_p7), [#allocation12], 40960   ;;  %p8761_p8 = pmov %p8754_p0 }
  0xf5   : > { %p8762_p11 = pmov %p8754_p0 }
  0xf6   : > { %7296 = vsyncadd (%p8761_p8), [#allocation12], 4294926336 }
  0xf7   : > { %7298 = dma.done.wait (%p8762_p11), [#allocation15], 16384   ;;  %p8763_p13 = pmov %p8754_p0 }
  0xf8   : > { %p722_p1 = scmp.lt.s32.totalorder %s7464_s1, 3  ;;  %v7337_v0 = vmov 0   ;;  %s8764_s2 = sld [smem:[#allocation53_spill]]  ;;  %v6654_v5 = vld [vmem:[#allocation2] sm:$0xff]   ;;  %v6655_v6 = vld [vmem:[#allocation2 + $0x8] sm:$0xff]   ;;  %vm785_vm0 = vcmask 261120   ;;  %v733_v26 = vlaneseq }
  0xf9   : > { %7300 = vsyncadd (%p8763_p13), [#allocation15], 4294950912  ;;  %6653 = vset.pattern.permute.xlu1 %v7337_v0  ;;  %6652 = vset.pattern.permute.xlu0 %v7337_v0  ;;  %s8765_s23 = sld [smem:[#allocation54_spill]]  ;;  %s8766_s24 = sld [smem:[#allocation55_spill]]  ;;  %vm853_vm1 = vcmask 1044480   ;;  %vm846_vm6 = vcmask 80896  }
  0xfa   : > { %s723_s19 = scalar_select %p722_p1, %s7464_s1, 3  ;;  %1071 = vmatprep.mubr.bf16.mxu1 %v7337_v0  ;;  %6404 = vmatprep.subr.bf16.mxu0 %v6654_v5  ;;  %v6657_v14 = vld [vmem:[#allocation5 + $0x4] ss:$8 sps:$4 sm:$0xff]   ;;  %v6659_v15 = vld [vmem:[#allocation5] ss:$8 sps:$4 sm:$0xff]   ;;  %v734_v27 = vand.u32 127, %v733_v26 }
  0xfb   : > { %6405 = vmatpush3.bf16.msra.mxu0 %v6654_v5  ;;  %v6660_v16 = vld [vmem:[#allocation5 + $0x14] ss:$8 sps:$4 sm:$0xff]   ;;  %1039 = vmatprep.subr.bf16.mxu1 %v6657_v14  ;;  %v6662_v18 = vld [vmem:[#allocation5 + $0x10] ss:$8 sps:$4 sm:$0xff]   ;;  %v6663_v19 = vld [vmem:[#allocation5 + $0x24] ss:$8 sps:$4 sm:$0xff]  }
  0xfc   : > { %s6394_s27 = sshll.u32 %s723_s19, 5  ;;  %6406 = vmatprep.subr.bf16.mxu0 %v6655_v6  ;;  %1040 = vmatpush1.bf16.msra.mxu1 %v6659_v15  ;;  %v6665_v20 = vld [vmem:[#allocation5 + $0x20] ss:$8 sps:$4 sm:$0xff]   ;;  %v6666_v21 = vld [vmem:[#allocation5 + $0x34] ss:$8 sps:$4 sm:$0xff]   ;;  %v7338_v32 = vmov 0.0  }
  0xfd   : > { %1041 = vmatprep.subr.bf16.mxu1 %v6660_v16  ;;  %v6668_v22 = vld [vmem:[#allocation5 + $0x30] ss:$8 sps:$4 sm:$0xff]   ;;  %v6669_v23 = vld [vmem:[#allocation5 + $0x44] ss:$8 sps:$4 sm:$0xff]   ;;  %v6671_v24 = vld [vmem:[#allocation5 + $0x40] ss:$8 sps:$4 sm:$0xff]  }
  0xfe   : > { %s726_s16 = scalar_lea.vmem %s8764_s2, %s6394_s27  ;;  %v6672_v25 = vld [vmem:[#allocation5 + $0x54] ss:$8 sps:$4 sm:$0xff]   ;;  %v6674_v39 = vld [vmem:[#allocation5 + $0x50] ss:$8 sps:$4 sm:$0xff]   ;;  %v6675_v40 = vld [vmem:[#allocation5 + $0x64] ss:$8 sps:$4 sm:$0xff]  }
  0xff   : > { %v737_v1 = vld [vmem:[%s726_s16 + $0x10] sm:$0xff]  ;;  %v735_v2 = vld [vmem:[%s726_s16] sm:$0xff]  ;;  %v738_v3 = vld [vmem:[%s726_s16 + $0x18] sm:$0xff]  ;;  %s731_s0 = scalar_lea.vmem %s8765_s23, %s6394_s27  ;;  %6407 = vmatpush3.bf16.msra.mxu0 %v6655_v6  ;;  %s8789_s29 = sld [smem:[#allocation58_spill]] }
 0x100   : > { %746 = vperm.xlu1 %6653, %v737_v1   ;;  %740 = vperm.xlu0 %6652, %v735_v2   ;;  %v736_v4 = vld [vmem:[%s726_s16 + $0x8] sm:$0xff]  ;;  %v763_v7 = vld [vmem:[%s731_s0] sm:$0xff]  ;;  %v765_v11 = vld [vmem:[%s731_s0 + $0x10] sm:$0xff]  ;;  %s8812_s3 = sld [smem:[#allocation24_spill]]  ;;  %s8813_s18 = sld [smem:[#allocation59_spill]] }
 0x101   : > { %v764_v8 = vld [vmem:[%s731_s0 + $0x8] sm:$0xff]  ;;  %v6656_v10 = vld [vmem:[%s8766_s24] sm:$0x1f]   ;;  %v766_v12 = vld [vmem:[%s731_s0 + $0x18] sm:$0xff]  ;;  %1042 = vmatpush1.bf16.msra.mxu1 %v6662_v18  ;;  %s8814_s27 = sld [smem:[#allocation29_spill]]  ;;  %s6396_s22 = sshll.u32 %s7464_s1, 10 }
 0x102   : > { %v767_v9 = vpack.c.bf16 %v764_v8, %v763_v7  ;;  %v768_v13 = vpack.c.bf16 %v766_v12, %v765_v11  ;;  %6518 = vmatprep.subr.msk.bf16.mxu0 %vm853_vm1, %v6656_v10  ;;  %v855_v17 = vsel %vm853_vm1, %v6656_v10, 0  ;;  %1043 = vmatprep.subr.bf16.mxu1 %v6663_v19  ;;  %v6677_v41 = vld [vmem:[#allocation5 + $0x60] ss:$8 sps:$4 sm:$0xff]   ;;  %v6678_v42 = vld [vmem:[#allocation5 + $0x74] ss:$8 sps:$4 sm:$0xff]   ;;  %s8815_s30 = sld [smem:[#allocation60_spill]] }
 0x103   : > { %v6680_v43 = vld [vmem:[#allocation5 + $0x70] ss:$8 sps:$4 sm:$0xff]  }
 0x104   : > { %749 = vperm.xlu1 %6653, %v738_v3   ;;  %743 = vperm.xlu0 %6652, %v736_v4   ;;  %v5924_v44 = vld [vmem:[%s8673_s4] ss:$0 sm:$0xff]  ;;  %v6683_v63 = vld [vmem:[#allocation11 + $0x4] ss:$16 sps:$4 sm:$0xff]   ;;  %v6681_v1 = vld [vmem:[#allocation11] ss:$16 sps:$4 sm:$0xff]  }
 0x105   : > { %6408 = vmatprep.mubr.msk.bf16.mxu0 %vm785_vm0, %v767_v9  ;;  %1044 = vmatpush1.bf16.msra.mxu1 %v6665_v20  ;;  %v6686_v2 = vld [vmem:[#allocation11 + $0x24] ss:$16 sps:$4 sm:$0xff]   ;;  %v6684_v3 = vld [vmem:[#allocation11 + $0x20] ss:$16 sps:$4 sm:$0xff]  }
 0x106   : > { %6409 = vmatmul.mubr.msk.bf16.vlgmr.msra.gmra.mrb[0].mxu0 %vm785_vm0, %v768_v13  ;;  %1045 = vmatprep.subr.bf16.mxu1 %v6666_v21  ;;  %v6689_v4 = vld [vmem:[#allocation11 + $0x44] ss:$16 sps:$4 sm:$0xff]   ;;  %v6687_v5 = vld [vmem:[#allocation11 + $0x40] ss:$16 sps:$4 sm:$0xff]   ;;  %s719_s5 = sand.u32 1, %s8812_s3  }
 0x107   : > { %6413 = vmatpush3.bf16.msra.mxu0 %v855_v17  ;;  %v6692_v6 = vld [vmem:[#allocation11 + $0x64] ss:$16 sps:$4 sm:$0xff]   ;;  %v6690_v7 = vld [vmem:[#allocation11 + $0x60] ss:$16 sps:$4 sm:$0xff]   ;;  %s5912_s26 = sshll.u32 %s719_s5, 6  ;;  %s8628_s1 = scalar_lea.sflag [#allocation4], %s719_s5 }
 0x108   : > { %v6695_v8 = vld [vmem:[#allocation11 + $0x84] ss:$16 sps:$4 sm:$0xff]   ;;  %v6693_v9 = vld [vmem:[#allocation11 + $0x80] ss:$16 sps:$4 sm:$0xff]   ;;  %s721_s19 = scalar_lea.vmem [#allocation16], %s5912_s26  ;;  %s8816_s28 = smov %s8815_s30 }
 0x109   : > { %1046 = vmatpush1.bf16.msra.mxu1 %v6668_v22  ;;  %v6696_v10 = vld [vmem:[#allocation11 + $0xa0] ss:$16 sps:$4 sm:$0xff]   ;;  %v6701_v11 = vld [vmem:[#allocation11 + $0xc4] ss:$16 sps:$4 sm:$0xff]   ;;  %s5739_s21 = sshll.u32 %s721_s19, 4  ;;  %s8622_s23 = scalar_lea.hbm %s8815_s30, %s6396_s22  ;;  %s8624_s21 = int_to_ptr.vmem [resolvable:$true] %s5739_s21 }
 0x10a   : > { %1047 = vmatprep.subr.bf16.mxu1 %v6669_v23  ;;  %v6699_v12 = vld [vmem:[#allocation11 + $0xc0] ss:$16 sps:$4 sm:$0xff]   ;;  %v6704_v13 = vld [vmem:[#allocation11 + $0xe4] ss:$16 sps:$4 sm:$0xff]   ;;  %s7237_s0 = scalar_lea.vmem %s8624_s21, 1024  ;;  %p8817_p9 = scmp.ne.s32.totalorder %s8814_s27, 0 }
 0x10b   : > { %v6702_v14 = vld [vmem:[#allocation11 + $0xe0] ss:$16 sps:$4 sm:$0xff]   ;;  %v6707_v15 = vld [vmem:[#allocation11 + $0x104] ss:$16 sps:$4 sm:$0xff]   ;;  %p7238_p6 = scmp.ne.s32.totalorder %s8624_s21, %s7237_s0 }
 0x10c   : > { %v6705_v16 = vld [vmem:[#allocation11 + $0x100] ss:$16 sps:$4 sm:$0xff]   ;;  %v6710_v17 = vld [vmem:[#allocation11 + $0x124] ss:$16 sps:$4 sm:$0xff]  }
 0x10d   : > { %1048 = vmatpush1.bf16.msra.mxu1 %v6671_v24  ;;  %v6708_v18 = vld [vmem:[#allocation11 + $0x120] ss:$16 sps:$4 sm:$0xff]   ;;  %v6713_v19 = vld [vmem:[#allocation11 + $0x144] ss:$16 sps:$4 sm:$0xff]   ;;  %p7239_p5 = pnand %p7238_p6, %p8817_p9 }
 0x10e   : > { %1049 = vmatprep.subr.bf16.mxu1 %v6672_v25  ;;  %v6711_v20 = vld [vmem:[#allocation11 + $0x140] ss:$16 sps:$4 sm:$0xff]   ;;  %v6716_v21 = vld [vmem:[#allocation11 + $0x164] ss:$16 sps:$4 sm:$0xff]  }
 0x10f   : > { %v6714_v22 = vld [vmem:[#allocation11 + $0x160] ss:$16 sps:$4 sm:$0xff]   ;;  %v6719_v23 = vld [vmem:[#allocation11 + $0x184] ss:$16 sps:$4 sm:$0xff]   ;;  %p7240_p0 = pneg %p7239_p5 }
 0x110   : > { %v6717_v24 = vld [vmem:[#allocation11 + $0x180] ss:$16 sps:$4 sm:$0xff]   ;;  %v6722_v25 = vld [vmem:[#allocation11 + $0x1a4] ss:$16 sps:$4 sm:$0xff]  }
 0x111   : > { %1050 = vmatpush1.bf16.msra.mxu1 %v6674_v39 }
 0x112   : > { %1051 = vmatprep.subr.bf16.mxu1 %v6675_v40 }
 0x115   : > { %1052 = vmatpush1.bf16.msra.mxu1 %v6677_v41 }
 0x116   : > { %1053 = vmatprep.subr.bf16.mxu1 %v6678_v42 }
 0x119   : > { %1054 = vmatpush1.bf16.msra.mxu1 %v6680_v43 }
 0x11a   : > { %1667 = vmatprep.subr.bf16.mxu1 %v6683_v63 }
 0x17f   : > { %v747_v28 = vpop.permute.xlu1 %746  ;;  %v741_v29 = vpop.permute.xlu0 %740 }
 0x180   : > { %vm753_vm2 = vcmp.eq.s32.totalorder %v747_v28, %v734_v27  ;;  %vm751_vm3 = vcmp.eq.s32.totalorder %v741_v29, %v734_v27  ;;  %v6725_v28 = vld [vmem:[#allocation11 + $0x1c4] ss:$16 sps:$4 sm:$0xff]   ;;  %v6723_v29 = vld [vmem:[#allocation11 + $0x1c0] ss:$16 sps:$4 sm:$0xff]  }
 0x181   : > { %v757_v33 = vsel %vm753_vm2, 1.0, %v7338_v32  ;;  %v755_v34 = vsel %vm751_vm3, 1.0, %v7338_v32 }
 0x183   : > { %v750_v30 = vpop.permute.xlu1 %749  ;;  %v744_v31 = vpop.permute.xlu0 %743 }
 0x184   : > { %vm754_vm4 = vcmp.eq.s32.totalorder %v750_v30, %v734_v27  ;;  %vm752_vm5 = vcmp.eq.s32.totalorder %v744_v31, %v734_v27  ;;  %v6720_v27 = vld [vmem:[#allocation11 + $0x1a0] ss:$16 sps:$4 sm:$0xff]   ;;  %v6728_v31 = vld [vmem:[#allocation11 + $0x1e4] ss:$16 sps:$4 sm:$0xff]  }
 0x185   : > { %v758_v35 = vsel %vm754_vm4, 1.0, %v7338_v32  ;;  %v756_v36 = vsel %vm752_vm5, 1.0, %v7338_v32  ;;  %v6726_v30 = vld [vmem:[#allocation11 + $0x1e0] ss:$16 sps:$4 sm:$0xff]   ;;  %v6731_v32 = vld [vmem:[#allocation11 + $0xc] ss:$16 sps:$4 sm:$0xff]  }
 0x186   : > { %v760_v37 = vpack.c.bf16 %v758_v35, %v757_v33  ;;  %v759_v38 = vpack.c.bf16 %v756_v36, %v755_v34  ;;  %v7728_v33 = vshrl.u32 %v733_v26, 7  ;;  %v947_v35 = vld [vmem:[#allocation7] sm:$0x3] }
 0x188   : > { %6414 = vmatprep.mubr.msk.bf16.mxu0 %vm846_vm6, %v759_v38  ;;  %v7731_v34 = vsub.s32 0, %v7728_v33 }
 0x189   : > { %6415 = vmatmul.mubr.msk.bf16.vlgmr.msra.gmra.mrb[0].mxu0 %vm846_vm6, %v760_v37  ;;  %v7734_v37 = vsub.s32 1, %v7728_v33 }
 0x18a   : > { %v952_v40 = vrot.slane %v947_v35, %v7731_v34 }
 0x18b   : > { %v956_v42 = vrot.slane %v947_v35, %v7734_v37 }
 0x25c   : > { %v6416_v45 = vpop.f32.mrb[0].mxu0 }
 0x25d   : > { %v915_v46 = vadd.f32 %v6416_v45, %v5924_v44  ;;  %v891_v47 = vpop.f32.mrb[1].mxu0 }
 0x25e   : > { %v913_v48 = vadd.f32 %v5924_v44, %v891_v47  ;;  %v6417_v49 = vpop.f32.mrb[2].mxu0 }
 0x25f   : > { %v923_v50 = vmul.f32 0.2, %v915_v46  ;;  %v916_v51 = vadd.f32 %v6417_v49, %v5924_v44  ;;  %v894_v52 = vpop.f32.mrb[3].mxu0  ;;  %vm919_vm7 = vcmp.ge.f32.partialorder %v915_v46, 0.0 }
 0x260   : > { %v921_v53 = vmul.f32 0.2, %v913_v48  ;;  %v914_v54 = vadd.f32 %v5924_v44, %v894_v52  ;;  %vm917_vm8 = vcmp.ge.f32.partialorder %v913_v48, 0.0 }
 0x261   : > { %vm920_vm9 = vcmp.ge.f32.partialorder %v916_v51, 0.0  ;;  %v924_v55 = vmul.f32 0.2, %v916_v51  ;;  %v927_v57 = vsel %vm919_vm7, %v915_v46, %v923_v50 }
 0x262   : > { %vm918_vm10 = vcmp.ge.f32.partialorder %v914_v54, 0.0  ;;  %v922_v56 = vmul.f32 0.2, %v914_v54  ;;  %v925_v59 = vsel %vm917_vm8, %v913_v48, %v921_v53 }
 0x263   : > { %v928_v58 = vsel %vm920_vm9, %v916_v51, %v924_v55 }
 0x264   : > { %v926_v60 = vsel %vm918_vm10, %v914_v54, %v922_v56  ;;  %v930_v61 = vpack.c.bf16 %v928_v58, %v927_v57 }
 0x265   : > { %v929_v62 = vpack.c.bf16 %v926_v60, %v925_v59 }
 0x267   : > { %1072 = vmatmul.mubr.bf16.vlgmr.msra.gmra.mrb[0].mxu1 %v929_v62 }
 0x268   : > { %1081 = vmatprep.mubr.bf16.mxu1 %v7337_v0  ;;  %1668 = vmatpush1.bf16.msra.mxu1 %v6681_v1  ;;  %v6698_v0 = vld [vmem:[#allocation11 + $0xa4] ss:$16 sps:$4 sm:$0xff]  }
 0x269   : > { %1669 = vmatprep.subr.bf16.mxu1 %v6686_v2 }
 0x26c   : > { %1670 = vmatpush1.bf16.msra.mxu1 %v6684_v3 }
 0x26d   : > { %1671 = vmatprep.subr.bf16.mxu1 %v6689_v4 }
 0x26f   : > { %1082 = vmatmul.mubr.bf16.gmra.mrb[4].mxu1 %v930_v61 }
 0x270   : > { %1672 = vmatpush1.bf16.msra.mxu1 %v6687_v5 }
 0x271   : > { %1673 = vmatprep.subr.bf16.mxu1 %v6692_v6 }
 0x274   : > { %1674 = vmatpush1.bf16.msra.mxu1 %v6690_v7 }
 0x275   : > { %1675 = vmatprep.subr.bf16.mxu1 %v6695_v8 }
 0x278   : > { %1676 = vmatpush1.bf16.msra.mxu1 %v6693_v9 }
 0x279   : > { %1677 = vmatprep.subr.bf16.mxu1 %v6698_v0 }
 0x27c   : > { %1678 = vmatpush1.bf16.msra.mxu1 %v6696_v10 }
 0x27d   : > { %1679 = vmatprep.subr.bf16.mxu1 %v6701_v11 }
 0x280   : > { %1680 = vmatpush1.bf16.msra.mxu1 %v6699_v12 }
 0x281   : > { %1681 = vmatprep.subr.bf16.mxu1 %v6704_v13 }
 0x284   : > { %1682 = vmatpush1.bf16.msra.mxu1 %v6702_v14 }
 0x285   : > { %1683 = vmatprep.subr.bf16.mxu1 %v6707_v15 }
 0x288   : > { %1684 = vmatpush1.bf16.msra.mxu1 %v6705_v16 }
 0x289   : > { %1685 = vmatprep.subr.bf16.mxu1 %v6710_v17 }
 0x28c   : > { %1686 = vmatpush1.bf16.msra.mxu1 %v6708_v18 }
 0x28d   : > { %1687 = vmatprep.subr.bf16.mxu1 %v6713_v19 }
 0x290   : > { %1688 = vmatpush1.bf16.msra.mxu1 %v6711_v20 }
 0x291   : > { %1689 = vmatprep.subr.bf16.mxu1 %v6716_v21 }
 0x294   : > { %1690 = vmatpush1.bf16.msra.mxu1 %v6714_v22 }
 0x295   : > { %1691 = vmatprep.subr.bf16.mxu1 %v6719_v23 }
 0x298   : > { %1692 = vmatpush1.bf16.msra.mxu1 %v6717_v24 }
 0x299   : > { %1693 = vmatprep.subr.bf16.mxu1 %v6722_v25 }
 0x29c   : > { %1694 = vmatpush1.bf16.msra.mxu1 %v6720_v27 }
 0x29d   : > { %1695 = vmatprep.subr.bf16.mxu1 %v6725_v28 }
 0x2a0   : > { %1696 = vmatpush1.bf16.msra.mxu1 %v6723_v29 }
 0x2a1   : > { %1697 = vmatprep.subr.bf16.mxu1 %v6728_v31 }
 0x2a4   : > { %1698 = vmatpush1.bf16.msra.mxu1 %v6726_v30 }
 0x2a5   : > { %1720 = vmatprep.subr.bf16.mxu1 %v6731_v32 }
 0x33a   : > { %v1073_v36 = vpop.f32.mrb[0].mxu1 }
 0x33b   : > { %v1075_v38 = vpop.f32.mrb[1].mxu1  ;;  %v7742_v26 = vadd.f32 %v1073_v36, %v952_v40 }
 0x33c   : > { %v1077_v39 = vpop.f32.mrb[2].mxu1  ;;  %v7744_v45 = vadd.f32 %v1075_v38, %v956_v42 }
 0x33d   : > { %v1079_v41 = vpop.f32.mrb[3].mxu1  ;;  %v7738_v43 = vadd.f32 %v1077_v39, %v952_v40 }
 0x33e   : > { %v7740_v44 = vadd.f32 %v1079_v41, %v956_v42 }
 0x33f   : > { %v1094_v47 = vadd.f32 %v7738_v43, %v7742_v26 }
 0x340   : > { %v1103_v50 = vadd.f32 %v7740_v44, %v7744_v45 }
 0x342   : > { %v1083_v46 = vpop.f32.mrb[4].mxu1 }
 0x343   : > { %v7748_v48 = vadd.f32 %v1083_v46, %v952_v40  ;;  %v1085_v49 = vpop.f32.mrb[5].mxu1 }
 0x344   : > { %v7752_v51 = vadd.f32 %v1085_v49, %v956_v42  ;;  %v1087_v52 = vpop.f32.mrb[6].mxu1 }
 0x345   : > { %v1095_v53 = vadd.f32 %v1094_v47, %v7748_v48  ;;  %v7755_v54 = vadd.f32 %v1087_v52, %v952_v40  ;;  %v1089_v55 = vpop.f32.mrb[7].mxu1 }
 0x346   : > { %v1104_v56 = vadd.f32 %v1103_v50, %v7752_v51  ;;  %v7758_v57 = vadd.f32 %v1089_v55, %v956_v42 }
 0x347   : > { %v1096_v58 = vadd.f32 %v1095_v53, %v7755_v54 }
 0x348   : > { %v1105_v59 = vadd.f32 %v1104_v56, %v7758_v57 }
 0x349   : > { %v1097_v60 = vrot.slane %v1096_v58, 4 }
 0x34a   : > { %v1106_v61 = vrot.slane %v1105_v59, 4 }
 0x34b   : > { %v1098_v62 = vadd.f32 %v1097_v60, %v1096_v58 }
 0x34c   : > { %v1107_v63 = vadd.f32 %v1106_v61, %v1105_v59  ;;  %v7339_v59 = vmov 1966171168  }
 0x34d   : > { %v1099_v1 = vrot.slane %v1098_v62, 2  ;;  %v1159_v60 = vunpack.c.l.s4 %v7339_v59  ;;  %v6735_v59 = vld [vmem:[#allocation11 + $0x48] ss:$16 sps:$4 sm:$0xff]  }
 0x34e   : > { %v1108_v2 = vrot.slane %v1107_v63, 2 }
 0x34f   : > { %v1100_v3 = vadd.f32 %v1099_v1, %v1098_v62  ;;  %v1160_v61 = vunpack.c.0.s8 %v1159_v60 }
 0x350   : > { %v1109_v4 = vadd.f32 %v1108_v2, %v1107_v63 }
 0x351   : > { %v1101_v5 = vrot.slane %v1100_v3, 1  ;;  %v7771_v63 = vsub.s32 %v1160_v61, %v7728_v33  ;;  %v6740_v61 = vld [vmem:[#allocation11 + $0x6c] ss:$16 sps:$4 sm:$0xff]  }
 0x352   : > { %v1110_v6 = vrot.slane %v1109_v4, 1 }
 0x353   : > { %v1102_v7 = vadd.f32 %v1101_v5, %v1100_v3 }
 0x354   : > { %v1111_v8 = vadd.f32 %v1110_v6, %v1109_v4  ;;  %v1092_v4 = vld [vmem:[#allocation8] sm:$0x3] }
 0x355   : > { %v1113_v9 = vmul.f32 0.03125, %v1102_v7 }
 0x356   : > { %v1114_v0 = vmul.f32 0.03125, %v1111_v8 }
 0x357   : > { %v1115_v10 = vsub.f32 %v7742_v26, %v1113_v9  ;;  %v1117_v11 = vsub.f32 %v7738_v43, %v1113_v9  ;;  %v1119_v12 = vsub.f32 %v7748_v48, %v1113_v9  ;;  %v1121_v16 = vsub.f32 %v7755_v54, %v1113_v9 }
 0x358   : > { %v1116_v13 = vsub.f32 %v7744_v45, %v1114_v0  ;;  %v1118_v14 = vsub.f32 %v7740_v44, %v1114_v0  ;;  %v1120_v15 = vsub.f32 %v7752_v51, %v1114_v0  ;;  %v1122_v19 = vsub.f32 %v7758_v57, %v1114_v0 }
 0x359   : > { %v1123_v17 = vmul.f32 %v1115_v10, %v1115_v10  ;;  %v1125_v18 = vmul.f32 %v1117_v11, %v1117_v11  ;;  %v1127_v22 = vmul.f32 %v1119_v12, %v1119_v12  ;;  %v1129_v27 = vmul.f32 %v1121_v16, %v1121_v16 }
 0x35a   : > { %v1124_v20 = vmul.f32 %v1116_v13, %v1116_v13  ;;  %v1126_v21 = vmul.f32 %v1118_v14, %v1118_v14  ;;  %v1128_v24 = vmul.f32 %v1120_v15, %v1120_v15  ;;  %v1130_v29 = vmul.f32 %v1122_v19, %v1122_v19  ;;  %v1093_v15 = vld [vmem:[#allocation10] sm:$0x3] }
 0x35b   : > { %v1131_v23 = vadd.f32 %v1125_v18, %v1123_v17 }
 0x35c   : > { %v1140_v25 = vadd.f32 %v1126_v21, %v1124_v20 }
 0x35d   : > { %v1132_v28 = vadd.f32 %v1131_v23, %v1127_v22 }
 0x35e   : > { %v1141_v30 = vadd.f32 %v1140_v25, %v1128_v24 }
 0x35f   : > { %v1133_v31 = vadd.f32 %v1132_v28, %v1129_v27 }
 0x360   : > { %v1142_v32 = vadd.f32 %v1141_v30, %v1130_v29 }
 0x361   : > { %v1134_v35 = vrot.slane %v1133_v31, 4 }
 0x362   : > { %v1143_v36 = vrot.slane %v1142_v32, 4 }
 0x363   : > { %v1135_v38 = vadd.f32 %v1134_v35, %v1133_v31  ;;  %v6729_v35 = vld [vmem:[#allocation11 + $0x8] ss:$16 sps:$4 sm:$0xff]  }
 0x364   : > { %v1144_v39 = vadd.f32 %v1143_v36, %v1142_v32 }
 0x365   : > { %v1136_v40 = vrot.slane %v1135_v38, 2 }
 0x366   : > { %v1145_v41 = vrot.slane %v1144_v39, 2 }
 0x367   : > { %v1137_v42 = vadd.f32 %v1136_v40, %v1135_v38 }
 0x368   : > { %v1146_v46 = vadd.f32 %v1145_v41, %v1144_v39 }
 0x369   : > { %v1138_v47 = vrot.slane %v1137_v42, 1 }
 0x36a   : > { %v1147_v49 = vrot.slane %v1146_v46, 1 }
 0x36b   : > { %v1139_v50 = vadd.f32 %v1138_v47, %v1137_v42  ;;  %v6734_v42 = vld [vmem:[#allocation11 + $0x2c] ss:$16 sps:$4 sm:$0xff]  }
 0x36c   : > { %v1148_v52 = vadd.f32 %v1147_v49, %v1146_v46 }
 0x36d   : > { %v1149_v53 = vmul.f32 0.03125, %v1139_v50 }
 0x36e   : > { %v1150_v55 = vmul.f32 0.03125, %v1148_v52 }
 0x36f   : > { %v1151_v56 = vadd.f32 0.8, %v1149_v53  ;;  %v6732_v53 = vld [vmem:[#allocation11 + $0x28] ss:$16 sps:$4 sm:$0xff]  }
 0x370   : > { %v1152_v58 = vadd.f32 0.8, %v1150_v55  ;;  %v6737_v55 = vld [vmem:[#allocation11 + $0x4c] ss:$16 sps:$4 sm:$0xff]  }
 0x371   : > { %6969 = vrsqrt.f32 %v1151_v56 }
 0x372   : > { %6971 = vrsqrt.f32 %v1152_v58 }
 0x37b   : > { %v6970_v62 = vpop.eup %6969 }
 0x37c   : > { %v6972_v1 = vpop.eup %6971 }
 0x37d   : > { %v1157_v2 = vcombine.low %v6970_v62, %v6972_v1  ;;  %v6738_v62 = vld [vmem:[#allocation11 + $0x68] ss:$16 sps:$4 sm:$0xff]   ;;  %v6743_v1 = vld [vmem:[#allocation11 + $0x8c] ss:$16 sps:$4 sm:$0xff]  }
 0x37f   : > { %v1164_v3 = vrot.slane %v1157_v2, %v7771_v63  ;;  %v6741_v2 = vld [vmem:[#allocation11 + $0x88] ss:$16 sps:$4 sm:$0xff]  }
 0x381   : > { %v1171_v5 = vrot.slane %v1164_v3, %v7771_v63  ;;  %v6746_v3 = vld [vmem:[#allocation11 + $0xac] ss:$16 sps:$4 sm:$0xff]  }
 0x383   : > { %v1173_v6 = vmul.f32 %v1171_v5, %v1092_v4  ;;  %v6744_v4 = vld [vmem:[#allocation11 + $0xa8] ss:$16 sps:$4 sm:$0xff]   ;;  %v6749_v5 = vld [vmem:[#allocation11 + $0xcc] ss:$16 sps:$4 sm:$0xff]  }
 0x385   : > { %v1178_v7 = vrot.slane %v1173_v6, %v7731_v34  ;;  %v1182_v8 = vrot.slane %v1173_v6, %v7734_v37  ;;  %v6747_v6 = vld [vmem:[#allocation11 + $0xc8] ss:$16 sps:$4 sm:$0xff]  }
 0x387   : > { %v1185_v10 = vmul.f32 %v1178_v7, %v1113_v9  ;;  %v1186_v11 = vmul.f32 %v1182_v8, %v1114_v0  ;;  %v1213_v12 = vmul.f32 %v1182_v8, %v7758_v57  ;;  %v1207_v18 = vmul.f32 %v1182_v8, %v7744_v45 }
 0x388   : > { %v1209_v21 = vmul.f32 %v1182_v8, %v7740_v44  ;;  %v1206_v9 = vmul.f32 %v1178_v7, %v7742_v26  ;;  %v1208_v0 = vmul.f32 %v1178_v7, %v7738_v43  ;;  %v1211_v57 = vmul.f32 %v1182_v8, %v7752_v51  ;;  %v6750_v8 = vld [vmem:[#allocation11 + $0xe8] ss:$16 sps:$4 sm:$0xff]  }
 0x389   : > { %v1189_v13 = vcombine.low %v1185_v10, %v1186_v11  ;;  %v1210_v22 = vmul.f32 %v1178_v7, %v7748_v48  ;;  %v1212_v23 = vmul.f32 %v1178_v7, %v7755_v54  ;;  %v6752_v7 = vld [vmem:[#allocation11 + $0xec] ss:$16 sps:$4 sm:$0xff]   ;;  %v6753_v11 = vld [vmem:[#allocation11 + $0x108] ss:$16 sps:$4 sm:$0xff]  }
 0x38a   : > { %v6755_v10 = vld [vmem:[#allocation11 + $0x10c] ss:$16 sps:$4 sm:$0xff]  }
 0x38b   : > { %v1196_v14 = vrot.slane %v1189_v13, %v7771_v63  ;;  %v6756_v13 = vld [vmem:[#allocation11 + $0x128] ss:$16 sps:$4 sm:$0xff]  }
 0x38d   : > { %v1203_v16 = vrot.slane %v1196_v14, %v7771_v63  ;;  %v6761_v14 = vld [vmem:[#allocation11 + $0x14c] ss:$16 sps:$4 sm:$0xff]  }
 0x38f   : > { %v1205_v17 = vsub.f32 %v1093_v15, %v1203_v16  ;;  %v6759_v15 = vld [vmem:[#allocation11 + $0x148] ss:$16 sps:$4 sm:$0xff]   ;;  %v6764_v16 = vld [vmem:[#allocation11 + $0x16c] ss:$16 sps:$4 sm:$0xff]  }
 0x391   : > { %v1218_v19 = vrot.slane %v1205_v17, %v7731_v34  ;;  %v1222_v20 = vrot.slane %v1205_v17, %v7734_v37  ;;  %v6762_v17 = vld [vmem:[#allocation11 + $0x168] ss:$16 sps:$4 sm:$0xff]  }
 0x393   : > { %v1232_v24 = vadd.f32 %v1222_v20, %v1213_v12  ;;  %v1226_v25 = vadd.f32 %v1222_v20, %v1207_v18  ;;  %v1228_v27 = vadd.f32 %v1222_v20, %v1209_v21  ;;  %v1225_v45 = vadd.f32 %v1218_v19, %v1206_v9  ;;  %v6758_v12 = vld [vmem:[#allocation11 + $0x12c] ss:$16 sps:$4 sm:$0xff]   ;;  %v6768_v21 = vld [vmem:[#allocation11 + $0x1a8] ss:$16 sps:$4 sm:$0xff]  }
 0x394   : > { %v1227_v28 = vadd.f32 %v1218_v19, %v1208_v0  ;;  %v1230_v29 = vadd.f32 %v1222_v20, %v1211_v57  ;;  %v1229_v30 = vadd.f32 %v1218_v19, %v1210_v22  ;;  %v1231_v31 = vadd.f32 %v1218_v19, %v1212_v23  ;;  %v6767_v18 = vld [vmem:[#allocation11 + $0x18c] ss:$16 sps:$4 sm:$0xff]   ;;  %v6765_v19 = vld [vmem:[#allocation11 + $0x188] ss:$16 sps:$4 sm:$0xff]   ;;  %v2089_v23 = vld [vmem:[#allocation13] sm:$0xff] }
 0x395   : > { %vm1234_vm11 = vcmp.ge.f32.partialorder %v1226_v25, 0.0  ;;  %vm1236_vm12 = vcmp.ge.f32.partialorder %v1228_v27, 0.0  ;;  %v1242_v44 = vmul.f32 0.2, %v1226_v25  ;;  %v1244_v26 = vmul.f32 0.2, %v1228_v27 }
 0x396   : > { %vm1233_vm13 = vcmp.ge.f32.partialorder %v1225_v45, 0.0  ;;  %vm1235_vm14 = vcmp.ge.f32.partialorder %v1227_v28, 0.0  ;;  %v1241_v43 = vmul.f32 0.2, %v1225_v45  ;;  %v1243_v51 = vmul.f32 0.2, %v1227_v28 }
 0x397   : > { %v1250_v32 = vsel %vm1234_vm11, %v1226_v25, %v1242_v44  ;;  %v1252_v48 = vsel %vm1236_vm12, %v1228_v27, %v1244_v26  ;;  %vm1238_vm15 = vcmp.ge.f32.partialorder %v1230_v29, 0.0  ;;  %vm1240_vm0 = vcmp.ge.f32.partialorder %v1232_v24, 0.0  ;;  %v6770_v20 = vld [vmem:[#allocation11 + $0x1ac] ss:$16 sps:$4 sm:$0xff]   ;;  %v6771_v0 = vld [vmem:[#allocation11 + $0x1c8] ss:$16 sps:$4 sm:$0xff]  }
 0x398   : > { %v1258_v54 = vpack.c.bf16 %v1252_v48, %v1250_v32  ;;  %v1249_v36 = vsel %vm1233_vm13, %v1225_v45, %v1241_v43  ;;  %v1251_v38 = vsel %vm1235_vm14, %v1227_v28, %v1243_v51  ;;  %v1246_v39 = vmul.f32 0.2, %v1230_v29  ;;  %v6773_v9 = vld [vmem:[#allocation11 + $0x1cc] ss:$16 sps:$4 sm:$0xff]   ;;  %v6774_v22 = vld [vmem:[#allocation11 + $0x1e8] ss:$16 sps:$4 sm:$0xff]  }
 0x399   : > { %v7789_v40 = vpack.c.bf16 %v1251_v38, %v1249_v36  ;;  %v1248_v41 = vmul.f32 0.2, %v1232_v24  ;;  %v1245_v47 = vmul.f32 0.2, %v1229_v30  ;;  %v1247_v49 = vmul.f32 0.2, %v1231_v31 }
 0x39a   : > { %1699 = vmatprep.mubr.bf16.mxu1 %v1258_v54  ;;  %v1254_v46 = vsel %vm1238_vm15, %v1230_v29, %v1246_v39  ;;  %vm1237_vm1 = vcmp.ge.f32.partialorder %v1229_v30, 0.0  ;;  %vm1239_vm2 = vcmp.ge.f32.partialorder %v1231_v31, 0.0  ;;  %v6776_v57 = vld [vmem:[#allocation11 + $0x1ec] ss:$16 sps:$4 sm:$0xff]   ;;  %v2217_v25 = vld [vmem:[#allocation13 + $0x400] sm:$0xff] }
 0x39b   : > { %1700 = vmatmul.mubr.bf16.vlgmr.msra.gmra.mrb[8].mxu1 %v7789_v40  ;;  %v1256_v50 = vsel %vm1240_vm0, %v1232_v24, %v1248_v41  ;;  %v1253_v56 = vsel %vm1237_vm1, %v1229_v30, %v1245_v47  ;;  %v1255_v58 = vsel %vm1239_vm2, %v1231_v31, %v1247_v49  ;;  %v2093_v24 = vld [vmem:[#allocation13 + $0x20] sm:$0xff] }
 0x39c   : > { %1721 = vmatpush1.bf16.msra.mxu1 %v6729_v35  ;;  %v7792_v52 = vpack.c.bf16 %v1256_v50, %v1254_v46  ;;  %v1259_v60 = vpack.c.bf16 %v1255_v58, %v1253_v56  ;;  %v6006_v27 = vcombine.high %v2089_v23, %v2093_v24  ;;  %v2221_v45 = vld [vmem:[#allocation13 + $0x420] sm:$0xff]  ;;  %v6005_v28 = vcombine.low %v2089_v23, %v2093_v24 }
 0x39d   : > { %1722 = vmatprep.subr.bf16.mxu1 %v6734_v42  ;;  %v6133_v29 = vcombine.low %v2217_v25, %v2221_v45  ;;  %v6134_v30 = vcombine.high %v2217_v25, %v2221_v45  ;;  %v2097_v31 = vld [vmem:[#allocation13 + $0x40] sm:$0xff] }
 0x39e   : > { %1709 = vmatprep.mubr.bf16.mxu1 %v7792_v52  ;;  %v2101_v44 = vld [vmem:[#allocation13 + $0x60] sm:$0xff] }
 0x39f   : > { %3720 = vmatprep.subr.bf16.mxu0 %v6134_v30  ;;  %v2225_v26 = vld [vmem:[#allocation13 + $0x440] sm:$0xff]  ;;  %v6014_v43 = vcombine.high %v2097_v31, %v2101_v44  ;;  %v6013_v32 = vcombine.low %v2097_v31, %v2101_v44 }
 0x3a0   : > { %1723 = vmatpush1.bf16.msra.mxu1 %v6732_v53  ;;  %3721 = vmatpush1.bf16.msra.mxu0 %v6133_v29  ;;  %v2229_v51 = vld [vmem:[#allocation13 + $0x460] sm:$0xff] }
 0x3a1   : > { %1724 = vmatprep.subr.bf16.mxu1 %v6737_v55  ;;  %v6141_v48 = vcombine.low %v2225_v26, %v2229_v51  ;;  %v2105_v35 = vld [vmem:[#allocation13 + $0x80] sm:$0xff] }
 0x3a2   : > { %v2109_v36 = vld [vmem:[#allocation13 + $0xa0] sm:$0xff] }
 0x3a3   : > { %1710 = vmatmul.mubr.bf16.gmra.mrb[12].mxu1 %v1259_v60  ;;  %v2233_v38 = vld [vmem:[#allocation13 + $0x480] sm:$0xff]  ;;  %v6022_v39 = vcombine.high %v2105_v35, %v2109_v36  ;;  %v6021_v41 = vcombine.low %v2105_v35, %v2109_v36 }
 0x3a4   : > { %1725 = vmatpush1.bf16.msra.mxu1 %v6735_v59  ;;  %1752 = vmatprep.mubr.bf16.mxu1 %v1258_v54  ;;  %v6142_v54 = vcombine.high %v2225_v26, %v2229_v51  ;;  %v2113_v47 = vld [vmem:[#allocation13 + $0xc0] sm:$0xff] }
 0x3a5   : > { %1726 = vmatprep.subr.bf16.mxu1 %v6740_v61  ;;  %v2117_v49 = vld [vmem:[#allocation13 + $0xe0] sm:$0xff] }
 0x3a6   : > { %3722 = vmatprep.subr.bf16.mxu0 %v6142_v54  ;;  %v2241_v50 = vld [vmem:[#allocation13 + $0x4c0] sm:$0xff]  ;;  %v6029_v55 = vcombine.low %v2113_v47, %v2117_v49 }
 0x3a7   : > { %3723 = vmatpush1.bf16.msra.mxu0 %v6141_v48  ;;  %v2245_v53 = vld [vmem:[#allocation13 + $0x4e0] sm:$0xff] }
 0x3a8   : > { %1727 = vmatpush1.bf16.msra.mxu1 %v6738_v62  ;;  %v6157_v56 = vcombine.low %v2241_v50, %v2245_v53  ;;  %v6158_v58 = vcombine.high %v2241_v50, %v2245_v53  ;;  %v2121_v59 = vld [vmem:[#allocation13 + $0x100] sm:$0xff] }
 0x3a9   : > { %1728 = vmatprep.subr.bf16.mxu1 %v6743_v1  ;;  %v2249_v61 = vld [vmem:[#allocation13 + $0x500] sm:$0xff] }
 0x3aa   : > { %v2253_v1 = vld [vmem:[#allocation13 + $0x520] sm:$0xff] }
 0x3ab   : > { %v2273_v23 = vld [vmem:[#allocation13 + $0x5c0] sm:$0xff] }
 0x3ac   : > { %1729 = vmatpush1.bf16.msra.mxu1 %v6741_v2  ;;  %v2153_v31 = vld [vmem:[#allocation13 + $0x200] sm:$0xff] }
 0x3ad   : > { %1730 = vmatprep.subr.bf16.mxu1 %v6746_v3  ;;  %v6165_v3 = vcombine.low %v2249_v61, %v2253_v1  ;;  %v2157_v44 = vld [vmem:[#allocation13 + $0x220] sm:$0xff] }
 0x3ae   : > { %v2281_v26 = vld [vmem:[#allocation13 + $0x600] sm:$0xff] }
 0x3af   : > { %v2285_v51 = vld [vmem:[#allocation13 + $0x620] sm:$0xff] }
 0x3b0   : > { %1731 = vmatpush1.bf16.msra.mxu1 %v6744_v4  ;;  %v6166_v4 = vcombine.high %v2249_v61, %v2253_v1  ;;  %v6197_v48 = vcombine.low %v2281_v26, %v2285_v51  ;;  %v6198_v54 = vcombine.high %v2281_v26, %v2285_v51  ;;  %v2169_v53 = vld [vmem:[#allocation13 + $0x280] sm:$0xff] }
 0x3b1   : > { %1732 = vmatprep.subr.bf16.mxu1 %v6749_v5  ;;  %v2129_v5 = vld [vmem:[#allocation13 + $0x140] sm:$0xff] }
 0x3b4   : > { %1733 = vmatpush1.bf16.msra.mxu1 %v6747_v6  ;;  %v2133_v6 = vld [vmem:[#allocation13 + $0x160] sm:$0xff] }
 0x3b5   : > { %1734 = vmatprep.subr.bf16.mxu1 %v6752_v7  ;;  %v2257_v7 = vld [vmem:[#allocation13 + $0x540] sm:$0xff] }
 0x3b8   : > { %1735 = vmatpush1.bf16.msra.mxu1 %v6750_v8  ;;  %v6046_v8 = vcombine.high %v2129_v5, %v2133_v6 }
 0x3b9   : > { %1736 = vmatprep.subr.bf16.mxu1 %v6755_v10  ;;  %v2261_v10 = vld [vmem:[#allocation13 + $0x560] sm:$0xff] }
 0x3bc   : > { %1737 = vmatpush1.bf16.msra.mxu1 %v6753_v11  ;;  %v6045_v11 = vcombine.low %v2129_v5, %v2133_v6 }
 0x3bd   : > { %1738 = vmatprep.subr.bf16.mxu1 %v6758_v12  ;;  %v6173_v12 = vcombine.low %v2257_v7, %v2261_v10 }
 0x3c0   : > { %1739 = vmatpush1.bf16.msra.mxu1 %v6756_v13  ;;  %v6174_v13 = vcombine.high %v2257_v7, %v2261_v10  ;;  %v2309_v7 = vld [vmem:[#allocation13 + $0x6e0] sm:$0xff] }
 0x3c1   : > { %1740 = vmatprep.subr.bf16.mxu1 %v6761_v14  ;;  %v2137_v14 = vld [vmem:[#allocation13 + $0x180] sm:$0xff] }
 0x3c4   : > { %1741 = vmatpush1.bf16.msra.mxu1 %v6759_v15  ;;  %v2141_v15 = vld [vmem:[#allocation13 + $0x1a0] sm:$0xff] }
 0x3c5   : > { %1742 = vmatprep.subr.bf16.mxu1 %v6764_v16  ;;  %v2265_v16 = vld [vmem:[#allocation13 + $0x580] sm:$0xff] }
 0x3c8   : > { %1743 = vmatpush1.bf16.msra.mxu1 %v6762_v17  ;;  %v6054_v17 = vcombine.high %v2137_v14, %v2141_v15 }
 0x3c9   : > { %1744 = vmatprep.subr.bf16.mxu1 %v6767_v18  ;;  %v2269_v18 = vld [vmem:[#allocation13 + $0x5a0] sm:$0xff] }
 0x3cc   : > { %1745 = vmatpush1.bf16.msra.mxu1 %v6765_v19  ;;  %v6053_v19 = vcombine.low %v2137_v14, %v2141_v15  ;;  %v2185_v14 = vld [vmem:[#allocation13 + $0x300] sm:$0xff] }
 0x3cd   : > { %1746 = vmatprep.subr.bf16.mxu1 %v6770_v20  ;;  %v6181_v20 = vcombine.low %v2265_v16, %v2269_v18  ;;  %v2189_v15 = vld [vmem:[#allocation13 + $0x320] sm:$0xff] }
 0x3d0   : > { %1747 = vmatpush1.bf16.msra.mxu1 %v6768_v21  ;;  %v6182_v21 = vcombine.high %v2265_v16, %v2269_v18  ;;  %v2313_v16 = vld [vmem:[#allocation13 + $0x700] sm:$0xff] }
 0x3d1   : > { %1748 = vmatprep.subr.bf16.mxu1 %v6773_v9 }
 0x3d4   : > { %1749 = vmatpush1.bf16.msra.mxu1 %v6771_v0 }
 0x3d5   : > { %1750 = vmatprep.subr.bf16.mxu1 %v6776_v57  ;;  %v2145_v57 = vld [vmem:[#allocation13 + $0x1c0] sm:$0xff] }
 0x3d8   : > { %1751 = vmatpush1.bf16.msra.mxu1 %v6774_v22  ;;  %v2149_v22 = vld [vmem:[#allocation13 + $0x1e0] sm:$0xff] }
 0x3d9   : > { %3667 = vmatprep.subr.bf16.mxu1 %v6006_v27  ;;  %v6062_v25 = vcombine.high %v2145_v57, %v2149_v22  ;;  %v2277_v27 = vld [vmem:[#allocation13 + $0x5e0] sm:$0xff] }
 0x3da   : > { %v6189_v29 = vcombine.low %v2273_v23, %v2277_v27  ;;  %v6190_v30 = vcombine.high %v2273_v23, %v2277_v27 }
 0x3db   : > { %1753 = vmatmul.mubr.bf16.vlgmr.msra.gmra.mrb[16].mxu1 %v7789_v40  ;;  %v2237_v40 = vld [vmem:[#allocation13 + $0x4a0] sm:$0xff] }
 0x3dc   : > { %1762 = vmatprep.mubr.bf16.mxu1 %v7792_v52  ;;  %3668 = vmatpush1.bf16.msra.mxu1 %v6005_v28  ;;  %v6149_v42 = vcombine.low %v2233_v38, %v2237_v40  ;;  %v6150_v46 = vcombine.high %v2233_v38, %v2237_v40  ;;  %v6030_v52 = vcombine.high %v2113_v47, %v2117_v49  ;;  %v2161_v38 = vld [vmem:[#allocation13 + $0x240] sm:$0xff] }
 0x3dd   : > { %3669 = vmatprep.subr.bf16.mxu1 %v6014_v43  ;;  %v6061_v28 = vcombine.low %v2145_v57, %v2149_v22  ;;  %v6070_v43 = vcombine.high %v2153_v31, %v2157_v44  ;;  %v2289_v40 = vld [vmem:[#allocation13 + $0x640] sm:$0xff]  ;;  %v6101_v57 = vcombine.low %v2185_v14, %v2189_v15 }
 0x3de   : > { %3724 = vmatprep.subr.bf16.mxu0 %v6150_v46  ;;  %v2293_v46 = vld [vmem:[#allocation13 + $0x660] sm:$0xff] }
 0x3df   : > { %3725 = vmatpush1.bf16.msra.mxu0 %v6149_v42  ;;  %v6205_v50 = vcombine.low %v2289_v40, %v2293_v46 }
 0x3e0   : > { %3670 = vmatpush1.bf16.msra.mxu1 %v6013_v32  ;;  %3726 = vmatprep.subr.bf16.mxu0 %v6158_v58  ;;  %v6069_v32 = vcombine.low %v2153_v31, %v2157_v44  ;;  %v2325_v44 = vld [vmem:[#allocation13 + $0x760] sm:$0xff] }
 0x3e1   : > { %3671 = vmatprep.subr.bf16.mxu1 %v6022_v39  ;;  %v2165_v39 = vld [vmem:[#allocation13 + $0x260] sm:$0xff] }
 0x3e2   : > { %v6078_v42 = vcombine.high %v2161_v38, %v2165_v39  ;;  %v6077_v49 = vcombine.low %v2161_v38, %v2165_v39  ;;  %v2333_v38 = vld [vmem:[#allocation13 + $0x7a0] sm:$0xff] }
 0x3e3   : > { %1763 = vmatmul.mubr.bf16.gmra.mrb[20].mxu1 %v1259_v60  ;;  %v2125_v60 = vld [vmem:[#allocation13 + $0x120] sm:$0xff]  ;;  %3727 = vmatpush1.bf16.msra.mxu0 %v6157_v56 }
 0x3e4   : > { %3672 = vmatpush1.bf16.msra.mxu1 %v6021_v41  ;;  %v6038_v62 = vcombine.high %v2121_v59, %v2125_v60  ;;  %v6037_v2 = vcombine.low %v2121_v59, %v2125_v60  ;;  %3728 = vmatprep.subr.bf16.mxu0 %v6166_v4  ;;  %v2297_v56 = vld [vmem:[#allocation13 + $0x680] sm:$0xff]  ;;  %v7812_v60 = vld [vmem:[%s8679_s10] sm:$0xf] }
 0x3e5   : > { %3673 = vmatprep.subr.bf16.mxu1 %v6030_v52  ;;  %v6206_v52 = vcombine.high %v2289_v40, %v2293_v46  ;;  %v2301_v59 = vld [vmem:[#allocation13 + $0x6a0] sm:$0xff]  ;;  %v1330_v5 = vrot.slane %v7812_v60, %v7731_v34 }
 0x3e6   : > { %v6214_v1 = vcombine.high %v2297_v56, %v2301_v59  ;;  %v2305_v4 = vld [vmem:[#allocation13 + $0x6c0] sm:$0xff] }
 0x3e7   : > { %3729 = vmatpush1.bf16.msra.mxu0 %v6165_v3  ;;  %v2181_v3 = vld [vmem:[#allocation13 + $0x2e0] sm:$0xff]  ;;  %v6221_v10 = vcombine.low %v2305_v4, %v2309_v7 }
 0x3e8   : > { %3674 = vmatpush1.bf16.msra.mxu1 %v6029_v55  ;;  %3730 = vmatprep.subr.bf16.mxu0 %v6174_v13  ;;  %v2173_v55 = vld [vmem:[#allocation13 + $0x2a0] sm:$0xff] }
 0x3e9   : > { %3675 = vmatprep.subr.bf16.mxu1 %v6038_v62  ;;  %v6086_v58 = vcombine.high %v2169_v53, %v2173_v55  ;;  %v6085_v61 = vcombine.low %v2169_v53, %v2173_v55  ;;  %v6213_v62 = vcombine.low %v2297_v56, %v2301_v59  ;;  %v2209_v40 = vld [vmem:[#allocation13 + $0x3c0] sm:$0xff] }
 0x3ea   : > { %v2337_v46 = vld [vmem:[#allocation13 + $0x7c0] sm:$0xff] }
 0x3eb   : > { %3731 = vmatpush1.bf16.msra.mxu0 %v6173_v12  ;;  %v1334_v12 = vrot.slane %v7812_v60, %v7734_v37 }
 0x3ec   : > { %3676 = vmatpush1.bf16.msra.mxu1 %v6037_v2  ;;  %3732 = vmatprep.subr.bf16.mxu0 %v6182_v21  ;;  %v2177_v2 = vld [vmem:[#allocation13 + $0x2c0] sm:$0xff] }
 0x3ed   : > { %3677 = vmatprep.subr.bf16.mxu1 %v6046_v8  ;;  %v6094_v6 = vcombine.high %v2177_v2, %v2181_v3  ;;  %v6093_v8 = vcombine.low %v2177_v2, %v2181_v3  ;;  %v2317_v21 = vld [vmem:[#allocation13 + $0x720] sm:$0xff]  ;;  %v7850_v2 = vld [vmem:[#allocation13 + $0x28] sm:$0xff]  ;;  %v7852_v3 = vld [vmem:[#allocation13 + $0x10] sm:$0xff] }
 0x3ee   : > { %v6229_v22 = vcombine.low %v2313_v16, %v2317_v21  ;;  %v6230_v23 = vcombine.high %v2313_v16, %v2317_v21 }
 0x3ef   : > { %3733 = vmatpush1.bf16.msra.mxu0 %v6181_v20  ;;  %v6102_v20 = vcombine.high %v2185_v14, %v2189_v15 }
 0x3f0   : > { %3678 = vmatpush1.bf16.msra.mxu1 %v6045_v11  ;;  %3734 = vmatprep.subr.bf16.mxu0 %v6190_v30  ;;  %v6222_v11 = vcombine.high %v2305_v4, %v2309_v7 }
 0x3f1   : > { %3679 = vmatprep.subr.bf16.mxu1 %v6054_v17 }
 0x3f3   : > { %3735 = vmatpush1.bf16.msra.mxu0 %v6189_v29 }
 0x3f4   : > { %3680 = vmatpush1.bf16.msra.mxu1 %v6053_v19  ;;  %3736 = vmatprep.subr.bf16.mxu0 %v6198_v54  ;;  %v2201_v54 = vld [vmem:[#allocation13 + $0x380] sm:$0xff] }
 0x3f5   : > { %3681 = vmatprep.subr.bf16.mxu1 %v6062_v25 }
 0x3f7   : > { %3737 = vmatpush1.bf16.msra.mxu0 %v6197_v48 }
 0x3f8   : > { %3682 = vmatpush1.bf16.msra.mxu1 %v6061_v28  ;;  %3738 = vmatprep.subr.bf16.mxu0 %v6206_v52  ;;  %v2321_v28 = vld [vmem:[#allocation13 + $0x740] sm:$0xff] }
 0x3f9   : > { %3683 = vmatprep.subr.bf16.mxu1 %v6070_v43  ;;  %v6237_v43 = vcombine.low %v2321_v28, %v2325_v44  ;;  %v6238_v51 = vcombine.high %v2321_v28, %v2325_v44  ;;  %v7873_v28 = vsub.s32 2, %v7728_v33  ;;  %v7880_v44 = vsub.s32 3, %v7728_v33 }
 0x3fb   : > { %3739 = vmatpush1.bf16.msra.mxu0 %v6205_v50 }
 0x3fc   : > { %3684 = vmatpush1.bf16.msra.mxu1 %v6069_v32  ;;  %3740 = vmatprep.subr.bf16.mxu0 %v6214_v1  ;;  %v7848_v1 = vld [vmem:[#allocation13 + $0x8] sm:$0xff] }
 0x3fd   : > { %3685 = vmatprep.subr.bf16.mxu1 %v6078_v42  ;;  %v6007_v4 = vcombine.low %v7848_v1, %v7850_v2 }
 0x3ff   : > { %3741 = vmatpush1.bf16.msra.mxu0 %v6213_v62 }
 0x400   : > { %3686 = vmatpush1.bf16.msra.mxu1 %v6077_v49  ;;  %3742 = vmatprep.subr.bf16.mxu0 %v6222_v11  ;;  %v2341_v49 = vld [vmem:[#allocation13 + $0x7e0] sm:$0xff] }
 0x401   : > { %3687 = vmatprep.subr.bf16.mxu1 %v6086_v58  ;;  %v6254_v58 = vcombine.high %v2337_v46, %v2341_v49  ;;  %v6253_v62 = vcombine.low %v2337_v46, %v2341_v49 }
 0x403   : > { %3743 = vmatpush1.bf16.msra.mxu0 %v6221_v10 }
 0x404   : > { %3688 = vmatpush1.bf16.msra.mxu1 %v6085_v61  ;;  %3744 = vmatprep.subr.bf16.mxu0 %v6230_v23 }
 0x405   : > { %3689 = vmatprep.subr.bf16.mxu1 %v6094_v6  ;;  %v7858_v6 = vld [vmem:[#allocation13 + $0x30] sm:$0xff] }
 0x406   : > { %v6010_v10 = vcombine.high %v7852_v3, %v7858_v6 }
 0x407   : > { %3745 = vmatpush1.bf16.msra.mxu0 %v6229_v22 }
 0x408   : > { %3690 = vmatpush1.bf16.msra.mxu1 %v6093_v8  ;;  %3746 = vmatprep.subr.bf16.mxu0 %v6238_v51  ;;  %v6009_v8 = vcombine.low %v7852_v3, %v7858_v6  ;;  %v2115_v3 = vld [vmem:[#allocation13 + $0xd0] sm:$0xff] }
 0x409   : > { %3691 = vmatprep.subr.bf16.mxu1 %v6102_v20 }
 0x40b   : > { %3747 = vmatpush1.bf16.msra.mxu0 %v6237_v43 }
 0x40c   : > { %3692 = vmatpush1.bf16.msra.mxu1 %v6101_v57 }
 0x46e   : > { %v7797_v9 = vpop.f32.mrb[8].mxu1 }
 0x46f   : > { %v7799_v0 = vpop.f32.mrb[9].mxu1  ;;  %v7822_v17 = vadd.f32 %v7797_v9, %v1330_v5  ;;  %v2193_v9 = vld [vmem:[#allocation13 + $0x340] sm:$0xff] }
 0x470   : > { %v7801_v24 = vpop.f32.mrb[10].mxu1 }
 0x471   : > { %v7803_v45 = vpop.f32.mrb[11].mxu1  ;;  %v7819_v13 = vadd.f32 %v7801_v24, %v1330_v5  ;;  %v7830_v24 = vadd.f32 %v7799_v0, %v1334_v12 }
 0x472   : > { %v7825_v18 = vadd.f32 %v7803_v45, %v1334_v12  ;;  %v2197_v45 = vld [vmem:[#allocation13 + $0x360] sm:$0xff] }
 0x473   : > { %v1775_v25 = vadd.f32 %v7819_v13, %v7822_v17  ;;  %v6110_v31 = vcombine.high %v2193_v9, %v2197_v45  ;;  %v6109_v26 = vcombine.low %v2193_v9, %v2197_v45 }
 0x474   : > { %v1784_v29 = vadd.f32 %v7825_v18, %v7830_v24 }
 0x475   : > { %3693 = vmatprep.subr.bf16.mxu1 %v6110_v31 }
 0x476   : > { %v1711_v35 = vpop.f32.mrb[12].mxu1  ;;  %3694 = vmatpush1.bf16.msra.mxu1 %v6109_v26 }
 0x477   : > { %v1713_v36 = vpop.f32.mrb[13].mxu1  ;;  %v7827_v19 = vadd.f32 %v1711_v35, %v1330_v5  ;;  %v2205_v35 = vld [vmem:[#allocation13 + $0x3a0] sm:$0xff] }
 0x478   : > { %v7805_v41 = vpop.f32.mrb[14].mxu1  ;;  %v7834_v27 = vadd.f32 %v1713_v36, %v1334_v12  ;;  %v2329_v36 = vld [vmem:[#allocation13 + $0x780] sm:$0xff]  ;;  %v6117_v50 = vcombine.low %v2201_v54, %v2205_v35  ;;  %v6118_v52 = vcombine.high %v2201_v54, %v2205_v35  ;;  %v1338_v54 = vrot.slane %v7812_v60, %v7873_v28 }
 0x479   : > { %v7807_v47 = vpop.f32.mrb[15].mxu1  ;;  %v1776_v30 = vadd.f32 %v1775_v25, %v7827_v19  ;;  %v7840_v0 = vadd.f32 %v7805_v41, %v1330_v5  ;;  %v2213_v41 = vld [vmem:[#allocation13 + $0x3e0] sm:$0xff]  ;;  %v6246_v53 = vcombine.high %v2329_v36, %v2333_v38  ;;  %v6008_v5 = vcombine.high %v7848_v1, %v7850_v2 }
 0x47a   : > { %v1785_v32 = vadd.f32 %v1784_v29, %v7834_v27  ;;  %v7844_v48 = vadd.f32 %v7807_v47, %v1334_v12  ;;  %v6245_v47 = vcombine.low %v2329_v36, %v2333_v38  ;;  %v6126_v55 = vcombine.high %v2209_v40, %v2213_v41  ;;  %3695 = vmatprep.subr.bf16.mxu1 %v6118_v52 }
 0x47b   : > { %v1777_v39 = vadd.f32 %v1776_v30, %v7840_v0  ;;  %3748 = vmatprep.subr.bf16.mxu0 %v6246_v53  ;;  %3696 = vmatpush1.bf16.msra.mxu1 %v6117_v50  ;;  %v6125_v61 = vcombine.low %v2209_v40, %v2213_v41 }
 0x47c   : > { %v1786_v42 = vadd.f32 %v1785_v32, %v7844_v48  ;;  %3749 = vmatpush1.bf16.msra.mxu0 %v6245_v47  ;;  %3697 = vmatprep.subr.bf16.mxu1 %v6126_v55 }
 0x47d   : > { %v1778_v56 = vrot.slane %v1777_v39, 4  ;;  %3750 = vmatprep.subr.bf16.mxu0 %v6254_v58 }
 0x47e   : > { %v1787_v59 = vrot.slane %v1786_v42, 4 }
 0x47f   : > { %v1779_v7 = vadd.f32 %v1778_v56, %v1777_v39  ;;  %3698 = vmatpush1.bf16.msra.mxu1 %v6125_v61  ;;  %v1342_v39 = vrot.slane %v7812_v60, %v7880_v44 }
 0x480   : > { %v1788_v11 = vadd.f32 %v1787_v59, %v1786_v42  ;;  %3751 = vmatpush1.bf16.msra.mxu0 %v6253_v62  ;;  %3773 = vmatprep.subr.bf16.mxu1 %v6008_v5 }
 0x481   : > { %3879 = vmatprep.subr.bf16.mxu0 %v6010_v10  ;;  %v1780_v12 = vrot.slane %v1779_v7, 2 }
 0x482   : > { %v1789_v14 = vrot.slane %v1788_v11, 2 }
 0x483   : > { %v1781_v15 = vadd.f32 %v1780_v12, %v1779_v7 }
 0x484   : > { %v1790_v16 = vadd.f32 %v1789_v14, %v1788_v11 }
 0x485   : > { %v1782_v20 = vrot.slane %v1781_v15, 1 }
 0x486   : > { %v1791_v21 = vrot.slane %v1790_v16, 1 }
 0x487   : > { %v1783_v57 = vadd.f32 %v1782_v20, %v1781_v15 }
 0x488   : > { %v1792_v22 = vadd.f32 %v1791_v21, %v1790_v16 }
 0x489   : > { %v7864_v23 = vmul.f32 0.03125, %v1783_v57 }
 0x48a   : > { %v7866_v25 = vmul.f32 0.03125, %v1792_v22 }
 0x48b   : > { %v1815_v9 = vsub.f32 %v7822_v17, %v7864_v23  ;;  %v1819_v45 = vsub.f32 %v7819_v13, %v7864_v23  ;;  %v1823_v40 = vsub.f32 %v7827_v19, %v7864_v23  ;;  %v1827_v60 = vsub.f32 %v7840_v0, %v7864_v23 }
 0x48c   : > { %v1816_v29 = vsub.f32 %v7830_v24, %v7866_v25  ;;  %v1820_v30 = vsub.f32 %v7825_v18, %v7866_v25  ;;  %v1824_v42 = vsub.f32 %v7834_v27, %v7866_v25  ;;  %v1828_v61 = vsub.f32 %v7844_v48, %v7866_v25 }
 0x48d   : > { %v1831_v51 = vmul.f32 %v1815_v9, %v1815_v9  ;;  %v1835_v32 = vmul.f32 %v1819_v45, %v1819_v45  ;;  %v1839_v55 = vmul.f32 %v1823_v40, %v1823_v40  ;;  %v1843_v57 = vmul.f32 %v1827_v60, %v1827_v60 }
 0x48e   : > { %v1832_v36 = vmul.f32 %v1816_v29, %v1816_v29  ;;  %v1836_v38 = vmul.f32 %v1820_v30, %v1820_v30  ;;  %v1840_v62 = vmul.f32 %v1824_v42, %v1824_v42  ;;  %v1844_v9 = vmul.f32 %v1828_v61, %v1828_v61 }
 0x48f   : > { %v1847_v49 = vadd.f32 %v1835_v32, %v1831_v51 }
 0x490   : > { %v1856_v52 = vadd.f32 %v1836_v38, %v1832_v36 }
 0x491   : > { %v1848_v11 = vadd.f32 %v1847_v49, %v1839_v55 }
 0x492   : > { %v1857_v16 = vadd.f32 %v1856_v52, %v1840_v62 }
 0x493   : > { %v1849_v29 = vadd.f32 %v1848_v11, %v1843_v57 }
 0x495   : > { %v1850_v32 = vrot.slane %v1849_v29, 4 }
 0x4ae   : > { %v1754_v31 = vpop.f32.mrb[16].mxu1 }
 0x4af   : > { %v1756_v26 = vpop.f32.mrb[17].mxu1  ;;  %v7894_v50 = vadd.f32 %v1754_v31, %v1338_v54  ;;  %v1858_v31 = vadd.f32 %v1857_v16, %v1844_v9 }
 0x4b0   : > { %v1758_v43 = vpop.f32.mrb[18].mxu1  ;;  %v7896_v47 = vadd.f32 %v1756_v26, %v1342_v39 }
 0x4b1   : > { %v1760_v35 = vpop.f32.mrb[19].mxu1  ;;  %v7888_v41 = vadd.f32 %v1758_v43, %v1338_v54 }
 0x4b2   : > { %v7892_v46 = vadd.f32 %v1760_v35, %v1342_v39  ;;  %v1859_v35 = vrot.slane %v1858_v31, 4 }
 0x4b3   : > { %v1793_v56 = vadd.f32 %v7888_v41, %v7894_v50 }
 0x4b4   : > { %v1802_v5 = vadd.f32 %v7892_v46, %v7896_v47  ;;  %v1860_v49 = vadd.f32 %v1859_v35, %v1858_v31 }
 0x4b6   : > { %v1764_v53 = vpop.f32.mrb[20].mxu1 }
 0x4b7   : > { %v7902_v58 = vadd.f32 %v1764_v53, %v1338_v54  ;;  %v1766_v59 = vpop.f32.mrb[21].mxu1 }
 0x4b8   : > { %v7908_v7 = vadd.f32 %v1766_v59, %v1342_v39  ;;  %v1768_v10 = vpop.f32.mrb[22].mxu1  ;;  %v1861_v59 = vrot.slane %v1860_v49, 2 }
 0x4b9   : > { %v1794_v12 = vadd.f32 %v1793_v56, %v7902_v58  ;;  %v7911_v14 = vadd.f32 %v1768_v10, %v1338_v54  ;;  %v1770_v15 = vpop.f32.mrb[23].mxu1 }
 0x4ba   : > { %v1803_v20 = vadd.f32 %v1802_v5, %v7908_v7  ;;  %v7914_v21 = vadd.f32 %v1770_v15, %v1342_v39  ;;  %v1851_v39 = vadd.f32 %v1850_v32, %v1849_v29  ;;  %v1862_v9 = vadd.f32 %v1861_v59, %v1860_v49 }
 0x4bb   : > { %v1795_v22 = vadd.f32 %v1794_v12, %v7911_v14 }
 0x4bc   : > { %v1804_v45 = vadd.f32 %v1803_v20, %v7914_v21  ;;  %v1852_v55 = vrot.slane %v1851_v39, 2 }
 0x4bd   : > { %v1796_v30 = vrot.slane %v1795_v22, 4 }
 0x4be   : > { %v1805_v26 = vrot.slane %v1804_v45, 4  ;;  %v1853_v16 = vadd.f32 %v1852_v55, %v1851_v39 }
 0x4bf   : > { %v1797_v43 = vadd.f32 %v1796_v30, %v1795_v22 }
 0x4c0   : > { %v1806_v51 = vadd.f32 %v1805_v26, %v1804_v45  ;;  %v1854_v32 = vrot.slane %v1853_v16, 1 }
 0x4c1   : > { %v1798_v54 = vrot.slane %v1797_v43, 2 }
 0x4c2   : > { %v1807_v36 = vrot.slane %v1806_v51, 2 }
 0x4c3   : > { %v1799_v38 = vadd.f32 %v1798_v54, %v1797_v43 }
 0x4c4   : > { %v1808_v40 = vadd.f32 %v1807_v36, %v1806_v51  ;;  %v1863_v36 = vrot.slane %v1862_v9, 1 }
 0x4c5   : > { %v1800_v42 = vrot.slane %v1799_v38, 1 }
 0x4c6   : > { %v1809_v52 = vrot.slane %v1808_v40, 1  ;;  %v1864_v49 = vadd.f32 %v1863_v36, %v1862_v9 }
 0x4c7   : > { %v1801_v53 = vadd.f32 %v1800_v42, %v1799_v38 }
 0x4c8   : > { %v1810_v60 = vadd.f32 %v1809_v52, %v1808_v40  ;;  %v1855_v52 = vadd.f32 %v1854_v32, %v1853_v16 }
 0x4c9   : > { %v7918_v56 = vmul.f32 0.03125, %v1801_v53 }
 0x4ca   : > { %v7920_v61 = vmul.f32 0.03125, %v1810_v60 }
 0x4cb   : > { %v1817_v62 = vsub.f32 %v7894_v50, %v7918_v56  ;;  %v1821_v5 = vsub.f32 %v7888_v41, %v7918_v56  ;;  %v1825_v10 = vsub.f32 %v7902_v58, %v7918_v56  ;;  %v1829_v20 = vsub.f32 %v7911_v14, %v7918_v56 }
 0x4cc   : > { %v1818_v11 = vsub.f32 %v7896_v47, %v7920_v61  ;;  %v1822_v12 = vsub.f32 %v7892_v46, %v7920_v61  ;;  %v1826_v15 = vsub.f32 %v7908_v7, %v7920_v61  ;;  %v1830_v45 = vsub.f32 %v7914_v21, %v7920_v61 }
 0x4cd   : > { %v1833_v57 = vmul.f32 %v1817_v62, %v1817_v62  ;;  %v1837_v22 = vmul.f32 %v1821_v5, %v1821_v5  ;;  %v1841_v31 = vmul.f32 %v1825_v10, %v1825_v10  ;;  %v1845_v54 = vmul.f32 %v1829_v20, %v1829_v20 }
 0x4ce   : > { %v1834_v29 = vmul.f32 %v1818_v11, %v1818_v11  ;;  %v1838_v30 = vmul.f32 %v1822_v12, %v1822_v12  ;;  %v1842_v43 = vmul.f32 %v1826_v15, %v1826_v15  ;;  %v1846_v38 = vmul.f32 %v1830_v45, %v1830_v45 }
 0x4cf   : > { %v1865_v26 = vadd.f32 %v1837_v22, %v1833_v57  ;;  %v1883_v62 = vmul.f32 0.03125, %v1855_v52  ;;  %v1884_v10 = vmul.f32 0.03125, %v1864_v49 }
 0x4d0   : > { %v1874_v51 = vadd.f32 %v1838_v30, %v1834_v29 }
 0x4d1   : > { %v1866_v35 = vadd.f32 %v1865_v26, %v1841_v31  ;;  %v1887_v57 = vadd.f32 0.8, %v1883_v62  ;;  %v1888_v22 = vadd.f32 0.8, %v1884_v10 }
 0x4d2   : > { %v1875_v40 = vadd.f32 %v1874_v51, %v1842_v43 }
 0x4d3   : > { %v1867_v39 = vadd.f32 %v1866_v35, %v1845_v54  ;;  %6973 = vrsqrt.f32 %v1887_v57  ;;  %v7952_v57 = vld [vmem:[#allocation13 + $0x48] sm:$0xff] }
 0x4d4   : > { %v1876_v42 = vadd.f32 %v1875_v40, %v1846_v38  ;;  %6975 = vrsqrt.f32 %v1888_v22 }
 0x4d5   : > { %v1868_v53 = vrot.slane %v1867_v39, 4 }
 0x4d6   : > { %v1877_v60 = vrot.slane %v1876_v42, 4 }
 0x4d7   : > { %v1869_v55 = vadd.f32 %v1868_v53, %v1867_v39 }
 0x4d8   : > { %v1878_v59 = vadd.f32 %v1877_v60, %v1876_v42  ;;  %v1773_v42 = vld [vmem:[%s8680_s11] sm:$0xf] }
 0x4d9   : > { %v1870_v5 = vrot.slane %v1869_v55, 2 }
 0x4da   : > { %v1879_v11 = vrot.slane %v1878_v59, 2 }
 0x4db   : > { %v1871_v12 = vadd.f32 %v1870_v5, %v1869_v55 }
 0x4dc   : > { %v1880_v15 = vadd.f32 %v1879_v11, %v1878_v59 }
 0x4dd   : > { %v1872_v20 = vrot.slane %v1871_v12, 1  ;;  %v6974_v43 = vpop.eup %6973 }
 0x4de   : > { %v1881_v29 = vrot.slane %v1880_v15, 1  ;;  %v6976_v51 = vpop.eup %6975 }
 0x4df   : > { %v1873_v45 = vadd.f32 %v1872_v20, %v1871_v12  ;;  %v1899_v54 = vcombine.low %v6974_v43, %v6976_v51 }
 0x4e0   : > { %v1882_v30 = vadd.f32 %v1881_v29, %v1880_v15  ;;  %v7956_v29 = vld [vmem:[#allocation13 + $0x68] sm:$0xff] }
 0x4e1   : > { %v1885_v31 = vmul.f32 0.03125, %v1873_v45  ;;  %v1907_v38 = vrot.slane %v1899_v54, %v7771_v63  ;;  %v7958_v45 = vld [vmem:[#allocation13 + $0x50] sm:$0xff] }
 0x4e2   : > { %v1886_v16 = vmul.f32 0.03125, %v1882_v30  ;;  %v7960_v30 = vld [vmem:[#allocation13 + $0x70] sm:$0xff] }
 0x4e3   : > { %v1889_v9 = vadd.f32 0.8, %v1885_v31  ;;  %v6015_v31 = vcombine.low %v7952_v57, %v7956_v29 }
 0x4e4   : > { %v1890_v26 = vadd.f32 0.8, %v1886_v16  ;;  %v6016_v16 = vcombine.high %v7952_v57, %v7956_v29 }
 0x4e5   : > { %6977 = vrsqrt.f32 %v1889_v9  ;;  %v6017_v9 = vcombine.low %v7958_v45, %v7960_v30 }
 0x4e6   : > { %6979 = vrsqrt.f32 %v1890_v26  ;;  %v6018_v26 = vcombine.high %v7958_v45, %v7960_v30  ;;  %v2123_v30 = vld [vmem:[#allocation13 + $0x110] sm:$0xff] }
 0x4ef   : > { %v6978_v32 = vpop.eup %6977 }
 0x4f0   : > { %v6980_v35 = vpop.eup %6979 }
 0x4f1   : > { %v1900_v36 = vcombine.low %v6978_v32, %v6980_v35 }
 0x4f3   : > { %v1914_v40 = vrot.slane %v1900_v36, %v7771_v63 }
 0x4f5   : > { %v1915_v39 = vcombine.low %v1907_v38, %v1914_v40 }
 0x4f7   : > { %v1922_v52 = vrot.slane %v1915_v39, %v7771_v63 }
 0x4f9   : > { %v1924_v53 = vmul.f32 %v1922_v52, %v1773_v42 }
 0x4fb   : > { %v1929_v49 = vrot.slane %v1924_v53, %v7731_v34  ;;  %v1933_v60 = vrot.slane %v1924_v53, %v7734_v37  ;;  %v1937_v55 = vrot.slane %v1924_v53, %v7873_v28  ;;  %v1941_v59 = vrot.slane %v1924_v53, %v7880_v44 }
 0x4fd   : > { %v1946_v62 = vmul.f32 %v1929_v49, %v7864_v23  ;;  %v1947_v5 = vmul.f32 %v1933_v60, %v7866_v25  ;;  %v1948_v10 = vmul.f32 %v1937_v55, %v7918_v56  ;;  %v1949_v11 = vmul.f32 %v1941_v59, %v7920_v61  ;;  %v7962_v23 = vld [vmem:[#allocation13 + $0x88] sm:$0xff] }
 0x4fe   : > { %v7964_v25 = vld [vmem:[#allocation13 + $0xa8] sm:$0xff]  ;;  %v1995_v51 = vmul.f32 %v1941_v59, %v7914_v21  ;;  %v1981_v35 = vmul.f32 %v1933_v60, %v7830_v24  ;;  %v1985_v36 = vmul.f32 %v1933_v60, %v7825_v18  ;;  %v1983_v38 = vmul.f32 %v1941_v59, %v7896_v47 }
 0x4ff   : > { %v1954_v12 = vcombine.low %v1946_v62, %v1947_v5  ;;  %v1955_v15 = vcombine.low %v1948_v10, %v1949_v11  ;;  %v1774_v61 = vld [vmem:[%s8681_s12] sm:$0xf]  ;;  %v6023_v32 = vcombine.low %v7962_v23, %v7964_v25  ;;  %v6024_v54 = vcombine.high %v7962_v23, %v7964_v25 }
 0x500   : > { %v1987_v40 = vmul.f32 %v1941_v59, %v7892_v46  ;;  %v1980_v42 = vmul.f32 %v1929_v49, %v7822_v17  ;;  %v1984_v52 = vmul.f32 %v1929_v49, %v7819_v13  ;;  %v1982_v21 = vmul.f32 %v1937_v55, %v7894_v50 }
 0x501   : > { %v1962_v20 = vrot.slane %v1954_v12, %v7771_v63  ;;  %v1969_v22 = vrot.slane %v1955_v15, %v7771_v63  ;;  %v1986_v53 = vmul.f32 %v1937_v55, %v7888_v41  ;;  %v1989_v62 = vmul.f32 %v1933_v60, %v7834_v27 }
 0x502   : > { %v1993_v5 = vmul.f32 %v1933_v60, %v7844_v48  ;;  %v1991_v24 = vmul.f32 %v1941_v59, %v7908_v7  ;;  %v1988_v13 = vmul.f32 %v1929_v49, %v7827_v19  ;;  %v1992_v41 = vmul.f32 %v1929_v49, %v7840_v0 }
 0x503   : > { %v1970_v56 = vcombine.low %v1962_v20, %v1969_v22  ;;  %v8005_v27 = vmul.f32 %v1937_v55, %v7902_v58  ;;  %v8008_v48 = vmul.f32 %v1937_v55, %v7911_v14 }
 0x505   : > { %v1977_v43 = vrot.slane %v1970_v56, %v7771_v63 }
 0x507   : > { %v1979_v39 = vsub.f32 %v1774_v61, %v1977_v43 }
 0x509   : > { %v2012_v18 = vrot.slane %v1979_v39, %v7880_v44  ;;  %v2004_v47 = vrot.slane %v1979_v39, %v7734_v37  ;;  %v7997_v46 = vrot.slane %v1979_v39, %v7731_v34  ;;  %v8000_v17 = vrot.slane %v1979_v39, %v7873_v28 }
 0x50b   : > { %v2032_v50 = vadd.f32 %v2012_v18, %v1995_v51  ;;  %v2018_v7 = vadd.f32 %v2004_v47, %v1981_v35  ;;  %v2022_v60 = vadd.f32 %v2004_v47, %v1985_v36  ;;  %v2020_v59 = vadd.f32 %v2012_v18, %v1983_v38 }
 0x50c   : > { %v2024_v10 = vadd.f32 %v2012_v18, %v1987_v40  ;;  %v2017_v11 = vadd.f32 %v7997_v46, %v1980_v42  ;;  %v2021_v12 = vadd.f32 %v7997_v46, %v1984_v52  ;;  %v2019_v15 = vadd.f32 %v8000_v17, %v1982_v21 }
 0x50d   : > { %v2064_v19 = vmul.f32 0.2, %v2032_v50  ;;  %vm2034_vm3 = vcmp.ge.f32.partialorder %v2018_v7, 0.0  ;;  %vm2038_vm4 = vcmp.ge.f32.partialorder %v2022_v60, 0.0  ;;  %v2050_v0 = vmul.f32 0.2, %v2018_v7 }
 0x50e   : > { %v2054_v58 = vmul.f32 0.2, %v2022_v60  ;;  %vm2036_vm5 = vcmp.ge.f32.partialorder %v2020_v59, 0.0  ;;  %vm2040_vm6 = vcmp.ge.f32.partialorder %v2024_v10, 0.0  ;;  %v2052_v14 = vmul.f32 0.2, %v2020_v59 }
 0x50f   : > { %v2066_v49 = vsel %vm2034_vm3, %v2018_v7, %v2050_v0  ;;  %v2056_v55 = vmul.f32 0.2, %v2024_v10  ;;  %vm2033_vm7 = vcmp.ge.f32.partialorder %v2017_v11, 0.0  ;;  %vm2037_vm8 = vcmp.ge.f32.partialorder %v2021_v12, 0.0  ;;  %v2111_v0 = vld [vmem:[#allocation13 + $0xb0] sm:$0xff] }
 0x510   : > { %v2070_v20 = vsel %vm2038_vm4, %v2022_v60, %v2054_v58  ;;  %v2068_v22 = vsel %vm2036_vm5, %v2020_v59, %v2052_v14  ;;  %v2049_v56 = vmul.f32 0.2, %v2017_v11  ;;  %v2053_v61 = vmul.f32 0.2, %v2021_v12 }
 0x511   : > { %v8013_v43 = vpack.c.bf16 %v2070_v20, %v2066_v49  ;;  %v2072_v51 = vsel %vm2040_vm6, %v2024_v10, %v2056_v55  ;;  %v2023_v35 = vadd.f32 %v8000_v17, %v1986_v53  ;;  %vm2035_vm9 = vcmp.ge.f32.partialorder %v2019_v15, 0.0 }
 0x512   : > { %v8016_v36 = vpack.c.bf16 %v2072_v51, %v2068_v22  ;;  %v2065_v38 = vsel %vm2033_vm7, %v2017_v11, %v2049_v56  ;;  %v2069_v40 = vsel %vm2037_vm8, %v2021_v12, %v2053_v61  ;;  %v2051_v39 = vmul.f32 0.2, %v2019_v15  ;;  %v2107_v12 = vld [vmem:[#allocation13 + $0x90] sm:$0xff]  ;;  %v2130_v61 = vld [vmem:[#allocation13 + $0x148] sm:$0xff] }
 0x513   : > { %3699 = vmatprep.mubr.bf16.mxu1 %v8013_v43  ;;  %v8019_v42 = vpack.c.bf16 %v2069_v40, %v2065_v38  ;;  %vm2039_vm10 = vcmp.ge.f32.partialorder %v2023_v35, 0.0  ;;  %v2055_v52 = vmul.f32 0.2, %v2023_v35  ;;  %v2026_v21 = vadd.f32 %v2004_v47, %v1989_v62  ;;  %v2134_v51 = vld [vmem:[#allocation13 + $0x168] sm:$0xff]  ;;  %v2131_v38 = vld [vmem:[#allocation13 + $0x150] sm:$0xff] }
 0x514   : > { %3752 = vmatprep.mubr.bf16.mxu0 %v8016_v36  ;;  %v2067_v7 = vsel %vm2035_vm9, %v2019_v15, %v2051_v39  ;;  %v2030_v60 = vadd.f32 %v2004_v47, %v1993_v5  ;;  %v2028_v59 = vadd.f32 %v2012_v18, %v1991_v24  ;;  %vm2048_vm11 = vcmp.ge.f32.partialorder %v2032_v50, 0.0  ;;  %v2135_v40 = vld [vmem:[#allocation13 + $0x170] sm:$0xff]  ;;  %v2138_v39 = vld [vmem:[#allocation13 + $0x188] sm:$0xff] }
 0x515   : > { %3700 = vmatmul.mubr.bf16.vlgmr.msra.gmra.mrb[24].mxu1 %v8019_v42  ;;  %v2071_v53 = vsel %vm2039_vm10, %v2023_v35, %v2055_v52  ;;  %vm2042_vm12 = vcmp.ge.f32.partialorder %v2026_v21, 0.0  ;;  %v2058_v10 = vmul.f32 0.2, %v2026_v21  ;;  %v2080_v11 = vsel %vm2048_vm11, %v2032_v50, %v2064_v19  ;;  %v2118_v19 = vld [vmem:[#allocation13 + $0xe8] sm:$0xff] }
 0x516   : > { %v8023_v58 = vpack.c.bf16 %v2071_v53, %v2067_v7  ;;  %3774 = vmatpush1.bf16.msra.mxu1 %v6007_v4  ;;  %vm2046_vm13 = vcmp.ge.f32.partialorder %v2030_v60, 0.0  ;;  %v2062_v62 = vmul.f32 0.2, %v2030_v60  ;;  %vm2044_vm14 = vcmp.ge.f32.partialorder %v2028_v59, 0.0  ;;  %v2114_v4 = vld [vmem:[#allocation13 + $0xc8] sm:$0xff]  ;;  %v2139_v53 = vld [vmem:[#allocation13 + $0x190] sm:$0xff] }
 0x517   : > { %v2074_v5 = vsel %vm2042_vm12, %v2026_v21, %v2058_v10  ;;  %v2060_v24 = vmul.f32 0.2, %v2028_v59  ;;  %3775 = vmatprep.subr.bf16.mxu1 %v6016_v16  ;;  %v2025_v18 = vadd.f32 %v7997_v46, %v1988_v13  ;;  %v2029_v47 = vadd.f32 %v7997_v46, %v1992_v41  ;;  %v2142_v52 = vld [vmem:[#allocation13 + $0x1a8] sm:$0xff]  ;;  %v2143_v10 = vld [vmem:[#allocation13 + $0x1b0] sm:$0xff] }
 0x518   : > { %3753 = vmatmul.mubr.bf16.vlgmr.msra.gmra.mrb[4].mxu0 %v8023_v58  ;;  %v2078_v50 = vsel %vm2046_vm13, %v2030_v60, %v2062_v62  ;;  %v6026_v15 = vcombine.high %v2107_v12, %v2111_v0  ;;  %v2027_v1 = vadd.f32 %v8000_v17, %v8005_v27  ;;  %v2031_v2 = vadd.f32 %v8000_v17, %v8008_v48  ;;  %v2119_v48 = vld [vmem:[#allocation13 + $0xf0] sm:$0xff] }
 0x519   : > { %3880 = vmatpush1.bf16.msra.mxu0 %v6009_v8  ;;  %v8041_v16 = vpack.c.bf16 %v2078_v50, %v2074_v5  ;;  %v2076_v13 = vsel %vm2044_vm14, %v2028_v59, %v2060_v24  ;;  %vm2041_vm15 = vcmp.ge.f32.partialorder %v2025_v18, 0.0  ;;  %vm2045_vm0 = vcmp.ge.f32.partialorder %v2029_v47, 0.0  ;;  %v2154_v50 = vld [vmem:[#allocation13 + $0x208] sm:$0xff] }
 0x51a   : > { %v8043_v46 = vpack.c.bf16 %v2080_v11, %v2076_v13  ;;  %3881 = vmatprep.subr.bf16.mxu0 %v6018_v26  ;;  %3776 = vmatpush1.bf16.msra.mxu1 %v6015_v31  ;;  %v2057_v17 = vmul.f32 0.2, %v2025_v18  ;;  %v2061_v41 = vmul.f32 0.2, %v2029_v47  ;;  %vm2043_vm1 = vcmp.ge.f32.partialorder %v2027_v1, 0.0  ;;  %v2122_v31 = vld [vmem:[#allocation13 + $0x108] sm:$0xff] }
 0x51b   : > { %3709 = vmatprep.mubr.bf16.mxu1 %v8041_v16  ;;  %3777 = vmatprep.subr.bf16.mxu1 %v6024_v54  ;;  %vm2047_vm2 = vcmp.ge.f32.partialorder %v2031_v2, 0.0  ;;  %v2059_v6 = vmul.f32 0.2, %v2027_v1  ;;  %v2063_v8 = vmul.f32 0.2, %v2031_v2  ;;  %v6032_v27 = vcombine.high %v2114_v4, %v2118_v19  ;;  %v2126_v26 = vld [vmem:[#allocation13 + $0x128] sm:$0xff] }
 0x51c   : > { %3762 = vmatprep.mubr.bf16.mxu0 %v8043_v46  ;;  %v2073_v57 = vsel %vm2041_vm15, %v2025_v18, %v2057_v17  ;;  %v2077_v29 = vsel %vm2045_vm0, %v2029_v47, %v2061_v41  ;;  %v6025_v14 = vcombine.low %v2107_v12, %v2111_v0  ;;  %v6031_v22 = vcombine.low %v2114_v4, %v2118_v19  ;;  %v2146_v11 = vld [vmem:[#allocation13 + $0x1c8] sm:$0xff]  ;;  %v2147_v18 = vld [vmem:[#allocation13 + $0x1d0] sm:$0xff] }
 0x51d   : > { %3882 = vmatpush1.bf16.msra.mxu0 %v6017_v9  ;;  %v8061_v49 = vpack.c.bf16 %v2077_v29, %v2073_v57  ;;  %v2075_v54 = vsel %vm2043_vm1, %v2027_v1, %v2059_v6  ;;  %v2079_v55 = vsel %vm2047_vm2, %v2031_v2, %v2063_v8  ;;  %v6034_v56 = vcombine.high %v2115_v3, %v2119_v48  ;;  %v2127_v9 = vld [vmem:[#allocation13 + $0x130] sm:$0xff]  ;;  %v2150_v12 = vld [vmem:[#allocation13 + $0x1e8] sm:$0xff] }
 0x51e   : > { %3883 = vmatprep.subr.bf16.mxu0 %v6026_v15  ;;  %v8064_v20 = vpack.c.bf16 %v2079_v55, %v2075_v54  ;;  %3778 = vmatpush1.bf16.msra.mxu1 %v6023_v32  ;;  %v6040_v45 = vcombine.high %v2122_v31, %v2126_v26  ;;  %v6033_v35 = vcombine.low %v2115_v3, %v2119_v48  ;;  %v2151_v47 = vld [vmem:[#allocation13 + $0x1f0] sm:$0xff]  ;;  %v2158_v15 = vld [vmem:[#allocation13 + $0x228] sm:$0xff] }
 0x51f   : > { %3710 = vmatmul.mubr.bf16.gmra.mrb[28].mxu1 %v8061_v49  ;;  %3779 = vmatprep.subr.bf16.mxu1 %v6032_v27  ;;  %v6039_v23 = vcombine.low %v2122_v31, %v2126_v26  ;;  %v6042_v25 = vcombine.high %v2123_v30, %v2127_v9  ;;  %v6048_v32 = vcombine.high %v2130_v61, %v2134_v51  ;;  %v2155_v13 = vld [vmem:[#allocation13 + $0x210] sm:$0xff]  ;;  %v2162_v41 = vld [vmem:[#allocation13 + $0x248] sm:$0xff] }
 0x520   : > { %3763 = vmatmul.mubr.bf16.gmra.mrb[8].mxu0 %v8064_v20  ;;  %3805 = vmatprep.mubr.bf16.mxu1 %v8013_v43  ;;  %v6041_v21 = vcombine.low %v2123_v30, %v2127_v9  ;;  %v6047_v7 = vcombine.low %v2130_v61, %v2134_v51  ;;  %v6050_v60 = vcombine.high %v2131_v38, %v2135_v40  ;;  %v2159_v17 = vld [vmem:[#allocation13 + $0x230] sm:$0xff]  ;;  %v2166_v3 = vld [vmem:[#allocation13 + $0x268] sm:$0xff] }
 0x521   : > { %3884 = vmatpush1.bf16.msra.mxu0 %v6025_v14  ;;  %3911 = vmatprep.mubr.bf16.mxu0 %v8013_v43  ;;  %v6056_v59 = vcombine.high %v2138_v39, %v2142_v52  ;;  %v6049_v0 = vcombine.low %v2131_v38, %v2135_v40  ;;  %v6055_v62 = vcombine.low %v2138_v39, %v2142_v52  ;;  %v2163_v57 = vld [vmem:[#allocation13 + $0x250] sm:$0xff]  ;;  %v2170_v31 = vld [vmem:[#allocation13 + $0x288] sm:$0xff] }
 0x522   : > { %3885 = vmatprep.subr.bf16.mxu0 %v6034_v56  ;;  %3780 = vmatpush1.bf16.msra.mxu1 %v6031_v22  ;;  %v6058_v5 = vcombine.high %v2139_v53, %v2143_v10  ;;  %v6064_v24 = vcombine.high %v2146_v11, %v2150_v12  ;;  %v6057_v1 = vcombine.low %v2139_v53, %v2143_v10  ;;  %v2167_v29 = vld [vmem:[#allocation13 + $0x270] sm:$0xff]  ;;  %v2174_v26 = vld [vmem:[#allocation13 + $0x2a8] sm:$0xff] }
 0x523   : > { %3781 = vmatprep.subr.bf16.mxu1 %v6040_v45  ;;  %v6063_v2 = vcombine.low %v2146_v11, %v2150_v12  ;;  %v6066_v4 = vcombine.high %v2147_v18, %v2151_v47  ;;  %v6072_v19 = vcombine.high %v2154_v50, %v2158_v15  ;;  %v6065_v6 = vcombine.low %v2147_v18, %v2151_v47  ;;  %v2171_v56 = vld [vmem:[#allocation13 + $0x290] sm:$0xff]  ;;  %v2178_v30 = vld [vmem:[#allocation13 + $0x2c8] sm:$0xff] }
 0x524   : > { %v6071_v8 = vcombine.low %v2154_v50, %v2158_v15  ;;  %v6074_v27 = vcombine.high %v2155_v13, %v2159_v17  ;;  %v6080_v48 = vcombine.high %v2162_v41, %v2166_v3  ;;  %v6073_v14 = vcombine.low %v2155_v13, %v2159_v17  ;;  %v2175_v45 = vld [vmem:[#allocation13 + $0x2b0] sm:$0xff]  ;;  %v2182_v9 = vld [vmem:[#allocation13 + $0x2e8] sm:$0xff] }
 0x525   : > { %3886 = vmatpush1.bf16.msra.mxu0 %v6033_v35  ;;  %v6079_v54 = vcombine.low %v2162_v41, %v2166_v3  ;;  %v6082_v55 = vcombine.high %v2163_v57, %v2167_v29  ;;  %v6088_v22 = vcombine.high %v2170_v31, %v2174_v26  ;;  %v6081_v61 = vcombine.low %v2163_v57, %v2167_v29  ;;  %v2186_v38 = vld [vmem:[#allocation13 + $0x308] sm:$0xff] }
 0x526   : > { %3887 = vmatprep.subr.bf16.mxu0 %v6042_v25  ;;  %3782 = vmatpush1.bf16.msra.mxu1 %v6039_v23  ;;  %v6087_v51 = vcombine.low %v2170_v31, %v2174_v26  ;;  %v6090_v35 = vcombine.high %v2171_v56, %v2175_v45  ;;  %v6096_v23 = vcombine.high %v2178_v30, %v2182_v9  ;;  %v2179_v25 = vld [vmem:[#allocation13 + $0x2d0] sm:$0xff]  ;;  %v2190_v40 = vld [vmem:[#allocation13 + $0x328] sm:$0xff] }
 0x527   : > { %3783 = vmatprep.subr.bf16.mxu1 %v6048_v32  ;;  %v2183_v32 = vld [vmem:[#allocation13 + $0x2f0] sm:$0xff]  ;;  %v6089_v39 = vcombine.low %v2171_v56, %v2175_v45  ;;  %v6095_v52 = vcombine.low %v2178_v30, %v2182_v9  ;;  %v2194_v53 = vld [vmem:[#allocation13 + $0x348] sm:$0xff]  ;;  %v6103_v12 = vcombine.low %v2186_v38, %v2190_v40 }
 0x528   : > { %v2198_v10 = vld [vmem:[#allocation13 + $0x368] sm:$0xff]  ;;  %v6097_v11 = vcombine.low %v2179_v25, %v2183_v32 }
 0x529   : > { %3888 = vmatpush1.bf16.msra.mxu0 %v6041_v21  ;;  %v6098_v21 = vcombine.high %v2179_v25, %v2183_v32  ;;  %v2202_v18 = vld [vmem:[#allocation13 + $0x388] sm:$0xff]  ;;  %v6111_v15 = vcombine.low %v2194_v53, %v2198_v10 }
 0x52a   : > { %3889 = vmatprep.subr.bf16.mxu0 %v6050_v60  ;;  %3784 = vmatpush1.bf16.msra.mxu1 %v6047_v7  ;;  %v6104_v7 = vcombine.high %v2186_v38, %v2190_v40  ;;  %v2187_v60 = vld [vmem:[#allocation13 + $0x310] sm:$0xff]  ;;  %v2206_v47 = vld [vmem:[#allocation13 + $0x3a8] sm:$0xff] }
 0x52b   : > { %3785 = vmatprep.subr.bf16.mxu1 %v6056_v59  ;;  %v2191_v59 = vld [vmem:[#allocation13 + $0x330] sm:$0xff]  ;;  %v2210_v13 = vld [vmem:[#allocation13 + $0x3c8] sm:$0xff]  ;;  %v6119_v3 = vcombine.low %v2202_v18, %v2206_v47 }
 0x52c   : > { %v6105_v50 = vcombine.low %v2187_v60, %v2191_v59  ;;  %v2214_v17 = vld [vmem:[#allocation13 + $0x3e8] sm:$0xff] }
 0x52d   : > { %3890 = vmatpush1.bf16.msra.mxu0 %v6049_v0  ;;  %v6106_v0 = vcombine.high %v2187_v60, %v2191_v59  ;;  %v2218_v57 = vld [vmem:[#allocation13 + $0x408] sm:$0xff]  ;;  %v6127_v26 = vcombine.low %v2210_v13, %v2214_v17 }
 0x52e   : > { %3891 = vmatprep.subr.bf16.mxu0 %v6058_v5  ;;  %3786 = vmatpush1.bf16.msra.mxu1 %v6055_v62  ;;  %v6112_v62 = vcombine.high %v2194_v53, %v2198_v10  ;;  %v2195_v5 = vld [vmem:[#allocation13 + $0x350] sm:$0xff]  ;;  %v2222_v29 = vld [vmem:[#allocation13 + $0x428] sm:$0xff] }
 0x52f   : > { %3787 = vmatprep.subr.bf16.mxu1 %v6064_v24  ;;  %v2199_v24 = vld [vmem:[#allocation13 + $0x370] sm:$0xff]  ;;  %v2226_v45 = vld [vmem:[#allocation13 + $0x448] sm:$0xff] }
 0x530   : > { %v6113_v41 = vcombine.low %v2195_v5, %v2199_v24  ;;  %v2230_v30 = vld [vmem:[#allocation13 + $0x468] sm:$0xff] }
 0x531   : > { %3892 = vmatpush1.bf16.msra.mxu0 %v6057_v1  ;;  %v6114_v1 = vcombine.high %v2195_v5, %v2199_v24  ;;  %v2234_v32 = vld [vmem:[#allocation13 + $0x488] sm:$0xff] }
 0x532   : > { %3893 = vmatprep.subr.bf16.mxu0 %v6066_v4  ;;  %3788 = vmatpush1.bf16.msra.mxu1 %v6063_v2  ;;  %v6120_v2 = vcombine.high %v2202_v18, %v2206_v47  ;;  %v2203_v4 = vld [vmem:[#allocation13 + $0x390] sm:$0xff]  ;;  %v2238_v38 = vld [vmem:[#allocation13 + $0x4a8] sm:$0xff] }
 0x533   : > { %3789 = vmatprep.subr.bf16.mxu1 %v6072_v19  ;;  %v2207_v19 = vld [vmem:[#allocation13 + $0x3b0] sm:$0xff]  ;;  %v2242_v59 = vld [vmem:[#allocation13 + $0x4c8] sm:$0xff] }
 0x534   : > { %v6121_v31 = vcombine.low %v2203_v4, %v2207_v19  ;;  %v2246_v53 = vld [vmem:[#allocation13 + $0x4e8] sm:$0xff] }
 0x535   : > { %3894 = vmatpush1.bf16.msra.mxu0 %v6065_v6  ;;  %v6122_v6 = vcombine.high %v2203_v4, %v2207_v19  ;;  %v2250_v24 = vld [vmem:[#allocation13 + $0x508] sm:$0xff] }
 0x536   : > { %3895 = vmatprep.subr.bf16.mxu0 %v6074_v27  ;;  %3790 = vmatpush1.bf16.msra.mxu1 %v6071_v8  ;;  %v6128_v8 = vcombine.high %v2210_v13, %v2214_v17  ;;  %v2211_v27 = vld [vmem:[#allocation13 + $0x3d0] sm:$0xff]  ;;  %v2254_v18 = vld [vmem:[#allocation13 + $0x528] sm:$0xff] }
 0x537   : > { %3791 = vmatprep.subr.bf16.mxu1 %v6080_v48  ;;  %v2215_v48 = vld [vmem:[#allocation13 + $0x3f0] sm:$0xff]  ;;  %v2258_v19 = vld [vmem:[#allocation13 + $0x548] sm:$0xff] }
 0x538   : > { %v6129_v56 = vcombine.low %v2211_v27, %v2215_v48  ;;  %v2262_v13 = vld [vmem:[#allocation13 + $0x568] sm:$0xff] }
 0x539   : > { %3896 = vmatpush1.bf16.msra.mxu0 %v6073_v14  ;;  %v6130_v14 = vcombine.high %v2211_v27, %v2215_v48  ;;  %v2266_v48 = vld [vmem:[#allocation13 + $0x588] sm:$0xff] }
 0x53a   : > { %3897 = vmatprep.subr.bf16.mxu0 %v6082_v55  ;;  %3792 = vmatpush1.bf16.msra.mxu1 %v6079_v54  ;;  %v6136_v54 = vcombine.high %v2218_v57, %v2222_v29  ;;  %v2219_v55 = vld [vmem:[#allocation13 + $0x410] sm:$0xff] }
 0x53b   : > { %3793 = vmatprep.subr.bf16.mxu1 %v6088_v22  ;;  %v2223_v22 = vld [vmem:[#allocation13 + $0x430] sm:$0xff] }
 0x53c   : > { %v6138_v9 = vcombine.high %v2219_v55, %v2223_v22  ;;  %v6137_v25 = vcombine.low %v2219_v55, %v2223_v22  ;;  %v2274_v22 = vld [vmem:[#allocation13 + $0x5c8] sm:$0xff] }
 0x53d   : > { %3898 = vmatpush1.bf16.msra.mxu0 %v6081_v61  ;;  %v6135_v61 = vcombine.low %v2218_v57, %v2222_v29  ;;  %v2270_v57 = vld [vmem:[#allocation13 + $0x5a8] sm:$0xff] }
 0x53e   : > { %3899 = vmatprep.subr.bf16.mxu0 %v6090_v35  ;;  %3794 = vmatpush1.bf16.msra.mxu1 %v6087_v51  ;;  %v2227_v51 = vld [vmem:[#allocation13 + $0x450] sm:$0xff] }
 0x53f   : > { %3795 = vmatprep.subr.bf16.mxu1 %v6096_v23  ;;  %v2231_v35 = vld [vmem:[#allocation13 + $0x470] sm:$0xff]  ;;  %v6144_v23 = vcombine.high %v2226_v45, %v2230_v30 }
 0x540   : > { %v6146_v40 = vcombine.high %v2227_v51, %v2231_v35  ;;  %v6145_v60 = vcombine.low %v2227_v51, %v2231_v35 }
 0x541   : > { %3900 = vmatpush1.bf16.msra.mxu0 %v6089_v39  ;;  %v6143_v39 = vcombine.low %v2226_v45, %v2230_v30  ;;  %v6183_v30 = vcombine.low %v2266_v48, %v2270_v57 }
 0x542   : > { %3901 = vmatprep.subr.bf16.mxu0 %v6098_v21  ;;  %3796 = vmatpush1.bf16.msra.mxu1 %v6095_v52  ;;  %v2235_v52 = vld [vmem:[#allocation13 + $0x490] sm:$0xff] }
 0x543   : > { %3797 = vmatprep.subr.bf16.mxu1 %v6104_v7  ;;  %v2239_v21 = vld [vmem:[#allocation13 + $0x4b0] sm:$0xff]  ;;  %v6152_v7 = vcombine.high %v2234_v32, %v2238_v38 }
 0x544   : > { %v6154_v10 = vcombine.high %v2235_v52, %v2239_v21  ;;  %v6153_v5 = vcombine.low %v2235_v52, %v2239_v21 }
 0x545   : > { %3902 = vmatpush1.bf16.msra.mxu0 %v6097_v11  ;;  %v6151_v11 = vcombine.low %v2234_v32, %v2238_v38 }
 0x546   : > { %3903 = vmatprep.subr.bf16.mxu0 %v6106_v0  ;;  %3798 = vmatpush1.bf16.msra.mxu1 %v6103_v12  ;;  %v2243_v12 = vld [vmem:[#allocation13 + $0x4d0] sm:$0xff] }
 0x547   : > { %3799 = vmatprep.subr.bf16.mxu1 %v6112_v62  ;;  %v2247_v0 = vld [vmem:[#allocation13 + $0x4f0] sm:$0xff]  ;;  %v6160_v62 = vcombine.high %v2242_v59, %v2246_v53 }
 0x548   : > { %v6162_v47 = vcombine.high %v2243_v12, %v2247_v0  ;;  %v6161_v4 = vcombine.low %v2243_v12, %v2247_v0 }
 0x549   : > { %3904 = vmatpush1.bf16.msra.mxu0 %v6105_v50  ;;  %v6159_v50 = vcombine.low %v2242_v59, %v2246_v53 }
 0x54a   : > { %3905 = vmatprep.subr.bf16.mxu0 %v6114_v1  ;;  %3800 = vmatpush1.bf16.msra.mxu1 %v6111_v15  ;;  %v2251_v15 = vld [vmem:[#allocation13 + $0x510] sm:$0xff] }
 0x54b   : > { %3801 = vmatprep.subr.bf16.mxu1 %v6120_v2  ;;  %v2255_v1 = vld [vmem:[#allocation13 + $0x530] sm:$0xff]  ;;  %v6168_v2 = vcombine.high %v2250_v24, %v2254_v18 }
 0x54c   : > { %v6170_v17 = vcombine.high %v2251_v15, %v2255_v1  ;;  %v6169_v27 = vcombine.low %v2251_v15, %v2255_v1 }
 0x54d   : > { %3906 = vmatpush1.bf16.msra.mxu0 %v6113_v41  ;;  %v6167_v41 = vcombine.low %v2250_v24, %v2254_v18 }
 0x54e   : > { %3907 = vmatprep.subr.bf16.mxu0 %v6122_v6  ;;  %3802 = vmatpush1.bf16.msra.mxu1 %v6119_v3  ;;  %v2259_v3 = vld [vmem:[#allocation13 + $0x550] sm:$0xff] }
 0x54f   : > { %3803 = vmatprep.subr.bf16.mxu1 %v6128_v8  ;;  %v2263_v6 = vld [vmem:[#allocation13 + $0x570] sm:$0xff]  ;;  %v6176_v8 = vcombine.high %v2258_v19, %v2262_v13 }
 0x550   : > { %v6178_v29 = vcombine.high %v2259_v3, %v2263_v6  ;;  %v6177_v55 = vcombine.low %v2259_v3, %v2263_v6 }
 0x551   : > { %3908 = vmatpush1.bf16.msra.mxu0 %v6121_v31  ;;  %v6175_v31 = vcombine.low %v2258_v19, %v2262_v13 }
 0x552   : > { %3909 = vmatprep.subr.bf16.mxu0 %v6130_v14  ;;  %3804 = vmatpush1.bf16.msra.mxu1 %v6127_v26  ;;  %v2267_v26 = vld [vmem:[#allocation13 + $0x590] sm:$0xff] }
 0x553   : > { %3826 = vmatprep.subr.bf16.mxu1 %v6136_v54  ;;  %v2271_v14 = vld [vmem:[#allocation13 + $0x5b0] sm:$0xff]  ;;  %v6184_v54 = vcombine.high %v2266_v48, %v2270_v57 }
 0x554   : > { %v6186_v45 = vcombine.high %v2267_v26, %v2271_v14  ;;  %v6185_v35 = vcombine.low %v2267_v26, %v2271_v14 }
 0x555   : > { %3910 = vmatpush1.bf16.msra.mxu0 %v6129_v56  ;;  %3806 = vmatmul.mubr.bf16.vlgmr.msra.gmra.mrb[32].mxu1 %v8019_v42  ;;  %v2278_v56 = vld [vmem:[#allocation13 + $0x5e8] sm:$0xff] }
 0x556   : > { %3932 = vmatprep.subr.bf16.mxu0 %v6138_v9  ;;  %3815 = vmatprep.mubr.bf16.mxu1 %v8041_v16  ;;  %v2275_v9 = vld [vmem:[#allocation13 + $0x5d0] sm:$0xff]  ;;  %v6192_v51 = vcombine.high %v2274_v22, %v2278_v56  ;;  %v6191_v38 = vcombine.low %v2274_v22, %v2278_v56 }
 0x557   : > { %3827 = vmatpush1.bf16.msra.mxu1 %v6135_v61  ;;  %v2279_v61 = vld [vmem:[#allocation13 + $0x5f0] sm:$0xff] }
 0x558   : > { %3912 = vmatmul.mubr.bf16.vlgmr.msra.gmra.mrb[12].mxu0 %v8019_v42  ;;  %3828 = vmatprep.subr.bf16.mxu1 %v6144_v23  ;;  %v2282_v23 = vld [vmem:[#allocation13 + $0x608] sm:$0xff]  ;;  %v6194_v32 = vcombine.high %v2275_v9, %v2279_v61  ;;  %v6193_v21 = vcombine.low %v2275_v9, %v2279_v61 }
 0x559   : > { %3921 = vmatprep.mubr.bf16.mxu0 %v8041_v16  ;;  %3933 = vmatpush1.bf16.msra.mxu0 %v6137_v25  ;;  %v2286_v25 = vld [vmem:[#allocation13 + $0x628] sm:$0xff] }
 0x55a   : > { %3934 = vmatprep.subr.bf16.mxu0 %v6146_v40  ;;  %v2283_v40 = vld [vmem:[#allocation13 + $0x610] sm:$0xff]  ;;  %v6200_v52 = vcombine.high %v2282_v23, %v2286_v25  ;;  %v6199_v53 = vcombine.low %v2282_v23, %v2286_v25 }
 0x55b   : > { %3829 = vmatpush1.bf16.msra.mxu1 %v6143_v39  ;;  %v2287_v39 = vld [vmem:[#allocation13 + $0x630] sm:$0xff] }
 0x55c   : > { %3830 = vmatprep.subr.bf16.mxu1 %v6152_v7  ;;  %v2290_v7 = vld [vmem:[#allocation13 + $0x648] sm:$0xff]  ;;  %v6202_v59 = vcombine.high %v2283_v40, %v2287_v39  ;;  %v6201_v0 = vcombine.low %v2283_v40, %v2287_v39 }
 0x55d   : > { %3935 = vmatpush1.bf16.msra.mxu0 %v6145_v60  ;;  %3816 = vmatmul.mubr.bf16.gmra.mrb[36].mxu1 %v8061_v49  ;;  %v2294_v60 = vld [vmem:[#allocation13 + $0x668] sm:$0xff] }
 0x55e   : > { %3936 = vmatprep.subr.bf16.mxu0 %v6154_v10  ;;  %3858 = vmatprep.mubr.bf16.mxu1 %v8016_v36  ;;  %v2291_v10 = vld [vmem:[#allocation13 + $0x650] sm:$0xff]  ;;  %v6208_v12 = vcombine.high %v2290_v7, %v2294_v60  ;;  %v6207_v18 = vcombine.low %v2290_v7, %v2294_v60 }
 0x55f   : > { %3831 = vmatpush1.bf16.msra.mxu1 %v6151_v11  ;;  %v2295_v11 = vld [vmem:[#allocation13 + $0x670] sm:$0xff] }
 0x560   : > { %3922 = vmatmul.mubr.bf16.gmra.mrb[16].mxu0 %v8061_v49  ;;  %3832 = vmatprep.subr.bf16.mxu1 %v6160_v62  ;;  %v2298_v62 = vld [vmem:[#allocation13 + $0x688] sm:$0xff]  ;;  %v6210_v24 = vcombine.high %v2291_v10, %v2295_v11  ;;  %v6209_v1 = vcombine.low %v2291_v10, %v2295_v11 }
 0x561   : > { %3937 = vmatpush1.bf16.msra.mxu0 %v6153_v5  ;;  %3964 = vmatprep.mubr.bf16.mxu0 %v8016_v36  ;;  %v2302_v5 = vld [vmem:[#allocation13 + $0x6a8] sm:$0xff] }
 0x562   : > { %3938 = vmatprep.subr.bf16.mxu0 %v6162_v47  ;;  %v2299_v47 = vld [vmem:[#allocation13 + $0x690] sm:$0xff]  ;;  %v6216_v15 = vcombine.high %v2298_v62, %v2302_v5  ;;  %v6215_v13 = vcombine.low %v2298_v62, %v2302_v5 }
 0x563   : > { %3833 = vmatpush1.bf16.msra.mxu1 %v6159_v50  ;;  %v2303_v50 = vld [vmem:[#allocation13 + $0x6b0] sm:$0xff] }
 0x564   : > { %3834 = vmatprep.subr.bf16.mxu1 %v6168_v2  ;;  %v2306_v2 = vld [vmem:[#allocation13 + $0x6c8] sm:$0xff]  ;;  %v6218_v19 = vcombine.high %v2299_v47, %v2303_v50  ;;  %v6217_v6 = vcombine.low %v2299_v47, %v2303_v50  ;;  %v2100_v47 = vld [vmem:[#allocation13 + $0x58] sm:$0xff] }
 0x565   : > { %3939 = vmatpush1.bf16.msra.mxu0 %v6161_v4  ;;  %v2310_v4 = vld [vmem:[#allocation13 + $0x6e8] sm:$0xff]  ;;  %v2104_v50 = vld [vmem:[#allocation13 + $0x78] sm:$0xff] }
 0x566   : > { %3940 = vmatprep.subr.bf16.mxu0 %v6170_v17  ;;  %v2307_v17 = vld [vmem:[#allocation13 + $0x6d0] sm:$0xff]  ;;  %v6224_v3 = vcombine.high %v2306_v2, %v2310_v4  ;;  %v6223_v57 = vcombine.low %v2306_v2, %v2310_v4  ;;  %v2108_v2 = vld [vmem:[#allocation13 + $0x98] sm:$0xff] }
 0x567   : > { %3835 = vmatpush1.bf16.msra.mxu1 %v6167_v41  ;;  %v2311_v41 = vld [vmem:[#allocation13 + $0x6f0] sm:$0xff]  ;;  %v2112_v4 = vld [vmem:[#allocation13 + $0xb8] sm:$0xff] }
 0x568   : > { %3836 = vmatprep.subr.bf16.mxu1 %v6176_v8  ;;  %v2314_v8 = vld [vmem:[#allocation13 + $0x708] sm:$0xff]  ;;  %v6226_v48 = vcombine.high %v2307_v17, %v2311_v41  ;;  %v6225_v14 = vcombine.low %v2307_v17, %v2311_v41  ;;  %v2116_v17 = vld [vmem:[#allocation13 + $0xd8] sm:$0xff] }
 0x569   : > { %3941 = vmatpush1.bf16.msra.mxu0 %v6169_v27  ;;  %v2318_v27 = vld [vmem:[#allocation13 + $0x728] sm:$0xff]  ;;  %v2120_v41 = vld [vmem:[#allocation13 + $0xf8] sm:$0xff] }
 0x56a   : > { %3942 = vmatprep.subr.bf16.mxu0 %v6178_v29  ;;  %v2315_v29 = vld [vmem:[#allocation13 + $0x710] sm:$0xff]  ;;  %v6232_v26 = vcombine.high %v2314_v8, %v2318_v27  ;;  %v6231_v56 = vcombine.low %v2314_v8, %v2318_v27  ;;  %v2124_v8 = vld [vmem:[#allocation13 + $0x118] sm:$0xff] }
 0x56b   : > { %3837 = vmatpush1.bf16.msra.mxu1 %v6175_v31  ;;  %v2319_v31 = vld [vmem:[#allocation13 + $0x730] sm:$0xff]  ;;  %v2128_v27 = vld [vmem:[#allocation13 + $0x138] sm:$0xff] }
 0x56c   : > { %3838 = vmatprep.subr.bf16.mxu1 %v6184_v54  ;;  %v2322_v54 = vld [vmem:[#allocation13 + $0x748] sm:$0xff]  ;;  %v6234_v22 = vcombine.high %v2315_v29, %v2319_v31  ;;  %v6233_v61 = vcombine.low %v2315_v29, %v2319_v31  ;;  %v2132_v29 = vld [vmem:[#allocation13 + $0x158] sm:$0xff] }
 0x56d   : > { %3943 = vmatpush1.bf16.msra.mxu0 %v6177_v55  ;;  %v2326_v55 = vld [vmem:[#allocation13 + $0x768] sm:$0xff]  ;;  %v2136_v31 = vld [vmem:[#allocation13 + $0x178] sm:$0xff] }
 0x56e   : > { %3944 = vmatprep.subr.bf16.mxu0 %v6186_v45  ;;  %v2323_v45 = vld [vmem:[#allocation13 + $0x750] sm:$0xff]  ;;  %v6240_v9 = vcombine.high %v2322_v54, %v2326_v55  ;;  %v6239_v25 = vcombine.low %v2322_v54, %v2326_v55  ;;  %v2140_v54 = vld [vmem:[#allocation13 + $0x198] sm:$0xff] }
 0x56f   : > { %3839 = vmatpush1.bf16.msra.mxu1 %v6183_v30  ;;  %v2327_v30 = vld [vmem:[#allocation13 + $0x770] sm:$0xff]  ;;  %v2144_v55 = vld [vmem:[#allocation13 + $0x1b8] sm:$0xff] }
 0x570   : > { %3840 = vmatprep.subr.bf16.mxu1 %v6192_v51  ;;  %v2330_v51 = vld [vmem:[#allocation13 + $0x788] sm:$0xff]  ;;  %v6242_v23 = vcombine.high %v2323_v45, %v2327_v30  ;;  %v6241_v39 = vcombine.low %v2323_v45, %v2327_v30  ;;  %v2148_v45 = vld [vmem:[#allocation13 + $0x1d8] sm:$0xff] }
 0x571   : > { %3945 = vmatpush1.bf16.msra.mxu0 %v6185_v35  ;;  %v2334_v35 = vld [vmem:[#allocation13 + $0x7a8] sm:$0xff]  ;;  %v2152_v30 = vld [vmem:[#allocation13 + $0x1f8] sm:$0xff] }
 0x572   : > { %3946 = vmatprep.subr.bf16.mxu0 %v6194_v32  ;;  %v2331_v32 = vld [vmem:[#allocation13 + $0x790] sm:$0xff]  ;;  %v6248_v40 = vcombine.high %v2330_v51, %v2334_v35  ;;  %v6247_v60 = vcombine.low %v2330_v51, %v2334_v35  ;;  %v2160_v51 = vld [vmem:[#allocation13 + $0x238] sm:$0xff]  ;;  %v6067_v35 = vcombine.low %v2148_v45, %v2152_v30 }
 0x573   : > { %3841 = vmatpush1.bf16.msra.mxu1 %v6191_v38  ;;  %v2335_v38 = vld [vmem:[#allocation13 + $0x7b0] sm:$0xff] }
 0x574   : > { %3842 = vmatprep.subr.bf16.mxu1 %v6200_v52  ;;  %v2338_v52 = vld [vmem:[#allocation13 + $0x7c8] sm:$0xff]  ;;  %v6250_v7 = vcombine.high %v2331_v32, %v2335_v38  ;;  %v6249_v11 = vcombine.low %v2331_v32, %v2335_v38  ;;  %v2168_v32 = vld [vmem:[#allocation13 + $0x278] sm:$0xff] }
 0x575   : > { %3947 = vmatpush1.bf16.msra.mxu0 %v6193_v21  ;;  %v2342_v21 = vld [vmem:[#allocation13 + $0x7e8] sm:$0xff] }
 0x576   : > { %3948 = vmatprep.subr.bf16.mxu0 %v6202_v59  ;;  %v2339_v59 = vld [vmem:[#allocation13 + $0x7d0] sm:$0xff]  ;;  %v6256_v10 = vcombine.high %v2338_v52, %v2342_v21  ;;  %v6255_v5 = vcombine.low %v2338_v52, %v2342_v21  ;;  %v2176_v52 = vld [vmem:[#allocation13 + $0x2b8] sm:$0xff] }
 0x577   : > { %3843 = vmatpush1.bf16.msra.mxu1 %v6199_v53  ;;  %v2343_v53 = vld [vmem:[#allocation13 + $0x7f0] sm:$0xff] }
 0x578   : > { %3844 = vmatprep.subr.bf16.mxu1 %v6208_v12  ;;  %v2092_v12 = vld [vmem:[#allocation13 + $0x18] sm:$0xff]  ;;  %v6258_v62 = vcombine.high %v2339_v59, %v2343_v53 }
 0x579   : > { %3949 = vmatpush1.bf16.msra.mxu0 %v6201_v0  ;;  %v2096_v0 = vld [vmem:[#allocation13 + $0x38] sm:$0xff] }
 0x57a   : > { %3950 = vmatprep.subr.bf16.mxu0 %v6210_v24  ;;  %v6012_v24 = vcombine.high %v2092_v12, %v2096_v0 }
 0x57b   : > { %3845 = vmatpush1.bf16.msra.mxu1 %v6207_v18  ;;  %v6257_v18 = vcombine.low %v2339_v59, %v2343_v53  ;;  %v2184_v59 = vld [vmem:[#allocation13 + $0x2f8] sm:$0xff] }
 0x57c   : > { %3846 = vmatprep.subr.bf16.mxu1 %v6216_v15  ;;  %v6011_v15 = vcombine.low %v2092_v12, %v2096_v0  ;;  %v2192_v12 = vld [vmem:[#allocation13 + $0x338] sm:$0xff] }
 0x57d   : > { %3951 = vmatpush1.bf16.msra.mxu0 %v6209_v1  ;;  %v6020_v1 = vcombine.high %v2100_v47, %v2104_v50 }
 0x57e   : > { %3952 = vmatprep.subr.bf16.mxu0 %v6218_v19  ;;  %v6019_v19 = vcombine.low %v2100_v47, %v2104_v50  ;;  %v2204_v50 = vld [vmem:[#allocation13 + $0x398] sm:$0xff] }
 0x57f   : > { %3847 = vmatpush1.bf16.msra.mxu1 %v6215_v13  ;;  %v6028_v13 = vcombine.high %v2108_v2, %v2112_v4 }
 0x580   : > { %3848 = vmatprep.subr.bf16.mxu1 %v6224_v3  ;;  %v6027_v3 = vcombine.low %v2108_v2, %v2112_v4  ;;  %v2212_v4 = vld [vmem:[#allocation13 + $0x3d8] sm:$0xff] }
 0x581   : > { %3953 = vmatpush1.bf16.msra.mxu0 %v6217_v6  ;;  %v6036_v6 = vcombine.high %v2116_v17, %v2120_v41 }
 0x582   : > { %3954 = vmatprep.subr.bf16.mxu0 %v6226_v48  ;;  %v6035_v48 = vcombine.low %v2116_v17, %v2120_v41  ;;  %v2220_v41 = vld [vmem:[#allocation13 + $0x418] sm:$0xff] }
 0x583   : > { %3849 = vmatpush1.bf16.msra.mxu1 %v6223_v57  ;;  %v6044_v57 = vcombine.high %v2124_v8, %v2128_v27 }
 0x584   : > { %3850 = vmatprep.subr.bf16.mxu1 %v6232_v26  ;;  %v6043_v26 = vcombine.low %v2124_v8, %v2128_v27  ;;  %v2228_v27 = vld [vmem:[#allocation13 + $0x458] sm:$0xff] }
 0x585   : > { %3955 = vmatpush1.bf16.msra.mxu0 %v6225_v14  ;;  %v6052_v14 = vcombine.high %v2132_v29, %v2136_v31 }
 0x586   : > { %3956 = vmatprep.subr.bf16.mxu0 %v6234_v22  ;;  %v6051_v22 = vcombine.low %v2132_v29, %v2136_v31  ;;  %v2236_v31 = vld [vmem:[#allocation13 + $0x498] sm:$0xff] }
 0x587   : > { %3851 = vmatpush1.bf16.msra.mxu1 %v6231_v56  ;;  %v6060_v56 = vcombine.high %v2140_v54, %v2144_v55 }
 0x588   : > { %3852 = vmatprep.subr.bf16.mxu1 %v6240_v9  ;;  %v6068_v9 = vcombine.high %v2148_v45, %v2152_v30  ;;  %v2252_v30 = vld [vmem:[#allocation13 + $0x518] sm:$0xff] }
 0x589   : > { %3957 = vmatpush1.bf16.msra.mxu0 %v6233_v61  ;;  %v2156_v61 = vld [vmem:[#allocation13 + $0x218] sm:$0xff] }
 0x58a   : > { %3958 = vmatprep.subr.bf16.mxu0 %v6242_v23  ;;  %v6076_v23 = vcombine.high %v2156_v61, %v2160_v51  ;;  %v6075_v38 = vcombine.low %v2156_v61, %v2160_v51  ;;  %v2264_v61 = vld [vmem:[#allocation13 + $0x578] sm:$0xff]  ;;  %v8095_v51 = vld [vmem:[%s8683_s14] sm:$0xff] }
 0x58b   : > { %3853 = vmatpush1.bf16.msra.mxu1 %v6239_v25  ;;  %v2164_v25 = vld [vmem:[#allocation13 + $0x258] sm:$0xff] }
 0x58c   : > { %3854 = vmatprep.subr.bf16.mxu1 %v6248_v40  ;;  %v6084_v40 = vcombine.high %v2164_v25, %v2168_v32  ;;  %v6083_v21 = vcombine.low %v2164_v25, %v2168_v32  ;;  %v2268_v25 = vld [vmem:[#allocation13 + $0x598] sm:$0xff] }
 0x58d   : > { %3959 = vmatpush1.bf16.msra.mxu0 %v6241_v39  ;;  %v2172_v39 = vld [vmem:[#allocation13 + $0x298] sm:$0xff] }
 0x58e   : > { %3960 = vmatprep.subr.bf16.mxu0 %v6250_v7  ;;  %v6092_v7 = vcombine.high %v2172_v39, %v2176_v52  ;;  %v6091_v53 = vcombine.low %v2172_v39, %v2176_v52  ;;  %v2272_v32 = vld [vmem:[#allocation13 + $0x5b8] sm:$0xff] }
 0x58f   : > { %3855 = vmatpush1.bf16.msra.mxu1 %v6247_v60  ;;  %v2180_v60 = vld [vmem:[#allocation13 + $0x2d8] sm:$0xff]  ;;  %v6188_v39 = vcombine.high %v2268_v25, %v2272_v32 }
 0x590   : > { %3856 = vmatprep.subr.bf16.mxu1 %v6256_v10  ;;  %v6100_v10 = vcombine.high %v2180_v60, %v2184_v59  ;;  %v6099_v0 = vcombine.low %v2180_v60, %v2184_v59  ;;  %v2280_v60 = vld [vmem:[#allocation13 + $0x5f8] sm:$0xff] }
 0x591   : > { %3961 = vmatpush1.bf16.msra.mxu0 %v6249_v11  ;;  %v2188_v11 = vld [vmem:[#allocation13 + $0x318] sm:$0xff] }
 0x592   : > { %3962 = vmatprep.subr.bf16.mxu0 %v6258_v62  ;;  %v6108_v62 = vcombine.high %v2188_v11, %v2192_v12 }
 0x593   : > { %3857 = vmatpush1.bf16.msra.mxu1 %v6255_v5  ;;  %v2196_v5 = vld [vmem:[#allocation13 + $0x358] sm:$0xff] }
 0x594   : > { %3985 = vmatprep.subr.bf16.mxu1 %v6012_v24  ;;  %v2200_v24 = vld [vmem:[#allocation13 + $0x378] sm:$0xff] }
 0x595   : > { %3963 = vmatpush1.bf16.msra.mxu0 %v6257_v18  ;;  %v6107_v18 = vcombine.low %v2188_v11, %v2192_v12  ;;  %v6116_v47 = vcombine.high %v2196_v5, %v2200_v24 }
 0x596   : > { %3859 = vmatmul.mubr.bf16.vlgmr.msra.gmra.mrb[32].mxu1 %v8023_v58 }
 0x597   : > { %3868 = vmatprep.mubr.bf16.mxu1 %v8043_v46  ;;  %3986 = vmatpush1.bf16.msra.mxu1 %v6011_v15  ;;  %v2208_v15 = vld [vmem:[#allocation13 + $0x3b8] sm:$0xff] }
 0x598   : > { %3965 = vmatmul.mubr.bf16.vlgmr.msra.gmra.mrb[12].mxu0 %v8023_v58  ;;  %3987 = vmatprep.subr.bf16.mxu1 %v6020_v1  ;;  %v6115_v1 = vcombine.low %v2196_v5, %v2200_v24  ;;  %v6124_v2 = vcombine.high %v2204_v50, %v2208_v15 }
 0x599   : > { %3974 = vmatprep.mubr.bf16.mxu0 %v8043_v46 }
 0x59b   : > { %3988 = vmatpush1.bf16.msra.mxu1 %v6019_v19  ;;  %v2216_v19 = vld [vmem:[#allocation13 + $0x3f8] sm:$0xff] }
 0x59c   : > { %3989 = vmatprep.subr.bf16.mxu1 %v6028_v13  ;;  %v6123_v13 = vcombine.low %v2204_v50, %v2208_v15  ;;  %v6132_v17 = vcombine.high %v2212_v4, %v2216_v19  ;;  %v2284_v15 = vld [vmem:[#allocation13 + $0x618] sm:$0xff] }
 0x59e   : > { %3869 = vmatmul.mubr.bf16.gmra.mrb[36].mxu1 %v8064_v20 }
 0x59f   : > { %3990 = vmatpush1.bf16.msra.mxu1 %v6027_v3  ;;  %4017 = vmatprep.mubr.bf16.mxu1 %v8013_v43  ;;  %v6059_v43 = vcombine.low %v2140_v54, %v2144_v55  ;;  %v2224_v3 = vld [vmem:[#allocation13 + $0x438] sm:$0xff] }
 0x5a0   : > { %3975 = vmatmul.mubr.bf16.gmra.mrb[16].mxu0 %v8064_v20  ;;  %3991 = vmatprep.subr.bf16.mxu1 %v6036_v6  ;;  %v6131_v6 = vcombine.low %v2212_v4, %v2216_v19  ;;  %v6140_v8 = vcombine.high %v2220_v41, %v2224_v3  ;;  %v2244_v55 = vld [vmem:[#allocation13 + $0x4d8] sm:$0xff] }
 0x5a3   : > { %3992 = vmatpush1.bf16.msra.mxu1 %v6035_v48  ;;  %v2232_v48 = vld [vmem:[#allocation13 + $0x478] sm:$0xff] }
 0x5a4   : > { %3993 = vmatprep.subr.bf16.mxu1 %v6044_v57  ;;  %v6139_v57 = vcombine.low %v2220_v41, %v2224_v3  ;;  %v6148_v29 = vcombine.high %v2228_v27, %v2232_v48  ;;  %v2292_v41 = vld [vmem:[#allocation13 + $0x658] sm:$0xff] }
 0x5a5   : > { %v2296_v3 = vld [vmem:[#allocation13 + $0x678] sm:$0xff] }
 0x5a7   : > { %3994 = vmatpush1.bf16.msra.mxu1 %v6043_v26  ;;  %v2240_v26 = vld [vmem:[#allocation13 + $0x4b8] sm:$0xff] }
 0x5a8   : > { %3995 = vmatprep.subr.bf16.mxu1 %v6052_v14  ;;  %v6147_v14 = vcombine.low %v2228_v27, %v2232_v48  ;;  %v6156_v54 = vcombine.high %v2236_v31, %v2240_v26 }
 0x5ab   : > { %3996 = vmatpush1.bf16.msra.mxu1 %v6051_v22  ;;  %v2248_v22 = vld [vmem:[#allocation13 + $0x4f8] sm:$0xff] }
 0x5ac   : > { %3997 = vmatprep.subr.bf16.mxu1 %v6060_v56  ;;  %v6155_v56 = vcombine.low %v2236_v31, %v2240_v26  ;;  %v6164_v45 = vcombine.high %v2244_v55, %v2248_v22 }
 0x5af   : > { %3998 = vmatpush1.bf16.msra.mxu1 %v6059_v43  ;;  %v2256_v43 = vld [vmem:[#allocation13 + $0x538] sm:$0xff] }
 0x5b0   : > { %3999 = vmatprep.subr.bf16.mxu1 %v6068_v9  ;;  %v2260_v9 = vld [vmem:[#allocation13 + $0x558] sm:$0xff] }
 0x5b3   : > { %4000 = vmatpush1.bf16.msra.mxu1 %v6067_v35  ;;  %v6171_v35 = vcombine.low %v2252_v30, %v2256_v43 }
 0x5b4   : > { %4001 = vmatprep.subr.bf16.mxu1 %v6076_v23  ;;  %v6180_v23 = vcombine.high %v2260_v9, %v2264_v61 }
 0x5b7   : > { %4002 = vmatpush1.bf16.msra.mxu1 %v6075_v38  ;;  %v6179_v38 = vcombine.low %v2260_v9, %v2264_v61  ;;  %v6211_v61 = vcombine.low %v2292_v41, %v2296_v3 }
 0x5b8   : > { %4003 = vmatprep.subr.bf16.mxu1 %v6084_v40 }
 0x5bb   : > { %4004 = vmatpush1.bf16.msra.mxu1 %v6083_v21 }
 0x5bc   : > { %4005 = vmatprep.subr.bf16.mxu1 %v6092_v7  ;;  %v2276_v7 = vld [vmem:[#allocation13 + $0x5d8] sm:$0xff] }
 0x5bf   : > { %4006 = vmatpush1.bf16.msra.mxu1 %v6091_v53 }
 0x5c0   : > { %4007 = vmatprep.subr.bf16.mxu1 %v6100_v10 }
 0x5c3   : > { %4008 = vmatpush1.bf16.msra.mxu1 %v6099_v0  ;;  %v6187_v0 = vcombine.low %v2268_v25, %v2272_v32  ;;  %v2308_v25 = vld [vmem:[#allocation13 + $0x6d8] sm:$0xff] }
 0x5c4   : > { %4009 = vmatprep.subr.bf16.mxu1 %v6108_v62  ;;  %v2312_v32 = vld [vmem:[#allocation13 + $0x6f8] sm:$0xff] }
 0x5c7   : > { %4010 = vmatpush1.bf16.msra.mxu1 %v6107_v18  ;;  %v6196_v18 = vcombine.high %v2276_v7, %v2280_v60 }
 0x5c8   : > { %4011 = vmatprep.subr.bf16.mxu1 %v6116_v47 }
 0x5cb   : > { %4012 = vmatpush1.bf16.msra.mxu1 %v6115_v1  ;;  %v2288_v1 = vld [vmem:[#allocation13 + $0x638] sm:$0xff] }
 0x5cc   : > { %4013 = vmatprep.subr.bf16.mxu1 %v6124_v2 }
 0x5cf   : > { %4014 = vmatpush1.bf16.msra.mxu1 %v6123_v13  ;;  %v6195_v13 = vcombine.low %v2276_v7, %v2280_v60  ;;  %v2328_v7 = vld [vmem:[#allocation13 + $0x778] sm:$0xff] }
 0x5d0   : > { %4015 = vmatprep.subr.bf16.mxu1 %v6132_v17  ;;  %v6204_v17 = vcombine.high %v2284_v15, %v2288_v1 }
 0x5d3   : > { %4016 = vmatpush1.bf16.msra.mxu1 %v6131_v6 }
 0x5d4   : > { %4038 = vmatprep.subr.bf16.mxu1 %v6140_v8 }
 0x5d6   : > { %4018 = vmatmul.mubr.bf16.vlgmr.msra.gmra.mrb[40].mxu1 %v8019_v42  ;;  %v6163_v42 = vcombine.low %v2244_v55, %v2248_v22 }
 0x5d7   : > { %4027 = vmatprep.mubr.bf16.mxu1 %v8041_v16  ;;  %4039 = vmatpush1.bf16.msra.mxu1 %v6139_v57  ;;  %v6172_v16 = vcombine.high %v2252_v30, %v2256_v43  ;;  %v6203_v57 = vcombine.low %v2284_v15, %v2288_v1  ;;  %v2304_v30 = vld [vmem:[#allocation13 + $0x6b8] sm:$0xff] }
 0x5d8   : > { %4040 = vmatprep.subr.bf16.mxu1 %v6148_v29 }
 0x5db   : > { %4041 = vmatpush1.bf16.msra.mxu1 %v6147_v14  ;;  %v6212_v14 = vcombine.high %v2292_v41, %v2296_v3 }
 0x5dc   : > { %4042 = vmatprep.subr.bf16.mxu1 %v6156_v54 }
 0x5de   : > { %4028 = vmatmul.mubr.bf16.gmra.mrb[44].mxu1 %v8061_v49  ;;  %v2350_v49 = vrot.slane %v8095_v51, %v7731_v34 }
 0x5df   : > { %4043 = vmatpush1.bf16.msra.mxu1 %v6155_v56  ;;  %4070 = vmatprep.mubr.bf16.mxu1 %v8016_v36  ;;  %v2354_v36 = vrot.slane %v8095_v51, %v7734_v37 }
 0x5e0   : > { %4044 = vmatprep.subr.bf16.mxu1 %v6164_v45  ;;  %v2300_v45 = vld [vmem:[#allocation13 + $0x698] sm:$0xff] }
 0x5e3   : > { %4045 = vmatpush1.bf16.msra.mxu1 %v6163_v42 }
 0x5e4   : > { %4046 = vmatprep.subr.bf16.mxu1 %v6172_v16 }
 0x5e7   : > { %4047 = vmatpush1.bf16.msra.mxu1 %v6171_v35 }
 0x5e8   : > { %v3701_v40 = vpop.f32.mrb[24].mxu1  ;;  %4048 = vmatprep.subr.bf16.mxu1 %v6180_v23  ;;  %v6220_v23 = vcombine.high %v2300_v45, %v2304_v30 }
 0x5e9   : > { %v3702_v52 = vadd.f32 %v3701_v40, %v2350_v49  ;;  %v3703_v21 = vpop.f32.mrb[25].mxu1  ;;  %v2316_v40 = vld [vmem:[#allocation13 + $0x718] sm:$0xff] }
 0x5ea   : > { %v3704_v59 = vadd.f32 %v3703_v21, %v2354_v36  ;;  %v3705_v53 = vpop.f32.mrb[26].mxu1  ;;  %v2324_v21 = vld [vmem:[#allocation13 + $0x758] sm:$0xff] }
 0x5eb   : > { %v3754_v10 = vpop.f32.mrb[4].mxu0  ;;  %4049 = vmatpush1.bf16.msra.mxu1 %v6179_v38  ;;  %v3706_v11 = vadd.f32 %v3705_v53, %v2350_v49  ;;  %v3707_v12 = vpop.f32.mrb[27].mxu1  ;;  %v6228_v38 = vcombine.high %v2308_v25, %v2312_v32  ;;  %v2332_v53 = vld [vmem:[#allocation13 + $0x798] sm:$0xff] }
 0x5ec   : > { %v8101_v62 = vadd.f32 %v3754_v10, %v3702_v52  ;;  %v3756_v5 = vpop.f32.mrb[5].mxu0  ;;  %v3708_v24 = vadd.f32 %v3707_v12, %v2354_v36  ;;  %4050 = vmatprep.subr.bf16.mxu1 %v6188_v39  ;;  %v2320_v39 = vld [vmem:[#allocation13 + $0x738] sm:$0xff]  ;;  %v6227_v52 = vcombine.low %v2308_v25, %v2312_v32  ;;  %v6797_v25 = vld [vmem:[#allocation14 + $0x64] ss:$8 sps:$4 sm:$0xff]   ;;  %v6795_v32 = vld [vmem:[#allocation14 + $0x60] ss:$8 sps:$4 sm:$0xff]  }
 0x5ed   : > { %v8103_v47 = vadd.f32 %v3756_v5, %v3704_v59  ;;  %v3758_v50 = vpop.f32.mrb[6].mxu0  ;;  %v6235_v60 = vcombine.low %v2316_v40, %v2320_v39  ;;  %v6244_v59 = vcombine.high %v2324_v21, %v2328_v7  ;;  %v2336_v10 = vld [vmem:[#allocation13 + $0x7b8] sm:$0xff] }
 0x5ee   : > { %v8105_v2 = vadd.f32 %v3758_v50, %v3706_v11  ;;  %v3760_v4 = vpop.f32.mrb[7].mxu0  ;;  %v6243_v11 = vcombine.low %v2324_v21, %v2328_v7  ;;  %v6252_v12 = vcombine.high %v2332_v53, %v2336_v10  ;;  %v2344_v5 = vld [vmem:[#allocation13 + $0x7f8] sm:$0xff] }
 0x5ef   : > { %v8107_v19 = vadd.f32 %v3760_v4, %v3708_v24  ;;  %4051 = vmatpush1.bf16.msra.mxu1 %v6187_v0  ;;  %v2340_v0 = vld [vmem:[#allocation13 + $0x7d8] sm:$0xff]  ;;  %v6251_v24 = vcombine.low %v2332_v53, %v2336_v10 }
 0x5f0   : > { %4052 = vmatprep.subr.bf16.mxu1 %v6196_v18  ;;  %v6260_v18 = vcombine.high %v2340_v0, %v2344_v5  ;;  %v6259_v50 = vcombine.low %v2340_v0, %v2344_v5  ;;  %v4093_v21 = vadd.f32 %v8105_v2, %v8101_v62 }
 0x5f2   : > { %v3711_v6 = vpop.f32.mrb[28].mxu1 }
 0x5f3   : > { %v3712_v8 = vadd.f32 %v3711_v6, %v2350_v49  ;;  %v3764_v27 = vpop.f32.mrb[8].mxu0  ;;  %v3713_v48 = vpop.f32.mrb[29].mxu1  ;;  %4053 = vmatpush1.bf16.msra.mxu1 %v6195_v13 }
 0x5f4   : > { %v3714_v29 = vadd.f32 %v3713_v48, %v2354_v36  ;;  %v3766_v31 = vpop.f32.mrb[9].mxu0  ;;  %v3715_v26 = vpop.f32.mrb[30].mxu1  ;;  %4054 = vmatprep.subr.bf16.mxu1 %v6204_v17 }
 0x5f5   : > { %v8109_v54 = vadd.f32 %v3764_v27, %v3712_v8  ;;  %v3716_v55 = vadd.f32 %v3715_v26, %v2350_v49  ;;  %v3768_v22 = vpop.f32.mrb[10].mxu0  ;;  %v3717_v56 = vpop.f32.mrb[31].mxu1  ;;  %v6219_v49 = vcombine.low %v2300_v45, %v2304_v30  ;;  %v6777_v26 = vld [vmem:[#allocation14] ss:$8 sps:$4 sm:$0xff]   ;;  %v6788_v45 = vld [vmem:[#allocation14 + $0x34] ss:$8 sps:$4 sm:$0xff]  }
 0x5f6   : > { %v8111_v43 = vadd.f32 %v3766_v31, %v3714_v29  ;;  %v3718_v42 = vadd.f32 %v3717_v56, %v2354_v36  ;;  %v3770_v16 = vpop.f32.mrb[11].mxu0  ;;  %v6236_v36 = vcombine.high %v2316_v40, %v2320_v39  ;;  %v6779_v31 = vld [vmem:[#allocation14 + $0x4] ss:$8 sps:$4 sm:$0xff]   ;;  %v6783_v56 = vld [vmem:[#allocation14 + $0x20] ss:$8 sps:$4 sm:$0xff]   ;;  %v2358_v40 = vrot.slane %v8095_v51, %v7873_v28 }
 0x5f7   : > { %v8113_v9 = vadd.f32 %v3768_v22, %v3716_v55  ;;  %4055 = vmatpush1.bf16.msra.mxu1 %v6203_v57  ;;  %5497 = vmatprep.subr.bf16.mxu0 %v6779_v31  ;;  %v6780_v55 = vld [vmem:[#allocation14 + $0x10] ss:$8 sps:$4 sm:$0xff]   ;;  %v6785_v22 = vld [vmem:[#allocation14 + $0x24] ss:$8 sps:$4 sm:$0xff]   ;;  %v4094_v0 = vadd.f32 %v4093_v21, %v8109_v54 }
 0x5f8   : > { %v8115_v35 = vadd.f32 %v3770_v16, %v3718_v42  ;;  %4056 = vmatprep.subr.bf16.mxu1 %v6212_v14  ;;  %5498 = vmatpush1.bf16.msra.mxu0 %v6777_v26  ;;  %v6782_v14 = vld [vmem:[#allocation14 + $0x14] ss:$8 sps:$4 sm:$0xff]   ;;  %v6786_v30 = vld [vmem:[#allocation14 + $0x30] ss:$8 sps:$4 sm:$0xff]   ;;  %v6791_v42 = vld [vmem:[#allocation14 + $0x44] ss:$8 sps:$4 sm:$0xff]  }
 0x5f9   : > { %8767 = vst [vmem:[#allocation31_spill] sm:$0xff] %v8113_v9  ;;  %5499 = vmatprep.subr.bf16.mxu0 %v6782_v14  ;;  %v6789_v16 = vld [vmem:[#allocation14 + $0x40] ss:$8 sps:$4 sm:$0xff]   ;;  %v6798_v39 = vld [vmem:[#allocation14 + $0x70] ss:$8 sps:$4 sm:$0xff]  }
 0x5fa   : > { %v6804_v26 = vld [vmem:[#allocation14 + $0x90] ss:$8 sps:$4 sm:$0xff]  }
 0x5fb   : > { %4057 = vmatpush1.bf16.msra.mxu1 %v6211_v61  ;;  %v6794_v61 = vld [vmem:[#allocation14 + $0x54] ss:$8 sps:$4 sm:$0xff]  }
 0x5fc   : > { %4058 = vmatprep.subr.bf16.mxu1 %v6220_v23  ;;  %5500 = vmatpush1.bf16.msra.mxu0 %v6780_v55  ;;  %v6792_v23 = vld [vmem:[#allocation14 + $0x50] ss:$8 sps:$4 sm:$0xff]  }
 0x5fd   : > { %5501 = vmatprep.subr.bf16.mxu0 %v6785_v22 }
 0x5ff   : > { %4059 = vmatpush1.bf16.msra.mxu1 %v6219_v49  ;;  %v8139_v49 = vsub.s32 4, %v7728_v33 }
 0x600   : > { %4060 = vmatprep.subr.bf16.mxu1 %v6228_v38  ;;  %5502 = vmatpush1.bf16.msra.mxu0 %v6783_v56  ;;  %v6800_v38 = vld [vmem:[#allocation14 + $0x74] ss:$8 sps:$4 sm:$0xff]  }
 0x601   : > { %5503 = vmatprep.subr.bf16.mxu0 %v6788_v45  ;;  %v2366_v7 = vrot.slane %v8095_v51, %v8139_v49 }
 0x603   : > { %4061 = vmatpush1.bf16.msra.mxu1 %v6227_v52  ;;  %v2362_v52 = vrot.slane %v8095_v51, %v7880_v44 }
 0x604   : > { %4062 = vmatprep.subr.bf16.mxu1 %v6236_v36  ;;  %5504 = vmatpush1.bf16.msra.mxu0 %v6786_v30  ;;  %v6809_v30 = vld [vmem:[#allocation14 + $0xa4] ss:$8 sps:$4 sm:$0xff]  }
 0x605   : > { %5505 = vmatprep.subr.bf16.mxu0 %v6791_v42 }
 0x607   : > { %4063 = vmatpush1.bf16.msra.mxu1 %v6235_v60  ;;  %v8152_v60 = vsub.s32 5, %v7728_v33 }
 0x608   : > { %4064 = vmatprep.subr.bf16.mxu1 %v6244_v59  ;;  %5506 = vmatpush1.bf16.msra.mxu0 %v6789_v16  ;;  %v6803_v59 = vld [vmem:[#allocation14 + $0x84] ss:$8 sps:$4 sm:$0xff]  }
 0x609   : > { %5507 = vmatprep.subr.bf16.mxu0 %v6794_v61  ;;  %v6807_v61 = vld [vmem:[#allocation14 + $0xa0] ss:$8 sps:$4 sm:$0xff]  }
 0x60b   : > { %4065 = vmatpush1.bf16.msra.mxu1 %v6243_v11 }
 0x60c   : > { %4066 = vmatprep.subr.bf16.mxu1 %v6252_v12  ;;  %5508 = vmatpush1.bf16.msra.mxu0 %v6792_v23  ;;  %v6801_v12 = vld [vmem:[#allocation14 + $0x80] ss:$8 sps:$4 sm:$0xff]  }
 0x60d   : > { %5509 = vmatprep.subr.bf16.mxu0 %v6797_v25 }
 0x60f   : > { %4067 = vmatpush1.bf16.msra.mxu1 %v6251_v24 }
 0x610   : > { %4068 = vmatprep.subr.bf16.mxu1 %v6260_v18  ;;  %5510 = vmatpush1.bf16.msra.mxu0 %v6795_v32 }
 0x611   : > { %5511 = vmatprep.subr.bf16.mxu0 %v6800_v38  ;;  %v6812_v38 = vld [vmem:[#allocation14 + $0xb4] ss:$8 sps:$4 sm:$0xff]  }
 0x613   : > { %4069 = vmatpush1.bf16.msra.mxu1 %v6259_v50 }
 0x614   : > { %5512 = vmatpush1.bf16.msra.mxu0 %v6798_v39  ;;  %v6810_v39 = vld [vmem:[#allocation14 + $0xb0] ss:$8 sps:$4 sm:$0xff]  }
 0x615   : > { %5513 = vmatprep.subr.bf16.mxu0 %v6803_v59 }
 0x616   : > { %4071 = vmatmul.mubr.bf16.vlgmr.msra.gmra.mrb[40].mxu1 %v8023_v58 }
 0x617   : > { %4080 = vmatprep.mubr.bf16.mxu1 %v8043_v46 }
 0x618   : > { %5514 = vmatpush1.bf16.msra.mxu0 %v6801_v12  ;;  %v6815_v12 = vld [vmem:[#allocation14 + $0xc4] ss:$8 sps:$4 sm:$0xff]  }
 0x61e   : > { %4081 = vmatmul.mubr.bf16.gmra.mrb[44].mxu1 %v8064_v20 }
 0x669   : > { %v3860_v15 = vpop.f32.mrb[32].mxu1 }
 0x66a   : > { %v3862_v1 = vpop.f32.mrb[33].mxu1  ;;  %v8154_v53 = vadd.f32 %v3860_v15, %v2358_v40  ;;  %v4102_v15 = vadd.f32 %v8107_v19, %v8103_v47 }
 0x66b   : > { %v8120_v4 = vpop.f32.mrb[12].mxu0  ;;  %v3864_v13 = vpop.f32.mrb[34].mxu1  ;;  %v8161_v5 = vadd.f32 %v3862_v1, %v2362_v52 }
 0x66c   : > { %v8122_v17 = vpop.f32.mrb[13].mxu0  ;;  %v3866_v41 = vpop.f32.mrb[35].mxu1  ;;  %v8145_v36 = vadd.f32 %v3864_v13, %v2358_v40  ;;  %8769 = vst [vmem:[#allocation33_spill] sm:$0xff] %v8154_v53  ;;  %v8172_v13 = vadd.f32 %v8120_v4, %v2366_v7  ;;  %v4103_v14 = vadd.f32 %v4102_v15, %v8111_v43  ;;  %v4095_v4 = vadd.f32 %v4094_v0, %v8113_v9  ;;  %v6813_v15 = vld [vmem:[#allocation14 + $0xc0] ss:$8 sps:$4 sm:$0xff]  }
 0x66d   : > { %v3970_v3 = vpop.f32.mrb[14].mxu0  ;;  %v8156_v10 = vadd.f32 %v3866_v41, %v2362_v52  ;;  %8772 = vst [vmem:[#allocation36_spill] sm:$0xff] %v8161_v5  ;;  %v2370_v41 = vrot.slane %v8095_v51, %v8152_v60 }
 0x66e   : > { %v8124_v6 = vpop.f32.mrb[15].mxu0  ;;  %8768 = vst [vmem:[#allocation32_spill] sm:$0xff] %v8145_v36  ;;  %v4111_v24 = vadd.f32 %v8145_v36, %v8154_v53  ;;  %v8165_v18 = vadd.f32 %v3970_v3, %v2366_v7  ;;  %8775 = vst [vmem:[#allocation39_spill] sm:$0xff] %v8172_v13  ;;  %v4096_v23 = vrot.slane %v4095_v4, 4 }
 0x66f   : > { %8770 = vst [vmem:[#allocation34_spill] sm:$0xff] %v8156_v10  ;;  %v4120_v1 = vadd.f32 %v8156_v10, %v8161_v5  ;;  %v8188_v55 = vadd.f32 %v8124_v6, %v2370_v41 }
 0x670   : > { %8773 = vst [vmem:[#allocation37_spill] sm:$0xff] %v8165_v18  ;;  %v4129_v22 = vadd.f32 %v8165_v18, %v8172_v13 }
 0x671   : > { %v3870_v8 = vpop.f32.mrb[36].mxu1  ;;  %8778 = vst [vmem:[#allocation42_spill] sm:$0xff] %v8188_v55 }
 0x672   : > { %v3872_v27 = vpop.f32.mrb[37].mxu1  ;;  %v8158_v11 = vadd.f32 %v3870_v8, %v2358_v40  ;;  %v6806_v8 = vld [vmem:[#allocation14 + $0x94] ss:$8 sps:$4 sm:$0xff]  }
 0x673   : > { %v8126_v48 = vpop.f32.mrb[16].mxu0  ;;  %v8128_v58 = vpop.f32.mrb[38].mxu1  ;;  %v8167_v50 = vadd.f32 %v3872_v27, %v2362_v52  ;;  %5515 = vmatprep.subr.bf16.mxu0 %v6806_v8 }
 0x674   : > { %v8130_v46 = vpop.f32.mrb[17].mxu0  ;;  %v8132_v20 = vpop.f32.mrb[39].mxu1  ;;  %8771 = vst [vmem:[#allocation35_spill] sm:$0xff] %v8158_v11  ;;  %v4112_v31 = vadd.f32 %v8158_v11, %v4111_v24  ;;  %v8180_v3 = vadd.f32 %v8126_v48, %v2366_v7  ;;  %v8183_v27 = vadd.f32 %v8128_v58, %v2358_v40  ;;  %5516 = vmatpush1.bf16.msra.mxu0 %v6804_v26 }
 0x675   : > { %v8134_v57 = vpop.f32.mrb[18].mxu0  ;;  %8774 = vst [vmem:[#allocation38_spill] sm:$0xff] %v8167_v50  ;;  %v4121_v56 = vadd.f32 %v8167_v50, %v4120_v1  ;;  %v8194_v48 = vadd.f32 %v8132_v20, %v2362_v52  ;;  %v8197_v58 = vadd.f32 %v8122_v17, %v2370_v41  ;;  %v8200_v45 = vadd.f32 %v8130_v46, %v2370_v41 }
 0x676   : > { %v8136_v29 = vpop.f32.mrb[19].mxu0  ;;  %8776 = vst [vmem:[#allocation40_spill] sm:$0xff] %v8180_v3  ;;  %8777 = vst [vmem:[#allocation41_spill] sm:$0xff] %v8183_v27  ;;  %v4130_v6 = vadd.f32 %v8180_v3, %v4129_v22  ;;  %v4113_v42 = vadd.f32 %v8183_v27, %v4112_v31  ;;  %v8205_v16 = vadd.f32 %v8134_v57, %v2366_v7  ;;  %5517 = vmatprep.subr.bf16.mxu0 %v6809_v30  ;;  %v6816_v31 = vld [vmem:[#allocation14 + $0xd0] ss:$8 sps:$4 sm:$0xff]  }
 0x677   : > { %8779 = vst [vmem:[#allocation43_spill] sm:$0xff] %v8194_v48  ;;  %8780 = vst [vmem:[#allocation44_spill] sm:$0xff] %v8197_v58  ;;  %v4104_v20 = vadd.f32 %v4103_v14, %v8115_v35  ;;  %v4138_v25 = vadd.f32 %v8188_v55, %v8197_v58  ;;  %v4122_v17 = vadd.f32 %v8194_v48, %v4121_v56  ;;  %v6821_v14 = vld [vmem:[#allocation14 + $0xe4] ss:$8 sps:$4 sm:$0xff]  }
 0x678   : > { %8781 = vst [vmem:[#allocation45_spill] sm:$0xff] %v8200_v45  ;;  %8782 = vst [vmem:[#allocation46_spill] sm:$0xff] %v8205_v16  ;;  %5518 = vmatpush1.bf16.msra.mxu0 %v6807_v61  ;;  %v8213_v32 = vadd.f32 %v8136_v29, %v2370_v41  ;;  %v4114_v40 = vrot.slane %v4113_v42, 4  ;;  %v4131_v57 = vadd.f32 %v8205_v16, %v4130_v6  ;;  %v6818_v29 = vld [vmem:[#allocation14 + $0xd4] ss:$8 sps:$4 sm:$0xff]  }
 0x679   : > { %v4139_v46 = vadd.f32 %v8200_v45, %v4138_v25  ;;  %v4097_v52 = vadd.f32 %v4096_v23, %v4095_v4  ;;  %v4105_v21 = vrot.slane %v4104_v20, 4  ;;  %5519 = vmatprep.subr.bf16.mxu0 %v6812_v38  ;;  %v4123_v7 = vrot.slane %v4122_v17, 4  ;;  %v6819_v61 = vld [vmem:[#allocation14 + $0xe0] ss:$8 sps:$4 sm:$0xff]   ;;  %v6824_v23 = vld [vmem:[#allocation14 + $0xf4] ss:$8 sps:$4 sm:$0xff]  }
 0x67a   : > { %8783 = vst [vmem:[#allocation47_spill] sm:$0xff] %v8213_v32  ;;  %v4115_v0 = vadd.f32 %v4114_v40, %v4113_v42  ;;  %v4132_v24 = vrot.slane %v4131_v57, 4  ;;  %v6822_v40 = vld [vmem:[#allocation14 + $0xf0] ss:$8 sps:$4 sm:$0xff]  }
 0x67b   : > { %v4140_v59 = vadd.f32 %v8213_v32, %v4139_v46  ;;  %v4098_v8 = vrot.slane %v4097_v52, 2  ;;  %v4106_v1 = vadd.f32 %v4105_v21, %v4104_v20  ;;  %v4124_v41 = vadd.f32 %v4123_v7, %v4122_v17  ;;  %v6827_v21 = vld [vmem:[#allocation14 + $0x104] ss:$8 sps:$4 sm:$0xff]  }
 0x67c   : > { %5520 = vmatpush1.bf16.msra.mxu0 %v6810_v39  ;;  %v4116_v4 = vrot.slane %v4115_v0, 2  ;;  %v4133_v22 = vadd.f32 %v4132_v24, %v4131_v57 }
 0x67d   : > { %5521 = vmatprep.subr.bf16.mxu0 %v6815_v12  ;;  %v4141_v26 = vrot.slane %v4140_v59, 4  ;;  %v4099_v56 = vadd.f32 %v4098_v8, %v4097_v52  ;;  %v4107_v30 = vrot.slane %v4106_v1, 2  ;;  %v4125_v6 = vrot.slane %v4124_v41, 2 }
 0x67e   : > { %v4117_v25 = vadd.f32 %v4116_v4, %v4115_v0  ;;  %v4134_v20 = vrot.slane %v4133_v22, 2 }
 0x67f   : > { %v4142_v42 = vadd.f32 %v4141_v26, %v4140_v59  ;;  %v4100_v46 = vrot.slane %v4099_v56, 1  ;;  %v4108_v38 = vadd.f32 %v4107_v30, %v4106_v1  ;;  %v4126_v17 = vadd.f32 %v4125_v6, %v4124_v41 }
 0x680   : > { %5522 = vmatpush1.bf16.msra.mxu0 %v6813_v15  ;;  %v4118_v7 = vrot.slane %v4117_v25, 1  ;;  %v4135_v57 = vadd.f32 %v4134_v20, %v4133_v22 }
 0x681   : > { %5523 = vmatprep.subr.bf16.mxu0 %v6818_v29  ;;  %v4143_v39 = vrot.slane %v4142_v42, 2  ;;  %v4101_v52 = vadd.f32 %v4100_v46, %v4099_v56  ;;  %v4109_v12 = vrot.slane %v4108_v38, 1  ;;  %v4127_v24 = vrot.slane %v4126_v17, 1 }
 0x682   : > { %v4119_v59 = vadd.f32 %v4118_v7, %v4117_v25  ;;  %v4136_v8 = vrot.slane %v4135_v57, 1 }
 0x683   : > { %v4144_v15 = vadd.f32 %v4143_v39, %v4142_v42  ;;  %v8217_v0 = vmul.f32 0.03125, %v4101_v52  ;;  %v4110_v29 = vadd.f32 %v4109_v12, %v4108_v38  ;;  %v4128_v1 = vadd.f32 %v4127_v24, %v4126_v17 }
 0x684   : > { %5524 = vmatpush1.bf16.msra.mxu0 %v6816_v31  ;;  %v8219_v31 = vmul.f32 0.03125, %v4119_v59  ;;  %v4137_v26 = vadd.f32 %v4136_v8, %v4135_v57 }
 0x685   : > { %5525 = vmatprep.subr.bf16.mxu0 %v6821_v14  ;;  %v4145_v41 = vrot.slane %v4144_v15, 1  ;;  %v4173_v14 = vsub.f32 %v8101_v62, %v8217_v0  ;;  %v4181_v4 = vsub.f32 %v8105_v2, %v8217_v0  ;;  %v8225_v22 = vmul.f32 0.03125, %v4110_v29 }
 0x686   : > { %v8227_v56 = vmul.f32 0.03125, %v4128_v1  ;;  %v4189_v30 = vsub.f32 %v8109_v54, %v8217_v0  ;;  %v4183_v42 = vsub.f32 %v8145_v36, %v8219_v31  ;;  %v4197_v17 = vsub.f32 %v8113_v9, %v8217_v0 }
 0x687   : > { %v4146_v6 = vadd.f32 %v4145_v41, %v4144_v15  ;;  %v4205_v25 = vmul.f32 %v4173_v14, %v4173_v14  ;;  %v4213_v20 = vmul.f32 %v4181_v4, %v4181_v4  ;;  %v4174_v46 = vsub.f32 %v8103_v47, %v8225_v22 }
 0x688   : > { %5526 = vmatpush1.bf16.msra.mxu0 %v6819_v61  ;;  %v4175_v61 = vsub.f32 %v8154_v53, %v8219_v31  ;;  %v4182_v38 = vsub.f32 %v8107_v19, %v8225_v22  ;;  %v4184_v39 = vsub.f32 %v8156_v10, %v8227_v56  ;;  %v4190_v7 = vsub.f32 %v8111_v43, %v8225_v22 }
 0x689   : > { %5527 = vmatprep.subr.bf16.mxu0 %v6824_v23  ;;  %v8235_v23 = vmul.f32 0.03125, %v4137_v26  ;;  %v4198_v57 = vsub.f32 %v8115_v35, %v8225_v22  ;;  %v8251_v52 = vmul.f32 0.03125, %v4146_v6  ;;  %v4215_v24 = vmul.f32 %v4183_v42, %v4183_v42 }
 0x68a   : > { %v4207_v12 = vmul.f32 %v4175_v61, %v4175_v61  ;;  %v4237_v8 = vadd.f32 %v4213_v20, %v4205_v25  ;;  %v4206_v29 = vmul.f32 %v4174_v46, %v4174_v46  ;;  %v4214_v1 = vmul.f32 %v4182_v38, %v4182_v38 }
 0x68b   : > { %v4177_v15 = vsub.f32 %v8172_v13, %v8235_v23  ;;  %v4185_v59 = vsub.f32 %v8165_v18, %v8235_v23  ;;  %v8258_v41 = vsub.s32 6, %v7728_v33  ;;  %v4229_v26 = vmul.f32 %v4197_v17, %v4197_v17 }
 0x68c   : > { %5528 = vmatpush1.bf16.msra.mxu0 %v6822_v40  ;;  %v4176_v40 = vsub.f32 %v8161_v5, %v8227_v56  ;;  %v4191_v14 = vsub.f32 %v8158_v11, %v8219_v31  ;;  %v4222_v6 = vmul.f32 %v4190_v7, %v4190_v7  ;;  %v4178_v61 = vsub.f32 %v8197_v58, %v8251_v52 }
 0x68d   : > { %5550 = vmatprep.subr.bf16.mxu0 %v6827_v21  ;;  %v4221_v21 = vmul.f32 %v4189_v30, %v4189_v30  ;;  %v4216_v30 = vmul.f32 %v4184_v39, %v4184_v39  ;;  %v4186_v42 = vsub.f32 %v8188_v55, %v8251_v52  ;;  %v8267_v25 = vsub.s32 7, %v7728_v33 }
 0x68e   : > { %v4208_v4 = vmul.f32 %v4176_v40, %v4176_v40  ;;  %v4255_v20 = vadd.f32 %v4215_v24, %v4207_v12  ;;  %v4209_v46 = vmul.f32 %v4177_v15, %v4177_v15  ;;  %v4217_v38 = vmul.f32 %v4185_v59, %v4185_v59 }
 0x68f   : > { %v4192_v17 = vsub.f32 %v8167_v50, %v8227_v56  ;;  %v4238_v40 = vadd.f32 %v4237_v8, %v4221_v21  ;;  %v4230_v39 = vmul.f32 %v4198_v57, %v4198_v57  ;;  %v4246_v7 = vadd.f32 %v4214_v1, %v4206_v29 }
 0x690   : > { %v2374_v58 = vrot.slane %v8095_v51, %v8258_v41  ;;  %v4199_v55 = vsub.f32 %v8183_v27, %v8219_v31  ;;  %v4223_v36 = vmul.f32 %v4191_v14, %v4191_v14  ;;  %v4193_v33 = vsub.f32 %v8180_v3, %v8235_v23 }
 0x691   : > { %v4264_v12 = vadd.f32 %v4216_v30, %v4208_v4  ;;  %v4200_v15 = vsub.f32 %v8194_v48, %v8227_v56  ;;  %v4210_v59 = vmul.f32 %v4178_v61, %v4178_v61  ;;  %v4218_v21 = vmul.f32 %v4186_v42, %v4186_v42 }
 0x692   : > { %v2378_v57 = vrot.slane %v8095_v51, %v8267_v25  ;;  %v4256_v8 = vadd.f32 %v4255_v20, %v4223_v36  ;;  %v4273_v29 = vadd.f32 %v4217_v38, %v4209_v46  ;;  %v4224_v1 = vmul.f32 %v4192_v17, %v4192_v17 }
 0x693   : > { %v4239_v27 = vadd.f32 %v4238_v40, %v4229_v26  ;;  %v4247_v14 = vadd.f32 %v4246_v7, %v4222_v6  ;;  %v4194_v3 = vsub.f32 %v8200_v45, %v8251_v52  ;;  %v4231_v30 = vmul.f32 %v4199_v55, %v4199_v55 }
 0x694   : > { %v4225_v53 = vmul.f32 %v4193_v33, %v4193_v33  ;;  %v4265_v48 = vadd.f32 %v4264_v12, %v4224_v1  ;;  %v4201_v51 = vsub.f32 %v8205_v16, %v8235_v23  ;;  %v4232_v36 = vmul.f32 %v4200_v15, %v4200_v15 }
 0x695   : > { %v4282_v42 = vadd.f32 %v4218_v21, %v4210_v59  ;;  %v4257_v26 = vadd.f32 %v4256_v8, %v4231_v30  ;;  %v4226_v17 = vmul.f32 %v4194_v3, %v4194_v3  ;;  %v4248_v33 = vadd.f32 %v4247_v14, %v4230_v39 }
 0x696   : > { %v4274_v6 = vadd.f32 %v4273_v29, %v4225_v53  ;;  %v4266_v12 = vadd.f32 %v4265_v48, %v4232_v36  ;;  %v4233_v59 = vmul.f32 %v4201_v51, %v4201_v51  ;;  %v4240_v14 = vrot.slane %v4239_v27, 4 }
 0x697   : > { %v4283_v21 = vadd.f32 %v4282_v42, %v4226_v17  ;;  %v4258_v3 = vrot.slane %v4257_v26, 4  ;;  %v4249_v36 = vrot.slane %v4248_v33, 4 }
 0x698   : > { %v4275_v30 = vadd.f32 %v4274_v6, %v4233_v59  ;;  %v4267_v39 = vrot.slane %v4266_v12, 4 }
 0x699   : > { %v4250_v16 = vadd.f32 %v4249_v36, %v4248_v33 }
 0x69a   : > { %v4276_v42 = vrot.slane %v4275_v30, 4 }
 0x69b   : > { %v4251_v9 = vrot.slane %v4250_v16, 2 }
 0x69c   : > { %v4277_v59 = vadd.f32 %v4276_v42, %v4275_v30 }
 0x69d   : > { %v4252_v33 = vadd.f32 %v4251_v9, %v4250_v16 }
 0x6e9   : > { %v4072_v18 = vpop.f32.mrb[40].mxu1 }
 0x6ea   : > { %v4074_v13 = vpop.f32.mrb[41].mxu1  ;;  %v8287_v61 = vadd.f32 %v4072_v18, %v2374_v58  ;;  %v4202_v18 = vsub.f32 %v8213_v32, %v8251_v52 }
 0x6eb   : > { %v4076_v11 = vpop.f32.mrb[42].mxu1  ;;  %v8291_v20 = vadd.f32 %v4074_v13, %v2378_v57 }
 0x6ec   : > { %v4078_v24 = vpop.f32.mrb[43].mxu1  ;;  %v8281_v50 = vadd.f32 %v4076_v11, %v2374_v58  ;;  %8785 = vst [vmem:[#allocation49_spill] sm:$0xff] %v8287_v61 }
 0x6ed   : > { %v8285_v4 = vadd.f32 %v4078_v24, %v2378_v57 }
 0x6ee   : > { %8784 = vst [vmem:[#allocation48_spill] sm:$0xff] %v8281_v50  ;;  %v4147_v46 = vadd.f32 %v8281_v50, %v8287_v61 }
 0x6ef   : > { %v4156_v40 = vadd.f32 %v8285_v4, %v8291_v20 }
 0x6f1   : > { %v4082_v11 = vpop.f32.mrb[44].mxu1 }
 0x6f2   : > { %v8295_v38 = vadd.f32 %v4082_v11, %v2374_v58  ;;  %v4084_v55 = vpop.f32.mrb[45].mxu1  ;;  %v4234_v11 = vmul.f32 %v4202_v18, %v4202_v18 }
 0x6f3   : > { %v8301_v7 = vadd.f32 %v4084_v55, %v2378_v57  ;;  %v4086_v13 = vpop.f32.mrb[46].mxu1 }
 0x6f4   : > { %8786 = vst [vmem:[#allocation50_spill] sm:$0xff] %v8295_v38  ;;  %v4148_v53 = vadd.f32 %v8295_v38, %v4147_v46  ;;  %v8304_v24 = vadd.f32 %v4086_v13, %v2374_v58  ;;  %v4088_v15 = vpop.f32.mrb[47].mxu1  ;;  %v4284_v58 = vadd.f32 %v4283_v21, %v4234_v11  ;;  %v4259_v13 = vadd.f32 %v4258_v3, %v4257_v26 }
 0x6f5   : > { %8787 = vst [vmem:[#allocation51_spill] sm:$0xff] %v8301_v7  ;;  %v4157_v8 = vadd.f32 %v8301_v7, %v4156_v40  ;;  %v8307_v29 = vadd.f32 %v4088_v15, %v2378_v57  ;;  %v4268_v40 = vadd.f32 %v4267_v39, %v4266_v12  ;;  %v4241_v15 = vadd.f32 %v4240_v14, %v4239_v27 }
 0x6f6   : > { %8788 = vst [vmem:[#allocation52_spill] sm:$0xff] %v8304_v24  ;;  %v4149_v1 = vadd.f32 %v8304_v24, %v4148_v53  ;;  %v4285_v32 = vrot.slane %v4284_v58, 4  ;;  %v4260_v6 = vrot.slane %v4259_v13, 2 }
 0x6f7   : > { %v4158_v55 = vadd.f32 %v8307_v29, %v4157_v8  ;;  %v4269_v45 = vrot.slane %v4268_v40, 2  ;;  %v4242_v5 = vrot.slane %v4241_v15, 2 }
 0x6f8   : > { %v4150_v48 = vrot.slane %v4149_v1, 4  ;;  %v4286_v21 = vadd.f32 %v4285_v32, %v4284_v58  ;;  %v4261_v26 = vadd.f32 %v4260_v6, %v4259_v13 }
 0x6f9   : > { %v4159_v46 = vrot.slane %v4158_v55, 4  ;;  %v4270_v12 = vadd.f32 %v4269_v45, %v4268_v40  ;;  %v4243_v27 = vadd.f32 %v4242_v5, %v4241_v15 }
 0x6fa   : > { %v4151_v51 = vadd.f32 %v4150_v48, %v4149_v1  ;;  %v4278_v1 = vrot.slane %v4277_v59, 2  ;;  %v4287_v48 = vrot.slane %v4286_v21, 2  ;;  %v4262_v30 = vrot.slane %v4261_v26, 1 }
 0x6fb   : > { %v4160_v17 = vadd.f32 %v4159_v46, %v4158_v55  ;;  %v4271_v16 = vrot.slane %v4270_v12, 1  ;;  %v4244_v15 = vrot.slane %v4243_v27, 1 }
 0x6fc   : > { %v4152_v57 = vrot.slane %v4151_v51, 2  ;;  %v4279_v58 = vadd.f32 %v4278_v1, %v4277_v59  ;;  %v4288_v42 = vadd.f32 %v4287_v48, %v4286_v21 }
 0x6fd   : > { %v4161_v53 = vrot.slane %v4160_v17, 2  ;;  %v4245_v21 = vadd.f32 %v4244_v15, %v4243_v27 }
 0x6fe   : > { %v4153_v18 = vadd.f32 %v4152_v57, %v4151_v51 }
 0x6ff   : > { %v4162_v8 = vadd.f32 %v4161_v53, %v4160_v17 }
 0x700   : > { %v4154_v10 = vrot.slane %v4153_v18, 1 }
 0x701   : > { %v4163_v11 = vrot.slane %v4162_v8, 1 }
 0x702   : > { %v4155_v3 = vadd.f32 %v4154_v10, %v4153_v18  ;;  %v4253_v18 = vrot.slane %v4252_v33, 1 }
 0x703   : > { %v4164_v55 = vadd.f32 %v4163_v11, %v4162_v8  ;;  %v4263_v11 = vadd.f32 %v4262_v30, %v4261_v26 }
 0x704   : > { %v8311_v39 = vmul.f32 0.03125, %v4155_v3  ;;  %v4280_v3 = vrot.slane %v4279_v58, 1 }
 0x705   : > { %v8313_v14 = vmul.f32 0.03125, %v4164_v55 }
 0x706   : > { %v4179_v36 = vsub.f32 %v8287_v61, %v8311_v39  ;;  %v4187_v32 = vsub.f32 %v8281_v50, %v8311_v39  ;;  %v4195_v10 = vsub.f32 %v8295_v38, %v8311_v39  ;;  %v4203_v46 = vsub.f32 %v8304_v24, %v8311_v39 }
 0x707   : > { %v4180_v45 = vsub.f32 %v8291_v20, %v8313_v14  ;;  %v4188_v9 = vsub.f32 %v8285_v4, %v8313_v14  ;;  %v4196_v5 = vsub.f32 %v8301_v7, %v8313_v14  ;;  %v4204_v17 = vsub.f32 %v8307_v29, %v8313_v14 }
 0x708   : > { %v4211_v13 = vmul.f32 %v4179_v36, %v4179_v36  ;;  %v4219_v51 = vmul.f32 %v4187_v32, %v4187_v32  ;;  %v4227_v53 = vmul.f32 %v4195_v10, %v4195_v10  ;;  %v4235_v1 = vmul.f32 %v4203_v46, %v4203_v46 }
 0x709   : > { %v4212_v40 = vmul.f32 %v4180_v45, %v4180_v45  ;;  %v4220_v57 = vmul.f32 %v4188_v9, %v4188_v9  ;;  %v4228_v59 = vmul.f32 %v4196_v5, %v4196_v5  ;;  %v4272_v38 = vadd.f32 %v4271_v16, %v4270_v12 }
 0x70a   : > { %v4291_v6 = vadd.f32 %v4219_v51, %v4211_v13  ;;  %v4289_v24 = vrot.slane %v4288_v42, 1  ;;  %v4236_v36 = vmul.f32 %v4204_v17, %v4204_v17  ;;  %v4254_v7 = vadd.f32 %v4253_v18, %v4252_v33 }
 0x70b   : > { %v4300_v8 = vadd.f32 %v4220_v57, %v4212_v40  ;;  %v4311_v45 = vmul.f32 0.03125, %v4263_v11  ;;  %v4281_v9 = vadd.f32 %v4280_v3, %v4279_v58  ;;  %v4312_v10 = vmul.f32 0.03125, %v4272_v38 }
 0x70c   : > { %v4292_v55 = vadd.f32 %v4291_v6, %v4227_v53  ;;  %v4290_v13 = vadd.f32 %v4289_v24, %v4288_v42  ;;  %v4309_v5 = vmul.f32 0.03125, %v4245_v21  ;;  %v4310_v26 = vmul.f32 0.03125, %v4254_v7 }
 0x70d   : > { %v4301_v32 = vadd.f32 %v4300_v8, %v4228_v59  ;;  %v4319_v46 = vadd.f32 0.8, %v4311_v45  ;;  %v4313_v57 = vmul.f32 0.03125, %v4281_v9  ;;  %v4320_v16 = vadd.f32 0.8, %v4312_v10 }
 0x70e   : > { %v4293_v48 = vadd.f32 %v4292_v55, %v4235_v1  ;;  %v4314_v17 = vmul.f32 0.03125, %v4290_v13  ;;  %v4317_v27 = vadd.f32 0.8, %v4309_v5  ;;  %v4318_v33 = vadd.f32 0.8, %v4310_v26 }
 0x70f   : > { %v4302_v50 = vadd.f32 %v4301_v32, %v4236_v36  ;;  %6981 = vrsqrt.f32 %v4319_v46  ;;  %v4321_v58 = vadd.f32 0.8, %v4313_v57 }
 0x710   : > { %v4294_v61 = vrot.slane %v4293_v48, 4  ;;  %6983 = vrsqrt.f32 %v4320_v16  ;;  %v4322_v38 = vadd.f32 0.8, %v4314_v17  ;;  %v4091_v16 = vld [vmem:[%s8684_s15] sm:$0xff] }
 0x711   : > { %v4303_v51 = vrot.slane %v4302_v50, 4  ;;  %6985 = vrsqrt.f32 %v4317_v27 }
 0x712   : > { %v4295_v40 = vadd.f32 %v4294_v61, %v4293_v48  ;;  %6987 = vrsqrt.f32 %v4318_v33 }
 0x713   : > { %v4304_v30 = vadd.f32 %v4303_v51, %v4302_v50  ;;  %6989 = vrsqrt.f32 %v4321_v58 }
 0x714   : > { %v4296_v12 = vrot.slane %v4295_v40, 2  ;;  %6991 = vrsqrt.f32 %v4322_v38 }
 0x715   : > { %v4305_v53 = vrot.slane %v4304_v30, 2 }
 0x716   : > { %v4297_v15 = vadd.f32 %v4296_v12, %v4295_v40 }
 0x717   : > { %v4306_v6 = vadd.f32 %v4305_v53, %v4304_v30 }
 0x718   : > { %v4298_v18 = vrot.slane %v4297_v15, 1 }
 0x719   : > { %v4307_v24 = vrot.slane %v4306_v6, 1  ;;  %v6982_v11 = vpop.eup %6981 }
 0x71a   : > { %v4299_v61 = vadd.f32 %v4298_v18, %v4297_v15  ;;  %v6984_v3 = vpop.eup %6983 }
 0x71b   : > { %v4308_v50 = vadd.f32 %v4307_v24, %v4306_v6  ;;  %v6986_v1 = vpop.eup %6985  ;;  %v4342_v32 = vcombine.low %v6982_v11, %v6984_v3 }
 0x71c   : > { %v4315_v7 = vmul.f32 0.03125, %v4299_v61  ;;  %v6988_v55 = vpop.eup %6987 }
 0x71d   : > { %v4316_v42 = vmul.f32 0.03125, %v4308_v50  ;;  %v6990_v36 = vpop.eup %6989  ;;  %v4341_v48 = vcombine.low %v6986_v1, %v6988_v55  ;;  %v4358_v9 = vrot.slane %v4342_v32, %v7771_v63 }
 0x71e   : > { %v4323_v59 = vadd.f32 0.8, %v4315_v7  ;;  %v6992_v21 = vpop.eup %6991 }
 0x71f   : > { %v4324_v8 = vadd.f32 0.8, %v4316_v42  ;;  %v4343_v10 = vcombine.low %v6990_v36, %v6992_v21  ;;  %v4351_v51 = vrot.slane %v4341_v48, %v7771_v63 }
 0x720   : > { %6993 = vrsqrt.f32 %v4323_v59 }
 0x721   : > { %6995 = vrsqrt.f32 %v4324_v8  ;;  %v4373_v40 = vcombine.low %v4351_v51, %v4358_v9  ;;  %v4365_v26 = vrot.slane %v4343_v10, %v7771_v63  ;;  %v4092_v9 = vld [vmem:[%s8789_s29] sm:$0xff]  ;;  %s7340_s29 = smov [#allocation16]  }
 0x722   : > { %s7241_s24 = sshll.u32 %s7340_s29, 4  ;;  %s7242_s24 = int_to_ptr.vmem [resolvable:$false] %s7241_s24 }
 0x723   : > { %v4381_v57 = vrot.slane %v4373_v40, %v7771_v63  ;;  %s7243_s20 = scalar_lea.vmem %s7242_s24, 2048  ;;  %p7244_p10 = scmp.lt.s32.totalorder %s8624_s21, %s7242_s24 }
 0x724   : > { %p7245_p2 = scmp.lt.s32.totalorder %s7243_s20, %s7237_s0 }
 0x726   : > { %p7246_p3 = por %p7245_p2, %p7244_p10 }
 0x728   : > { %p7247_p4 = pnand %p7246_p3, %p7240_p0 }
 0x72a   : > { %v6994_v45 = vpop.eup %6993 }
 0x72b   : > { %v6996_v13 = vpop.eup %6995 }
 0x72c   : > { %v4344_v5 = vcombine.low %v6994_v45, %v6996_v13 }
 0x72e   : > { %v4372_v30 = vrot.slane %v4344_v5, %v7771_v63 }
 0x730   : > { %v4374_v46 = vcombine.low %v4365_v26, %v4372_v30  ;;  %v8792_v30 = vld [vmem:[#allocation34_spill] sm:$0xff] }
 0x732   : > { %v4388_v12 = vrot.slane %v4374_v46, %v7771_v63 }
 0x734   : > { %v4389_v17 = vcombine.low %v4381_v57, %v4388_v12  ;;  %v8793_v57 = vld [vmem:[#allocation33_spill] sm:$0xff] }
 0x736   : > { %v4391_v53 = vmul.f32 %v4389_v17, %v4091_v16  ;;  %v8796_v17 = vld [vmem:[#allocation41_spill] sm:$0xff] }
 0x738   : > { %v4396_v27 = vrot.slane %v4391_v53, %v7731_v34  ;;  %v4400_v15 = vrot.slane %v4391_v53, %v7734_v37  ;;  %v4404_v33 = vrot.slane %v4391_v53, %v7873_v28  ;;  %v8344_v6 = vrot.slane %v4391_v53, %v7880_v44 }
 0x739   : > { %v4412_v58 = vrot.slane %v4391_v53, %v8139_v49  ;;  %v4416_v18 = vrot.slane %v4391_v53, %v8152_v60  ;;  %v8349_v38 = vrot.slane %v4391_v53, %v8258_v41  ;;  %v8352_v24 = vrot.slane %v4391_v53, %v8267_v25  ;;  %v8797_v53 = vld [vmem:[#allocation44_spill] sm:$0xff] }
 0x73a   : > { %v4433_v61 = vmul.f32 %v4396_v27, %v8217_v0  ;;  %v4434_v50 = vmul.f32 %v4400_v15, %v8225_v22  ;;  %v4435_v7 = vmul.f32 %v4404_v33, %v8219_v31  ;;  %v4436_v42 = vmul.f32 %v8344_v6, %v8227_v56 }
 0x73b   : > { %v4437_v59 = vmul.f32 %v4412_v58, %v8235_v23  ;;  %v4438_v8 = vmul.f32 %v4416_v18, %v8251_v52  ;;  %v4439_v11 = vmul.f32 %v8349_v38, %v8311_v39  ;;  %v4440_v3 = vmul.f32 %v8352_v24, %v8313_v14 }
 0x73c   : > { %v4449_v1 = vcombine.low %v4433_v61, %v4434_v50  ;;  %v4450_v55 = vcombine.low %v4435_v7, %v4436_v42  ;;  %v4531_v14 = vmul.f32 %v8307_v29, %v8352_v24  ;;  %v4501_v48 = vmul.f32 %v4400_v15, %v8103_v47  ;;  %v8790_v29 = vld [vmem:[#allocation31_spill] sm:$0xff]  ;;  %v8791_v47 = vld [vmem:[#allocation36_spill] sm:$0xff]  ;;  %v8800_v42 = vld [vmem:[#allocation37_spill] sm:$0xff] }
 0x73d   : > { %v4451_v0 = vcombine.low %v4437_v59, %v4438_v8  ;;  %v4452_v36 = vcombine.low %v4439_v11, %v4440_v3  ;;  %v4509_v45 = vmul.f32 %v4400_v15, %v8107_v19  ;;  %v4500_v10 = vmul.f32 %v4396_v27, %v8101_v62  ;;  %v8794_v62 = vld [vmem:[#allocation32_spill] sm:$0xff]  ;;  %v8799_v50 = vld [vmem:[#allocation39_spill] sm:$0xff]  ;;  %v8801_v8 = vld [vmem:[#allocation45_spill] sm:$0xff] }
 0x73e   : > { %v4459_v22 = vrot.slane %v4449_v1, %v7771_v63  ;;  %v4466_v31 = vrot.slane %v4450_v55, %v7771_v63  ;;  %v4508_v13 = vmul.f32 %v4396_v27, %v8105_v2  ;;  %v4517_v51 = vmul.f32 %v4400_v15, %v8111_v43  ;;  %v8795_v2 = vld [vmem:[#allocation35_spill] sm:$0xff] }
 0x73f   : > { %v4473_v56 = vrot.slane %v4451_v0, %v7771_v63  ;;  %v4480_v23 = vrot.slane %v4452_v36, %v7771_v63  ;;  %v4525_v5 = vmul.f32 %v4400_v15, %v8115_v35  ;;  %v4516_v40 = vmul.f32 %v4396_v27, %v8109_v54  ;;  %v8798_v15 = vld [vmem:[#allocation42_spill] sm:$0xff]  ;;  %v8802_v3 = vld [vmem:[#allocation47_spill] sm:$0xff]  ;;  %v8803_v36 = vld [vmem:[#allocation40_spill] sm:$0xff] }
 0x740   : > { %v4481_v32 = vcombine.low %v4459_v22, %v4466_v31  ;;  %v4524_v26 = vmul.f32 %v4396_v27, %v8790_v29  ;;  %v4503_v19 = vmul.f32 %v8791_v47, %v8344_v6  ;;  %v4511_v46 = vmul.f32 %v8792_v30, %v8344_v6 }
 0x741   : > { %v4482_v52 = vcombine.low %v4473_v56, %v4480_v23  ;;  %v4502_v12 = vmul.f32 %v8793_v57, %v4404_v33  ;;  %v8390_v16 = vmul.f32 %v8794_v62, %v4404_v33  ;;  %v8393_v43 = vmul.f32 %v8795_v2, %v4404_v33  ;;  %v8804_v56 = vld [vmem:[#allocation46_spill] sm:$0xff] }
 0x742   : > { %v4489_v21 = vrot.slane %v4481_v32, %v7771_v63  ;;  %v8398_v54 = vmul.f32 %v8796_v17, %v4404_v33  ;;  %v8401_v27 = vmul.f32 %v8797_v53, %v4416_v18  ;;  %v8404_v61 = vmul.f32 %v8798_v15, %v4416_v18 }
 0x743   : > { %v4496_v39 = vrot.slane %v4482_v52, %v7771_v63  ;;  %v8407_v7 = vmul.f32 %v8799_v50, %v4412_v58  ;;  %v8410_v59 = vmul.f32 %v8800_v42, %v4412_v58  ;;  %v8413_v11 = vmul.f32 %v8801_v8, %v4416_v18 }
 0x744   : > { %v8416_v1 = vmul.f32 %v8802_v3, %v4416_v18  ;;  %v8427_v22 = vmul.f32 %v8803_v36, %v4412_v58  ;;  %v8442_v23 = vmul.f32 %v8291_v20, %v8352_v24 }
 0x745   : > { %v4497_v63 = vcombine.low %v4489_v21, %v4496_v39 }
 0x747   : > { %v8395_v35 = vsub.f32 %v4092_v9, %v4497_v63 }
 0x749   : > { %v8420_v33 = vrot.slane %v8395_v35, %v8267_v25  ;;  %v4540_v55 = vrot.slane %v8395_v35, %v7734_v37  ;;  %v4536_v0 = vrot.slane %v8395_v35, %v7731_v34  ;;  %v8431_v31 = vrot.slane %v8395_v35, %v7880_v44 }
 0x74a   : > { %v8435_v18 = vrot.slane %v8395_v35, %v7873_v28  ;;  %v8438_v25 = vmul.f32 %v8804_v56, %v4412_v58  ;;  %v8459_v56 = vrot.slane %v8395_v35, %v8152_v60  ;;  %v8805_v60 = vld [vmem:[#allocation49_spill] sm:$0xff] }
 0x74b   : > { %v8445_v32 = vadd.f32 %v8420_v33, %v4531_v14  ;;  %v4574_v52 = vadd.f32 %v4540_v55, %v4501_v48  ;;  %v4582_v21 = vadd.f32 %v4540_v55, %v4509_v45  ;;  %v4573_v39 = vadd.f32 %v4536_v0, %v4500_v10  ;;  %v6825_v48 = vld [vmem:[#allocation14 + $0x100] ss:$8 sps:$4 sm:$0xff]  }
 0x74c   : > { %v4581_v9 = vadd.f32 %v4536_v0, %v4508_v13  ;;  %v4590_v44 = vadd.f32 %v4540_v55, %v4517_v51  ;;  %v4598_v63 = vadd.f32 %v4540_v55, %v4525_v5  ;;  %v4589_v29 = vadd.f32 %v4536_v0, %v4516_v40  ;;  %v6830_v40 = vld [vmem:[#allocation14 + $0x114] ss:$8 sps:$4 sm:$0xff]   ;;  %v6828_v55 = vld [vmem:[#allocation14 + $0x110] ss:$8 sps:$4 sm:$0xff]  }
 0x74d   : > { %vm4606_vm3 = vcmp.ge.f32.partialorder %v4574_v52, 0.0  ;;  %vm4614_vm4 = vcmp.ge.f32.partialorder %v4582_v21, 0.0  ;;  %v4638_v28 = vmul.f32 0.2, %v4574_v52  ;;  %v4646_v47 = vmul.f32 0.2, %v4582_v21 }
 0x74e   : > { %vm4605_vm5 = vcmp.ge.f32.partialorder %v4573_v39, 0.0  ;;  %vm4613_vm6 = vcmp.ge.f32.partialorder %v4581_v9, 0.0  ;;  %v4637_v58 = vmul.f32 0.2, %v4573_v39  ;;  %v4645_v30 = vmul.f32 0.2, %v4581_v9 }
 0x74f   : > { %v4670_v20 = vsel %vm4606_vm3, %v4574_v52, %v4638_v28  ;;  %v4678_v57 = vsel %vm4614_vm4, %v4582_v21, %v4646_v47  ;;  %vm4622_vm7 = vcmp.ge.f32.partialorder %v4590_v44, 0.0  ;;  %vm4630_vm8 = vcmp.ge.f32.partialorder %v4598_v63, 0.0 }
 0x750   : > { %v4702_v14 = vpack.c.bf16 %v4678_v57, %v4670_v20  ;;  %v4669_v45 = vsel %vm4605_vm5, %v4573_v39, %v4637_v58  ;;  %v4677_v10 = vsel %vm4613_vm6, %v4581_v9, %v4645_v30  ;;  %v4654_v13 = vmul.f32 0.2, %v4590_v44  ;;  %v6836_v30 = vld [vmem:[#allocation14 + $0x134] ss:$8 sps:$4 sm:$0xff]  }
 0x751   : > { %v4701_v51 = vpack.c.bf16 %v4677_v10, %v4669_v45  ;;  %v4662_v5 = vmul.f32 0.2, %v4598_v63  ;;  %v4597_v62 = vadd.f32 %v4536_v0, %v4524_v26  ;;  %vm4621_vm9 = vcmp.ge.f32.partialorder %v4589_v29, 0.0  ;;  %v8807_v10 = vld [vmem:[#allocation51_spill] sm:$0xff] }
 0x752   : > { %5529 = vmatprep.mubr.bf16.mxu0 %v4702_v14  ;;  %v4686_v2 = vsel %vm4622_vm7, %v4590_v44, %v4654_v13  ;;  %v4653_v17 = vmul.f32 0.2, %v4589_v29  ;;  %v4576_v53 = vadd.f32 %v8431_v31, %v4503_v19  ;;  %v4584_v15 = vadd.f32 %v8431_v31, %v4511_v46  ;;  %v6833_v19 = vld [vmem:[#allocation14 + $0x124] ss:$8 sps:$4 sm:$0xff]   ;;  %v6831_v44 = vld [vmem:[#allocation14 + $0x120] ss:$8 sps:$4 sm:$0xff]  }
 0x753   : > { %5530 = vmatmul.mubr.bf16.vlgmr.msra.gmra.mrb[20].mxu0 %v4701_v51  ;;  %v4694_v50 = vsel %vm4630_vm8, %v4598_v63, %v4662_v5  ;;  %vm4629_vm10 = vcmp.ge.f32.partialorder %v4597_v62, 0.0  ;;  %v4661_v42 = vmul.f32 0.2, %v4597_v62  ;;  %v4575_v8 = vadd.f32 %v8435_v18, %v4502_v12 }
 0x754   : > { %5551 = vmatpush1.bf16.msra.mxu0 %v6825_v48  ;;  %v4710_v3 = vpack.c.bf16 %v4694_v50, %v4686_v2  ;;  %vm4608_vm11 = vcmp.ge.f32.partialorder %v4576_v53, 0.0  ;;  %vm4616_vm12 = vcmp.ge.f32.partialorder %v4584_v15, 0.0  ;;  %v8453_v26 = vmul.f32 %v8285_v4, %v8352_v24 }
 0x755   : > { %5552 = vmatprep.subr.bf16.mxu0 %v6830_v40  ;;  %v4640_v0 = vmul.f32 0.2, %v4576_v53  ;;  %v4648_v46 = vmul.f32 0.2, %v4584_v15  ;;  %v4583_v36 = vadd.f32 %v8435_v18, %v8390_v16  ;;  %v4685_v12 = vsel %vm4621_vm9, %v4589_v29, %v4653_v17  ;;  %v8806_v29 = vld [vmem:[#allocation48_spill] sm:$0xff] }
 0x756   : > { %5539 = vmatprep.mubr.bf16.mxu0 %v4710_v3  ;;  %v4693_v52 = vsel %vm4629_vm10, %v4597_v62, %v4661_v42  ;;  %vm4607_vm13 = vcmp.ge.f32.partialorder %v4575_v8, 0.0  ;;  %v4639_v21 = vmul.f32 0.2, %v4575_v8  ;;  %v4552_v16 = vrot.slane %v8395_v35, %v8139_v49  ;;  %v6839_v62 = vld [vmem:[#allocation14 + $0x144] ss:$8 sps:$4 sm:$0xff]  }
 0x757   : > { %v4672_v4 = vsel %vm4608_vm11, %v4576_v53, %v4640_v0  ;;  %v4680_v39 = vsel %vm4616_vm12, %v4584_v15, %v4648_v46  ;;  %vm4615_vm14 = vcmp.ge.f32.partialorder %v4583_v36, 0.0  ;;  %v4647_v9 = vmul.f32 0.2, %v4583_v36 }
 0x758   : > { %5553 = vmatpush1.bf16.msra.mxu0 %v6828_v55  ;;  %v8463_v63 = vsel %vm4607_vm13, %v4575_v8, %v4639_v21  ;;  %v8469_v28 = vmul.f32 %v8805_v60, %v8349_v38  ;;  %v8473_v47 = vmul.f32 %v8806_v29, %v8349_v38  ;;  %v4709_v58 = vpack.c.bf16 %v4693_v52, %v4685_v12  ;;  %v6837_v55 = vld [vmem:[#allocation14 + $0x140] ss:$8 sps:$4 sm:$0xff]  }
 0x759   : > { %5554 = vmatprep.subr.bf16.mxu0 %v6833_v19  ;;  %v8475_v20 = vsel %vm4615_vm14, %v4583_v36, %v4647_v9  ;;  %v4591_v57 = vadd.f32 %v8435_v18, %v8393_v43  ;;  %v4599_v14 = vadd.f32 %v8435_v18, %v8398_v54  ;;  %v4704_v49 = vpack.c.bf16 %v4680_v39, %v4672_v4  ;;  %v8808_v43 = vld [vmem:[#allocation50_spill] sm:$0xff] }
 0x75a   : > { %v4703_v48 = vpack.c.bf16 %v8475_v20, %v8463_v63  ;;  %v4578_v45 = vadd.f32 %v8459_v56, %v8401_v27  ;;  %v8487_v13 = vmul.f32 %v8807_v10, %v8352_v24  ;;  %v8491_v5 = vmul.f32 %v8808_v43, %v8349_v38  ;;  %v6834_v54 = vld [vmem:[#allocation14 + $0x130] ss:$8 sps:$4 sm:$0xff]   ;;  %v8809_v27 = vld [vmem:[#allocation52_spill] sm:$0xff]  ;;  %v6842_v19 = vld [vmem:[#allocation14 + $0x154] ss:$8 sps:$4 sm:$0xff]  }
 0x75b   : > { %5540 = vmatmul.mubr.bf16.gmra.mrb[24].mxu0 %v4709_v58  ;;  %vm4623_vm15 = vcmp.ge.f32.partialorder %v4591_v57, 0.0  ;;  %vm4631_vm0 = vcmp.ge.f32.partialorder %v4599_v14, 0.0  ;;  %v4655_v51 = vmul.f32 0.2, %v4591_v57  ;;  %v4663_v18 = vmul.f32 0.2, %v4599_v14 }
 0x75c   : > { %5555 = vmatpush1.bf16.msra.mxu0 %v6831_v44  ;;  %5582 = vmatprep.mubr.bf16.mxu0 %v4704_v49  ;;  %v4586_v40 = vadd.f32 %v8459_v56, %v8404_v61  ;;  %vm4610_vm1 = vcmp.ge.f32.partialorder %v4578_v45, 0.0  ;;  %v4530_v24 = vmul.f32 %v8809_v27, %v8349_v38  ;;  %v4642_v17 = vmul.f32 0.2, %v4578_v45  ;;  %v6840_v4 = vld [vmem:[#allocation14 + $0x150] ss:$8 sps:$4 sm:$0xff]  }
 0x75d   : > { %5556 = vmatprep.subr.bf16.mxu0 %v6836_v30  ;;  %v8497_v2 = vsel %vm4623_vm15, %v4591_v57, %v4655_v51  ;;  %v4577_v53 = vadd.f32 %v4552_v16, %v8407_v7  ;;  %v4560_v15 = vrot.slane %v8395_v35, %v8258_v41  ;;  %v8503_v50 = vsel %vm4631_vm0, %v4599_v14, %v4663_v18  ;;  %v6843_v49 = vld [vmem:[#allocation14 + $0x160] ss:$8 sps:$4 sm:$0xff]   ;;  %v6848_v51 = vld [vmem:[#allocation14 + $0x174] ss:$8 sps:$4 sm:$0xff]   ;;  %v6846_v27 = vld [vmem:[#allocation14 + $0x170] ss:$8 sps:$4 sm:$0xff]  }
 0x75e   : > { %vm4618_vm2 = vcmp.ge.f32.partialorder %v4586_v40, 0.0  ;;  %v4650_v42 = vmul.f32 0.2, %v4586_v40  ;;  %v4585_v61 = vadd.f32 %v4552_v16, %v8410_v59  ;;  %v4711_v38 = vpack.c.bf16 %v8503_v50, %v8497_v2  ;;  %v6882_v63 = vld [vmem:[#allocation14 + $0x230] ss:$8 sps:$4 sm:$0xff]  }
 0x75f   : > { %v8508_v8 = vsel %vm4610_vm1, %v4578_v45, %v4642_v17  ;;  %vm4609_vm3 = vcmp.ge.f32.partialorder %v4577_v53, 0.0  ;;  %v4641_v3 = vmul.f32 0.2, %v4577_v53  ;;  %v4594_v35 = vadd.f32 %v8459_v56, %v8413_v11  ;;  %v6887_v20 = vld [vmem:[#allocation14 + $0x244] ss:$8 sps:$4 sm:$0xff]  }
 0x760   : > { %5557 = vmatpush1.bf16.msra.mxu0 %v6834_v54  ;;  %v8510_v7 = vsel %vm4618_vm2, %v4586_v40, %v4650_v42  ;;  %vm4617_vm4 = vcmp.ge.f32.partialorder %v4585_v61, 0.0  ;;  %v4649_v41 = vmul.f32 0.2, %v4585_v61  ;;  %v4602_v46 = vadd.f32 %v8459_v56, %v8416_v1  ;;  %v6896_v2 = vld [vmem:[#allocation14 + $0x274] ss:$8 sps:$4 sm:$0xff]  }
 0x761   : > { %5558 = vmatprep.subr.bf16.mxu0 %v6839_v62  ;;  %v4706_v59 = vpack.c.bf16 %v8510_v7, %v8508_v8  ;;  %v8516_v0 = vsel %vm4609_vm3, %v4577_v53, %v4641_v3  ;;  %v4593_v36 = vadd.f32 %v4552_v16, %v8427_v22  ;;  %vm4626_vm5 = vcmp.ge.f32.partialorder %v4594_v35, 0.0  ;;  %v6845_v22 = vld [vmem:[#allocation14 + $0x164] ss:$8 sps:$4 sm:$0xff]   ;;  %v6894_v50 = vld [vmem:[#allocation14 + $0x270] ss:$8 sps:$4 sm:$0xff]  }
 0x762   : > { %v8521_v12 = vsel %vm4617_vm4, %v4585_v61, %v4649_v41  ;;  %v4658_v52 = vmul.f32 0.2, %v4594_v35  ;;  %v4601_v21 = vadd.f32 %v4552_v16, %v8438_v25  ;;  %vm4634_vm6 = vcmp.ge.f32.partialorder %v4602_v46, 0.0  ;;  %v6851_v62 = vld [vmem:[#allocation14 + $0x184] ss:$8 sps:$4 sm:$0xff]  }
 0x763   : > { %v4705_v11 = vpack.c.bf16 %v8521_v12, %v8516_v0  ;;  %v4666_v39 = vmul.f32 0.2, %v4602_v46  ;;  %vm4625_vm7 = vcmp.ge.f32.partialorder %v4593_v36, 0.0  ;;  %v4657_v1 = vmul.f32 0.2, %v4593_v36 }
 0x764   : > { %5559 = vmatpush1.bf16.msra.mxu0 %v6837_v55  ;;  %v8526_v9 = vsel %vm4626_vm5, %v4594_v35, %v4658_v52  ;;  %vm4633_vm8 = vcmp.ge.f32.partialorder %v4601_v21, 0.0  ;;  %v4665_v56 = vmul.f32 0.2, %v4601_v21  ;;  %v4580_v25 = vadd.f32 %v8420_v33, %v8442_v23  ;;  %v6849_v41 = vld [vmem:[#allocation14 + $0x180] ss:$8 sps:$4 sm:$0xff]  }
 0x765   : > { %5560 = vmatprep.subr.bf16.mxu0 %v6842_v19  ;;  %v8528_v44 = vsel %vm4634_vm6, %v4602_v46, %v4666_v39  ;;  %v4588_v16 = vadd.f32 %v8420_v33, %v8453_v26  ;;  %v4579_v60 = vadd.f32 %v4560_v15, %v8469_v28  ;;  %v8537_v58 = vsel %vm4625_vm7, %v4593_v36, %v4657_v1  ;;  %v6854_v19 = vld [vmem:[#allocation14 + $0x194] ss:$8 sps:$4 sm:$0xff]   ;;  %v6852_v36 = vld [vmem:[#allocation14 + $0x190] ss:$8 sps:$4 sm:$0xff]   ;;  %v6855_v52 = vld [vmem:[#allocation14 + $0x1a0] ss:$8 sps:$4 sm:$0xff]  }
 0x766   : > { %v4714_v29 = vpack.c.bf16 %v8528_v44, %v8526_v9  ;;  %v8539_v30 = vsel %vm4633_vm8, %v4601_v21, %v4665_v56  ;;  %v4587_v57 = vadd.f32 %v4560_v15, %v8473_v47  ;;  %vm4612_vm9 = vcmp.ge.f32.partialorder %v4580_v25, 0.0  ;;  %v6860_v21 = vld [vmem:[#allocation14 + $0x1b4] ss:$8 sps:$4 sm:$0xff]   ;;  %v6863_v39 = vld [vmem:[#allocation14 + $0x1c4] ss:$8 sps:$4 sm:$0xff]  }
 0x767   : > { %v4713_v14 = vpack.c.bf16 %v8539_v30, %v8537_v58  ;;  %vm4620_vm10 = vcmp.ge.f32.partialorder %v4588_v16, 0.0  ;;  %v4644_v23 = vmul.f32 0.2, %v4580_v25  ;;  %v4652_v26 = vmul.f32 0.2, %v4588_v16 }
 0x768   : > { %5561 = vmatpush1.bf16.msra.mxu0 %v6840_v4  ;;  %v4596_v28 = vadd.f32 %v8420_v33, %v8487_v13  ;;  %v4595_v45 = vadd.f32 %v4560_v15, %v8491_v5  ;;  %v4603_v10 = vadd.f32 %v4560_v15, %v4530_v24  ;;  %vm4611_vm11 = vcmp.ge.f32.partialorder %v4579_v60, 0.0  ;;  %v6858_v4 = vld [vmem:[#allocation14 + $0x1b0] ss:$8 sps:$4 sm:$0xff]   ;;  %v6861_v1 = vld [vmem:[#allocation14 + $0x1c0] ss:$8 sps:$4 sm:$0xff]  }
 0x769   : > { %5562 = vmatprep.subr.bf16.mxu0 %v6845_v22  ;;  %v8547_v43 = vsel %vm4612_vm9, %v4580_v25, %v4644_v23  ;;  %vm4619_vm12 = vcmp.ge.f32.partialorder %v4587_v57, 0.0  ;;  %v4643_v47 = vmul.f32 0.2, %v4579_v60  ;;  %v8549_v54 = vsel %vm4620_vm10, %v4588_v16, %v4652_v26  ;;  %v6866_v56 = vld [vmem:[#allocation14 + $0x1d4] ss:$8 sps:$4 sm:$0xff]  }
 0x76a   : > { %v4651_v18 = vmul.f32 0.2, %v4587_v57  ;;  %vm4628_vm13 = vcmp.ge.f32.partialorder %v4596_v28, 0.0  ;;  %vm4636_vm14 = vcmp.ge.f32.partialorder %v8445_v32, 0.0  ;;  %v4708_v40 = vpack.c.bf16 %v8549_v54, %v8547_v43  ;;  %v6864_v22 = vld [vmem:[#allocation14 + $0x1d0] ss:$8 sps:$4 sm:$0xff]  }
 0x76b   : > { %v8554_v33 = vsel %vm4611_vm11, %v4579_v60, %v4643_v47  ;;  %v4660_v13 = vmul.f32 0.2, %v4596_v28  ;;  %v4668_v5 = vmul.f32 0.2, %v8445_v32  ;;  %vm4627_vm15 = vcmp.ge.f32.partialorder %v4595_v45, 0.0  ;;  %v8810_v16 = vld [vmem:[#allocation38_spill] sm:$0xff] }
 0x76c   : > { %5563 = vmatpush1.bf16.msra.mxu0 %v6843_v49  ;;  %v8557_v24 = vsel %vm4619_vm12, %v4587_v57, %v4651_v18  ;;  %vm4635_vm0 = vcmp.ge.f32.partialorder %v4603_v10, 0.0  ;;  %v4659_v42 = vmul.f32 0.2, %v4595_v45  ;;  %v4667_v3 = vmul.f32 0.2, %v4603_v10  ;;  %v8811_v57 = vld [vmem:[#allocation43_spill] sm:$0xff] }
 0x76d   : > { %5564 = vmatprep.subr.bf16.mxu0 %v6848_v51  ;;  %v4707_v17 = vpack.c.bf16 %v8557_v24, %v8554_v33  ;;  %v8561_v53 = vsel %vm4628_vm13, %v4596_v28, %v4660_v13  ;;  %v8564_v15 = vsel %vm4636_vm14, %v8445_v32, %v4668_v5  ;;  %v6857_v32 = vld [vmem:[#allocation14 + $0x1a4] ss:$8 sps:$4 sm:$0xff]   ;;  %v4519_v60 = vmul.f32 %v8810_v16, %v8344_v6  ;;  %v6867_v28 = vld [vmem:[#allocation14 + $0x1e0] ss:$8 sps:$4 sm:$0xff]   ;;  %v6870_v47 = vld [vmem:[#allocation14 + $0x1f0] ss:$8 sps:$4 sm:$0xff]  }
 0x76e   : > { %v4716_v61 = vpack.c.bf16 %v8564_v15, %v8561_v53  ;;  %v8568_v55 = vsel %vm4627_vm15, %v4595_v45, %v4659_v42  ;;  %v8570_v35 = vsel %vm4635_vm0, %v4603_v10, %v4667_v3  ;;  %v6869_v25 = vld [vmem:[#allocation14 + $0x1e4] ss:$8 sps:$4 sm:$0xff]   ;;  %v4527_v23 = vmul.f32 %v8811_v57, %v8344_v6  ;;  %v6872_v45 = vld [vmem:[#allocation14 + $0x1f4] ss:$8 sps:$4 sm:$0xff]   ;;  %v6873_v6 = vld [vmem:[#allocation14 + $0x200] ss:$8 sps:$4 sm:$0xff]  }
 0x76f   : > { %v4715_v46 = vpack.c.bf16 %v8570_v35, %v8568_v55  ;;  %v4592_v49 = vadd.f32 %v8431_v31, %v4519_v60  ;;  %v6875_v18 = vld [vmem:[#allocation14 + $0x204] ss:$8 sps:$4 sm:$0xff]   ;;  %v6879_v3 = vld [vmem:[#allocation14 + $0x220] ss:$8 sps:$4 sm:$0xff]   ;;  %v6902_v7 = vld [vmem:[#allocation14 + $0x294] ss:$8 sps:$4 sm:$0xff]  }
 0x770   : > { %5565 = vmatpush1.bf16.msra.mxu0 %v6846_v27  ;;  %v4600_v26 = vadd.f32 %v8431_v31, %v4527_v23  ;;  %v6878_v27 = vld [vmem:[#allocation14 + $0x214] ss:$8 sps:$4 sm:$0xff]   ;;  %v6876_v31 = vld [vmem:[#allocation14 + $0x210] ss:$8 sps:$4 sm:$0xff]   ;;  %v6881_v42 = vld [vmem:[#allocation14 + $0x224] ss:$8 sps:$4 sm:$0xff]  }
 0x771   : > { %5566 = vmatprep.subr.bf16.mxu0 %v6851_v62  ;;  %v4656_v10 = vmul.f32 0.2, %v4592_v49  ;;  %vm4624_vm1 = vcmp.ge.f32.partialorder %v4592_v49, 0.0  ;;  %v6897_v8 = vld [vmem:[#allocation14 + $0x280] ss:$8 sps:$4 sm:$0xff]  }
 0x772   : > { %v4664_v51 = vmul.f32 0.2, %v4600_v26  ;;  %vm4632_vm2 = vcmp.ge.f32.partialorder %v4600_v26, 0.0  ;;  %v6912_v16 = vld [vmem:[#allocation14 + $0x2d0] ss:$8 sps:$4 sm:$0xff]  }
 0x773   : > { %v4688_v13 = vsel %vm4624_vm1, %v4592_v49, %v4656_v10  ;;  %v6917_v60 = vld [vmem:[#allocation14 + $0x2e4] ss:$8 sps:$4 sm:$0xff]   ;;  %v6915_v57 = vld [vmem:[#allocation14 + $0x2e0] ss:$8 sps:$4 sm:$0xff]   ;;  %v6920_v23 = vld [vmem:[#allocation14 + $0x2f4] ss:$8 sps:$4 sm:$0xff]  }
 0x774   : > { %5567 = vmatpush1.bf16.msra.mxu0 %v6849_v41  ;;  %v4696_v5 = vsel %vm4632_vm2, %v4600_v26, %v4664_v51  ;;  %v6884_v41 = vld [vmem:[#allocation14 + $0x234] ss:$8 sps:$4 sm:$0xff]   ;;  %v6918_v49 = vld [vmem:[#allocation14 + $0x2f0] ss:$8 sps:$4 sm:$0xff]   ;;  %v6923_v26 = vld [vmem:[#allocation14 + $0x304] ss:$8 sps:$4 sm:$0xff]  }
 0x775   : > { %5568 = vmatprep.subr.bf16.mxu0 %v6854_v19  ;;  %v4712_v62 = vpack.c.bf16 %v4696_v5, %v4688_v13  ;;  %v6890_v19 = vld [vmem:[#allocation14 + $0x254] ss:$8 sps:$4 sm:$0xff]   ;;  %v6924_v10 = vld [vmem:[#allocation14 + $0x310] ss:$8 sps:$4 sm:$0xff]   ;;  %v6929_v51 = vld [vmem:[#allocation14 + $0x324] ss:$8 sps:$4 sm:$0xff]  }
 0x776   : > { %v6930_v0 = vld [vmem:[#allocation14 + $0x330] ss:$8 sps:$4 sm:$0xff]   ;;  %v6935_v12 = vld [vmem:[#allocation14 + $0x344] ss:$8 sps:$4 sm:$0xff]   ;;  %v6938_v9 = vld [vmem:[#allocation14 + $0x354] ss:$8 sps:$4 sm:$0xff]  }
 0x777   : > { %v6936_v44 = vld [vmem:[#allocation14 + $0x350] ss:$8 sps:$4 sm:$0xff]   ;;  %v6939_v13 = vld [vmem:[#allocation14 + $0x360] ss:$8 sps:$4 sm:$0xff]   ;;  %v6944_v58 = vld [vmem:[#allocation14 + $0x374] ss:$8 sps:$4 sm:$0xff]  }
 0x778   : > { %5569 = vmatpush1.bf16.msra.mxu0 %v6852_v36  ;;  %v6888_v36 = vld [vmem:[#allocation14 + $0x250] ss:$8 sps:$4 sm:$0xff]   ;;  %v6945_v43 = vld [vmem:[#allocation14 + $0x380] ss:$8 sps:$4 sm:$0xff]   ;;  %v6950_v54 = vld [vmem:[#allocation14 + $0x394] ss:$8 sps:$4 sm:$0xff]  }
 0x779   : > { %5570 = vmatprep.subr.bf16.mxu0 %v6857_v32  ;;  %v6893_v32 = vld [vmem:[#allocation14 + $0x264] ss:$8 sps:$4 sm:$0xff]   ;;  %v6942_v30 = vld [vmem:[#allocation14 + $0x370] ss:$8 sps:$4 sm:$0xff]  }
 0x77a   : > { %v6953_v5 = vld [vmem:[#allocation14 + $0x3a4] ss:$8 sps:$4 sm:$0xff]  }
 0x77c   : > { %5571 = vmatpush1.bf16.msra.mxu0 %v6855_v52  ;;  %v6891_v52 = vld [vmem:[#allocation14 + $0x260] ss:$8 sps:$4 sm:$0xff]  }
 0x77d   : > { %5572 = vmatprep.subr.bf16.mxu0 %v6860_v21  ;;  %v6905_v21 = vld [vmem:[#allocation14 + $0x2a4] ss:$8 sps:$4 sm:$0xff]  }
 0x780   : > { %5573 = vmatpush1.bf16.msra.mxu0 %v6858_v4  ;;  %v6903_v4 = vld [vmem:[#allocation14 + $0x2a0] ss:$8 sps:$4 sm:$0xff]  }
 0x781   : > { %5574 = vmatprep.subr.bf16.mxu0 %v6863_v39  ;;  %v6908_v39 = vld [vmem:[#allocation14 + $0x2b4] ss:$8 sps:$4 sm:$0xff]  }
 0x784   : > { %5575 = vmatpush1.bf16.msra.mxu0 %v6861_v1  ;;  %v6906_v1 = vld [vmem:[#allocation14 + $0x2b0] ss:$8 sps:$4 sm:$0xff]  }
 0x785   : > { %5576 = vmatprep.subr.bf16.mxu0 %v6866_v56  ;;  %v6911_v56 = vld [vmem:[#allocation14 + $0x2c4] ss:$8 sps:$4 sm:$0xff]  }
 0x788   : > { %5577 = vmatpush1.bf16.msra.mxu0 %v6864_v22  ;;  %v6909_v22 = vld [vmem:[#allocation14 + $0x2c0] ss:$8 sps:$4 sm:$0xff]  }
 0x789   : > { %5578 = vmatprep.subr.bf16.mxu0 %v6869_v25  ;;  %v6914_v25 = vld [vmem:[#allocation14 + $0x2d4] ss:$8 sps:$4 sm:$0xff]  }
 0x78c   : > { %5579 = vmatpush1.bf16.msra.mxu0 %v6867_v28  ;;  %v6921_v28 = vld [vmem:[#allocation14 + $0x300] ss:$8 sps:$4 sm:$0xff]  }
 0x78d   : > { %5580 = vmatprep.subr.bf16.mxu0 %v6872_v45  ;;  %v6926_v45 = vld [vmem:[#allocation14 + $0x314] ss:$8 sps:$4 sm:$0xff]  }
 0x790   : > { %5581 = vmatpush1.bf16.msra.mxu0 %v6870_v47  ;;  %v6927_v47 = vld [vmem:[#allocation14 + $0x320] ss:$8 sps:$4 sm:$0xff]  }
 0x791   : > { %5603 = vmatprep.subr.bf16.mxu0 %v6875_v18  ;;  %v6932_v18 = vld [vmem:[#allocation14 + $0x334] ss:$8 sps:$4 sm:$0xff]  }
 0x793   : > { %5583 = vmatmul.mubr.bf16.vlgmr.msra.gmra.mrb[20].mxu0 %v4703_v48  ;;  %v6885_v48 = vld [vmem:[#allocation14 + $0x240] ss:$8 sps:$4 sm:$0xff]  }
 0x794   : > { %5592 = vmatprep.mubr.bf16.mxu0 %v4712_v62  ;;  %5604 = vmatpush1.bf16.msra.mxu0 %v6873_v6  ;;  %v6951_v6 = vld [vmem:[#allocation14 + $0x3a0] ss:$8 sps:$4 sm:$0xff]   ;;  %v6954_v62 = vld [vmem:[#allocation14 + $0x3b0] ss:$8 sps:$4 sm:$0xff]  }
 0x795   : > { %5605 = vmatprep.subr.bf16.mxu0 %v6878_v27  ;;  %v6956_v27 = vld [vmem:[#allocation14 + $0x3b4] ss:$8 sps:$4 sm:$0xff]  }
 0x798   : > { %5606 = vmatpush1.bf16.msra.mxu0 %v6876_v31  ;;  %v6959_v31 = vld [vmem:[#allocation14 + $0x3c4] ss:$8 sps:$4 sm:$0xff]  }
 0x799   : > { %5607 = vmatprep.subr.bf16.mxu0 %v6881_v42  ;;  %v6957_v42 = vld [vmem:[#allocation14 + $0x3c0] ss:$8 sps:$4 sm:$0xff]  }
 0x79b   : > { %5593 = vmatmul.mubr.bf16.gmra.mrb[24].mxu0 %v4711_v38  ;;  %v6899_v38 = vld [vmem:[#allocation14 + $0x284] ss:$8 sps:$4 sm:$0xff]  }
 0x79c   : > { %5608 = vmatpush1.bf16.msra.mxu0 %v6879_v3  ;;  %5635 = vmatprep.mubr.bf16.mxu0 %v4706_v59  ;;  %v6900_v59 = vld [vmem:[#allocation14 + $0x290] ss:$8 sps:$4 sm:$0xff]   ;;  %v6962_v3 = vld [vmem:[#allocation14 + $0x3d4] ss:$8 sps:$4 sm:$0xff]  }
 0x79d   : > { %5609 = vmatprep.subr.bf16.mxu0 %v6884_v41  ;;  %v6960_v41 = vld [vmem:[#allocation14 + $0x3d0] ss:$8 sps:$4 sm:$0xff]  }
 0x7a0   : > { %5610 = vmatpush1.bf16.msra.mxu0 %v6882_v63  ;;  %v6965_v63 = vld [vmem:[#allocation14 + $0x3e4] ss:$8 sps:$4 sm:$0xff]  }
 0x7a1   : > { %5611 = vmatprep.subr.bf16.mxu0 %v6887_v20  ;;  %v6963_v20 = vld [vmem:[#allocation14 + $0x3e0] ss:$8 sps:$4 sm:$0xff]  }
 0x7a4   : > { %5612 = vmatpush1.bf16.msra.mxu0 %v6885_v48  ;;  %v6968_v48 = vld [vmem:[#allocation14 + $0x3f4] ss:$8 sps:$4 sm:$0xff]  }
 0x7a5   : > { %5613 = vmatprep.subr.bf16.mxu0 %v6890_v19  ;;  %v6966_v19 = vld [vmem:[#allocation14 + $0x3f0] ss:$8 sps:$4 sm:$0xff]  }
 0x7a8   : > { %5614 = vmatpush1.bf16.msra.mxu0 %v6888_v36  ;;  %v4845_v36 = vld [vmem:[%s8813_s18] sm:$0x3] }
 0x7a9   : > { %5615 = vmatprep.subr.bf16.mxu0 %v6893_v32  ;;  %v4850_v32 = vrot.slane %v4845_v36, %v7731_v34 }
 0x7ac   : > { %5616 = vmatpush1.bf16.msra.mxu0 %v6891_v52  ;;  %v4854_v52 = vrot.slane %v4845_v36, %v7734_v37 }
 0x7ad   : > { %5617 = vmatprep.subr.bf16.mxu0 %v6896_v2 }
 0x7b0   : > { %5618 = vmatpush1.bf16.msra.mxu0 %v6894_v50 }
 0x7b1   : > { %5619 = vmatprep.subr.bf16.mxu0 %v6899_v38 }
 0x7b4   : > { %5620 = vmatpush1.bf16.msra.mxu0 %v6897_v8 }
 0x7b5   : > { %5621 = vmatprep.subr.bf16.mxu0 %v6902_v7 }
 0x7b8   : > { %5622 = vmatpush1.bf16.msra.mxu0 %v6900_v59 }
 0x7b9   : > { %5623 = vmatprep.subr.bf16.mxu0 %v6905_v21 }
 0x7bc   : > { %5624 = vmatpush1.bf16.msra.mxu0 %v6903_v4 }
 0x7bd   : > { %5625 = vmatprep.subr.bf16.mxu0 %v6908_v39 }
 0x7c0   : > { %5626 = vmatpush1.bf16.msra.mxu0 %v6906_v1 }
 0x7c1   : > { %5627 = vmatprep.subr.bf16.mxu0 %v6911_v56 }
 0x7c4   : > { %5628 = vmatpush1.bf16.msra.mxu0 %v6909_v22 }
 0x7c5   : > { %5629 = vmatprep.subr.bf16.mxu0 %v6914_v25 }
 0x7c8   : > { %5630 = vmatpush1.bf16.msra.mxu0 %v6912_v16 }
 0x7c9   : > { %5631 = vmatprep.subr.bf16.mxu0 %v6917_v60 }
 0x7cc   : > { %5632 = vmatpush1.bf16.msra.mxu0 %v6915_v57 }
 0x7cd   : > { %5633 = vmatprep.subr.bf16.mxu0 %v6920_v23 }
 0x7d0   : > { %5634 = vmatpush1.bf16.msra.mxu0 %v6918_v49 }
 0x7d1   : > { %5656 = vmatprep.subr.bf16.mxu0 %v6923_v26 }
 0x7d3   : > { %5636 = vmatmul.mubr.bf16.vlgmr.msra.gmra.mrb[20].mxu0 %v4705_v11  ;;  %v6933_v11 = vld [vmem:[#allocation14 + $0x340] ss:$8 sps:$4 sm:$0xff]  }
 0x7d4   : > { %5645 = vmatprep.mubr.bf16.mxu0 %v4714_v29  ;;  %5657 = vmatpush1.bf16.msra.mxu0 %v6921_v28  ;;  %v6941_v29 = vld [vmem:[#allocation14 + $0x364] ss:$8 sps:$4 sm:$0xff]  }
 0x7d5   : > { %5658 = vmatprep.subr.bf16.mxu0 %v6926_v45 }
 0x7d8   : > { %5659 = vmatpush1.bf16.msra.mxu0 %v6924_v10 }
 0x7d9   : > { %5660 = vmatprep.subr.bf16.mxu0 %v6929_v51 }
 0x7db   : > { %5646 = vmatmul.mubr.bf16.gmra.mrb[24].mxu0 %v4713_v14  ;;  %v6947_v14 = vld [vmem:[#allocation14 + $0x384] ss:$8 sps:$4 sm:$0xff]  }
 0x7dc   : > { %5661 = vmatpush1.bf16.msra.mxu0 %v6927_v47  ;;  %5688 = vmatprep.mubr.bf16.mxu0 %v4708_v40  ;;  %v6948_v40 = vld [vmem:[#allocation14 + $0x390] ss:$8 sps:$4 sm:$0xff]  }
 0x7dd   : > { %5662 = vmatprep.subr.bf16.mxu0 %v6932_v18 }
 0x7e0   : > { %5663 = vmatpush1.bf16.msra.mxu0 %v6930_v0 }
 0x7e1   : > { %5664 = vmatprep.subr.bf16.mxu0 %v6935_v12 }
 0x7e4   : > { %5665 = vmatpush1.bf16.msra.mxu0 %v6933_v11 }
 0x7e5   : > { %5666 = vmatprep.subr.bf16.mxu0 %v6938_v9 }
 0x7e8   : > { %5667 = vmatpush1.bf16.msra.mxu0 %v6936_v44 }
 0x7e9   : > { %5668 = vmatprep.subr.bf16.mxu0 %v6941_v29 }
 0x7ec   : > { %5669 = vmatpush1.bf16.msra.mxu0 %v6939_v13 }
 0x7ed   : > { %5670 = vmatprep.subr.bf16.mxu0 %v6944_v58 }
 0x7f0   : > { %5671 = vmatpush1.bf16.msra.mxu0 %v6942_v30 }
 0x7f1   : > { %5672 = vmatprep.subr.bf16.mxu0 %v6947_v14 }
 0x7f4   : > { %5673 = vmatpush1.bf16.msra.mxu0 %v6945_v43 }
 0x7f5   : > { %5674 = vmatprep.subr.bf16.mxu0 %v6950_v54 }
 0x7f8   : > { %5675 = vmatpush1.bf16.msra.mxu0 %v6948_v40 }
 0x7f9   : > { %5676 = vmatprep.subr.bf16.mxu0 %v6953_v5 }
 0x7fc   : > { %5677 = vmatpush1.bf16.msra.mxu0 %v6951_v6 }
 0x7fd   : > { %5678 = vmatprep.subr.bf16.mxu0 %v6956_v27 }
 0x800   : > { %5679 = vmatpush1.bf16.msra.mxu0 %v6954_v62 }
 0x801   : > { %5680 = vmatprep.subr.bf16.mxu0 %v6959_v31 }
 0x804   : > { %5681 = vmatpush1.bf16.msra.mxu0 %v6957_v42 }
 0x805   : > { %5682 = vmatprep.subr.bf16.mxu0 %v6962_v3 }
 0x808   : > { %5683 = vmatpush1.bf16.msra.mxu0 %v6960_v41 }
 0x809   : > { %5684 = vmatprep.subr.bf16.mxu0 %v6965_v63 }
 0x80c   : > { %5685 = vmatpush1.bf16.msra.mxu0 %v6963_v20 }
 0x80d   : > { %5686 = vmatprep.subr.bf16.mxu0 %v6968_v48 }
 0x810   : > { %5687 = vmatpush1.bf16.msra.mxu0 %v6966_v19 }
 0x813   : > { %5689 = vmatmul.mubr.bf16.vlgmr.msra.gmra.mrb[20].mxu0 %v4707_v17 }
 0x814   : > { %5698 = vmatprep.mubr.bf16.mxu0 %v4716_v61 }
 0x81b   : > { %5699 = vmatmul.mubr.bf16.gmra.mrb[24].mxu0 %v4715_v46 }
 0x8e6   : > { %v5690_v33 = vpop.f32.mrb[20].mxu0 }
 0x8e7   : > { %v6458_v24 = vadd.f32 %v5690_v33, %v4850_v32  ;;  %v5692_v17 = vpop.f32.mrb[21].mxu0 }
 0x8e8   : > { %v6459_v2 = vadd.f32 %v5692_v17, %v4854_v52  ;;  %v5694_v53 = vpop.f32.mrb[22].mxu0 }
 0x8e9   : > { %6997 = vtanh.f32 %v6458_v24  ;;  %v6460_v15 = vadd.f32 %v5694_v53, %v4850_v32  ;;  %v5696_v61 = vpop.f32.mrb[23].mxu0 }
 0x8ea   : > { %6999 = vtanh.f32 %v6459_v2  ;;  %v6461_v55 = vadd.f32 %v5696_v61, %v4854_v52 }
 0x8eb   : > { %7001 = vtanh.f32 %v6460_v15 }
 0x8ec   : > { %7003 = vtanh.f32 %v6461_v55 }
 0x8ee   : > { %v5700_v35 = vpop.f32.mrb[24].mxu0 }
 0x8ef   : > { %v6462_v46 = vadd.f32 %v5700_v35, %v4850_v32  ;;  %v5702_v34 = vpop.f32.mrb[25].mxu0 }
 0x8f0   : > { %v6463_v50 = vadd.f32 %v5702_v34, %v4854_v52  ;;  %v5704_v37 = vpop.f32.mrb[26].mxu0 }
 0x8f1   : > { %7005 = vtanh.f32 %v6462_v46  ;;  %v6464_v38 = vadd.f32 %v5704_v37, %v4850_v32  ;;  %v5706_v8 = vpop.f32.mrb[27].mxu0 }
 0x8f2   : > { %7007 = vtanh.f32 %v6463_v50  ;;  %v6465_v7 = vadd.f32 %v5706_v8, %v4854_v52 }
 0x8f3   : > { %v6998_v59 = vpop.eup %6997  ;;  %7009 = vtanh.f32 %v6464_v38 }
 0x8f4   : > { %v7000_v21 = vpop.eup %6999  ;;  %5717 = vst [vmem:[%s721_s19] sm:$0xff] %v6998_v59  ;;  %7011 = vtanh.f32 %v6465_v7 }
 0x8f5   : > { %v7002_v4 = vpop.eup %7001  ;;  %5718 = vst [vmem:[%s721_s19 + $0x8] sm:$0xff] %v7000_v21 }
 0x8f6   : > { %v7004_v39 = vpop.eup %7003  ;;  %5719 = vst [vmem:[%s721_s19 + $0x10] sm:$0xff] %v7002_v4 }
 0x8f7   : > { %5720 = vst [vmem:[%s721_s19 + $0x18] sm:$0xff] %v7004_v39 }
 0x8fb   : > { %v7006_v1 = vpop.eup %7005 }
 0x8fc   : > { %v7008_v56 = vpop.eup %7007  ;;  %5721 = vst [vmem:[%s721_s19 + $0x20] sm:$0xff] %v7006_v1 }
 0x8fd   : > { %v7010_v22 = vpop.eup %7009  ;;  %5722 = vst [vmem:[%s721_s19 + $0x28] sm:$0xff] %v7008_v56 }
 0x8fe   : > { %v7012_v25 = vpop.eup %7011  ;;  %5723 = vst [vmem:[%s721_s19 + $0x30] sm:$0xff] %v7010_v22 }
 0x8ff   : > { %5724 = vst [vmem:[%s721_s19 + $0x38] sm:$0xff] %v7012_v25 }
 0x900   : > { %7250 = shalt.err (!%p7247_p4)
}
 0x901   : > { %s7251_s3 = scalar_lea.hbm %s8622_s23, 1024  ;;  %s7255_s26 = scalar_lea.hbm %s8816_s28, 4096 }
 0x902   : > { %p7252_p12 = scmp.ne.s32.totalorder %s8622_s23, %s7251_s3  ;;  %p7256_p11 = scmp.lt.u32.totalorder %s8622_s23, %s8816_s28 }
 0x903   : > { %p7257_p13 = scmp.lt.u32.totalorder %s7255_s26, %s7251_s3  ;;  %p7259_p6 = scmp.lt.u32.totalorder %s7251_s3, %s8622_s23 }
 0x904   : > { %p7253_p7 = pnand %p7252_p12, %p8817_p9 }
 0x905   : > { %p7258_p1 = por %p7257_p13, %p7256_p11 }
 0x906   : > { %p7254_p8 = pneg %p7253_p7 }
 0x907   : > { %p7260_p5 = por %p7259_p6, %p7258_p1 }
 0x909   : > { %p7261_p0 = pnand %p7260_p5, %p7254_p8 }
 0x90b   : > { %7264 = shalt.err (!%p7261_p0)
}
 0x90c   : > { %s7341_s2 = smov 256   ;;  %s7342_s16 = smov 16  }
 0x90d   : > { %6551 = dma.vmem_to_hbm [thread:$0]  (%p8817_p9), %s8624_s21, 1024, %s8622_s23, %s8628_s1, %s7341_s2, %s7341_s2, %s7342_s16  }
 0x90e PF: > { %s8818_s30 = sld [smem:[#allocation26_spill]]  ;;  %s8819_s0 = sld [smem:[#allocation23_spill]] }
 0x90f   : > { %s8820_s29 = sld [smem:[#allocation30_spill]] }
 0x914   : > { %p6598_p10 = scmp.ge.s32.totalorder %s8818_s30, 2  ;;  %s5754_s24 = sand.u32 1, %s8819_s0  }
 0x915   : > { %p8821_p2 = scmp.ne.s32.totalorder %s8820_s29, 0  ;;  %s5755_s20 = scalar_lea.sflag [#allocation4], %s5754_s24 }
 0x917   : > { %p6579_p3 = pnand %p6598_p10, %p8821_p2 }
 0x919   : > { %7302 = dma.done.wait (!%p6579_p3), %s5755_s20, 1024  }
 0x91a   : > { %7304 = vsyncadd (!%p6579_p3), %s5755_s20, 4294966272  ;;  %s8822_s21 = sld [smem:[#allocation27_spill]]  ;;  %s8823_s0 = sld [smem:[#allocation24_spill]] }
 0x91b   : > { %s8824_s30 = sld [smem:[#allocation25_spill]]  ;;  %s8825_s20 = sld [smem:[#allocation28_spill]] }
 0x920   : > { %p34_p4 = scmp.ge.s32.totalorder %s8822_s21, 6  }
 0x922   :  { %36 = sbr.rel (!%p34_p4) target bundleno = 17 (0x11), region = 167 }
 0x929   :  { %5760 = vsyncpa [#allocation3], 1 }
 0x92a   :  { %5762 = vsyncpa [#allocation3 + $0x1], 1 }
 0x92b   :  { %5763 = vsyncpa [#allocation6], 1 }
 0x92c   :  { %5764 = vsyncpa [#allocation9], 1 }
 0x92d   :  { %5765 = vsyncpa [#allocation12], 1 }
 0x92e   :  { %5766 = vsyncpa [#allocation15], 1 }
 0x92f   :  { %5767 = vsyncpa [#allocation4], 1 }
 0x930   :  { %5769 = vsyncpa [#allocation4 + $0x1], 1 }

</bundles_post_ra>
